<compile_context>
chip_gen: v6e
topology: v6e:2x2x1
jax: 0.10.0
libtpu: 0.0.40
codegen_flags: <defaults>
</compile_context>

<pallas_src>
import jax
import jax.numpy as jnp
from jax import lax
from jax.experimental import pallas as pl
from jax.experimental.pallas import tpu as pltpu

EPS = 1e-5
LANE = 128
_VMEM_CAP = 48 * 2**20   # leave headroom on v7x (64 MiB physical per TensorCore)


def _round_up(x, m):
    return (x + m - 1) // m * m


def _pick_matmul_dtype():
    """bf16 matmul operands on v6e/v7x (native bf16 MXU), f32 elsewhere (v5e)."""
    try:
        kind = jax.devices()[0].device_kind.lower()
    except Exception:
        return jnp.float32
    if "v6" in kind or "v7" in kind:
        return jnp.bfloat16
    return jnp.float32


def _space_to_depth(xpad, s):
    """(N,H,W,C) -> (s*s*N, ceil(H/s), ceil(W/s), C).

    Pure layout plumbing (reshape/transpose, no duplication) so the kernel only
    issues contiguous, non-strided window reads even for stride>1.
    """
    if s == 1:
        return xpad
    N, H, W, C = xpad.shape
    Hs, Ws = _round_up(H, s), _round_up(W, s)
    xpad = jnp.pad(xpad, ((0, 0), (0, Hs - H), (0, Ws - W), (0, 0)))
    x6 = xpad.reshape(N, Hs // s, s, Ws // s, s, C)
    x6 = jnp.transpose(x6, (2, 4, 0, 1, 3, 5))      # (s, s, N, Hs//s, Ws//s, C)
    return x6.reshape(s * s * N, Hs // s, Ws // s, C)


def _make_kernel(N, Hout, Wout, stride, Cin, Cpi, Cp, has_shortcut, pad_input, mdt):
    M = N * Hout * Wout

    def _bn(y, gamma, beta):
        # One-pass batch stats (biased variance, eps=1e-5), all f32.
        inv_m = 1.0 / M
        s1 = jnp.sum(y, axis=0, keepdims=True)
        s2 = jnp.sum(y * y, axis=0, keepdims=True)
        mean = s1 * inv_m
        var = s2 * inv_m - mean * mean
        return (y - mean) * lax.rsqrt(var + EPS) * gamma + beta

    def kernel(xph_ref, w1_ref, g1_ref, b1_ref, w2_ref, g2_ref, b2_ref, *rest):
        idx = 0
        if has_shortcut:
            ws_ref, gs_ref, bs_ref = rest[0], rest[1], rest[2]
            idx = 3
        out_ref = rest[idx]
        scratch = rest[idx + 1:]
        if pad_input:
            xv, hpad = scratch
        else:
            (hpad,) = scratch
            xv = None

        # ---- lane-pad the channel-unpadded input ONCE inside VMEM -------------
        if pad_input:
            xv[...] = jnp.zeros_like(xv)            # one dense store
            xv[:, :, :, 0:Cin] = xph_ref[...]       # only the real Cin lanes
            src = xv
        else:
            src = xph_ref

        # ---- conv1: per-tap MXU accumulation (K = Cpi per tap) ----------------
        acc = None
        center = None
        for dy in range(3):
            for dx in range(3):
                t = dy * 3 + dx
                ph = (dy % stride) * stride + (dx % stride)
                oy, ox = dy // stride, dx // stride
                win = src[ph * N:(ph + 1) * N, oy:oy + Hout, ox:ox + Wout, :]
                win = win.reshape(M, Cpi)
                if t == 4:
                    center = win                    # f32 centre tap, reused by shortcut
                d = jnp.dot(win.astype(mdt), w1_ref[t * Cpi:(t + 1) * Cpi, :],
                            preferred_element_type=jnp.float32)
                acc = d if acc is None else acc + d
        h = jnp.maximum(_bn(acc, g1_ref[...], b1_ref[...]), 0.0)

        # ---- h -> sublane-aligned halo scratch: ONE dense zero + interior store
        hpad[...] = jnp.zeros_like(hpad)
        hpad[:, 1:Hout + 1, 1:Wout + 1, :] = (
            h.reshape(N, Hout, Wout, Cp).astype(hpad.dtype))

        # ---- conv2 (3x3, stride 1): per-tap accumulation -----------------------
        acc2 = None
        for dy in range(3):
            for dx in range(3):
                t = dy * 3 + dx
                win2 = hpad[:, dy:dy + Hout, dx:dx + Wout, :].reshape(M, Cp)
                d = jnp.dot(win2, w2_ref[t * Cp:(t + 1) * Cp, :],
                            preferred_element_type=jnp.float32)
                acc2 = d if acc2 is None else acc2 + d
        out = _bn(acc2, g2_ref[...], b2_ref[...])

        # ---- shortcut: reuse the conv1 centre tap already in VMEM --------------
        if has_shortcut:
            sc = _bn(jnp.dot(center.astype(mdt), ws_ref[...],
                             preferred_element_type=jnp.float32),
                     gs_ref[...], bs_ref[...])      # 1x1 conv + BN
        else:
            sc = center                              # identity (exact f32 x)
        out_ref[...] = jnp.maximum(out + sc, 0.0)    # add + relu, lane-dense store

    return kernel


def stl_basic_block_pallas(x_nchw, params, stride, matmul_dtype=None):
    N, Cin, Hin, Win = x_nchw.shape
    C = params["w1"].shape[0]
    Hout = (Hin - 1) // stride + 1
    Wout = (Win - 1) // stride + 1
    M = N * Hout * Wout
    has_shortcut = (stride != 1) or (Cin != C)

    mdt = _pick_matmul_dtype() if matmul_dtype is None else matmul_dtype
    Cpi = _round_up(Cin, LANE)
    Cp = _round_up(C, LANE)
    pad_input = Cin < Cpi

    # NHWC f32, spatial halo pad, stride phase split.  Channels stay UNPADDED in
    # HBM; the 128-lane pad happens once inside VMEM.
    # TODO(synk): when stacking blocks keep activations NHWC end-to-end and only
    # convert NCHW<->NHWC at model boundaries.
    x = jnp.transpose(x_nchw, (0, 2, 3, 1)).astype(jnp.float32)
    xpad = jnp.pad(x, ((0, 0), (1, 1), (1, 1), (0, 0)))
    xph = _space_to_depth(xpad, stride)

    def conv3_taps(w, ci_pad, co_pad):
        # OIHW (Co,Ci,3,3) -> (9*ci_pad, co_pad): tap-major, channel-minor per tap.
        co, ci = w.shape[0], w.shape[1]
        wt = jnp.transpose(w, (2, 3, 1, 0))                      # (3,3,Ci,Co)
        wt = jnp.pad(wt, ((0, 0), (0, 0), (0, ci_pad - ci), (0, co_pad - co)))
        return wt.reshape(9 * ci_pad, co_pad).astype(mdt)

    def pad_vec(v, fill=0.0):
        return jnp.pad(v, (0, Cp - C), constant_values=fill).reshape(1, Cp) \
                  .astype(jnp.float32)

    args = [xph,
            conv3_taps(params["w1"], Cpi, Cp),
            pad_vec(params["g1"], 1.0), pad_vec(params["b1"]),
            conv3_taps(params["w2"], Cp, Cp),
            pad_vec(params["g2"], 1.0), pad_vec(params["b2"])]
    if has_shortcut:
        ws = jnp.transpose(params["ws"][:, :, 0, 0], (1, 0))     # (Cin, C)
        ws = jnp.pad(ws, ((0, Cpi - Cin), (0, Cp - C))).astype(mdt)
        args += [ws, pad_vec(params["gs"], 1.0), pad_vec(params["bs"])]

    Nph, Hph, Wph = xph.shape[0], xph.shape[1], xph.shape[2]
    Wp2 = _round_up(Wout + 2, 8)                                  # sublane-aligned halo buf
    scratch = []
    if pad_input:
        scratch.append(pltpu.VMEM((Nph, Hph, Wph, Cpi), jnp.float32))
    scratch.append(pltpu.VMEM((N, Hout + 2, Wp2, Cp), mdt))

    # ---- VMEM budget: include internal (sublane, lane) tile padding ----------
    def vmem_bytes(shape, dtype):
        it = jnp.dtype(dtype).itemsize
        s = list(shape)
        s[-1] = _round_up(s[-1], LANE)
        if len(s) >= 2:
            s[-2] = _round_up(s[-2], 8 * (4 // it))
        n = 1
        for d in s:
            n *= d
        return n * it

    est = sum(vmem_bytes(a.shape, a.dtype) for a in args)
    est += vmem_bytes((M, Cp), jnp.float32)                       # output slab
    if pad_input:
        est += vmem_bytes((Nph, Hph, Wph, Cpi), jnp.float32)      # xv scratch
    est += vmem_bytes((N, Hout + 2, Wp2, Cp), mdt)                # halo scratch
    est += 6 * vmem_bytes((M, Cp), jnp.float32)                   # in-kernel temporaries
    need = 2 * est                                                # headroom
    if need > _VMEM_CAP:
        raise ValueError(
            f"STLBasicBlock Pallas kernel needs ~{need >> 20} MiB VMEM "
            f"(> {_VMEM_CAP >> 20} MiB cap): this shape requires the M-tiled grid "
            f"(see TODO) instead of the gridless all-in-VMEM path.")
    vmem_limit = min(_VMEM_CAP, max(32 * 2**20, need))

    kernel = _make_kernel(N, Hout, Wout, stride, Cin, Cpi, Cp,
                          has_shortcut, pad_input, mdt)
    # TODO(synk): at full ResNet sizes, add an M-tiled grid ("parallel" so v7x's
    # two TensorCores both work) with two-pass BN (cross-tile sum/sumsq then
    # normalize); BN batch statistics are the only global coupling keeping this
    # invocation gridless.
    out2d = pl.pallas_call(
        kernel,
        out_shape=jax.ShapeDtypeStruct((M, Cp), jnp.float32),
        in_specs=[pl.BlockSpec(memory_space=pltpu.MemorySpace.VMEM)] * len(args),
        out_specs=pl.BlockSpec(memory_space=pltpu.MemorySpace.VMEM),
        scratch_shapes=scratch,
        compiler_params=pltpu.CompilerParams(vmem_limit_bytes=vmem_limit),
    )(*args)

    out = out2d[:, :C].reshape(N, Hout, Wout, C)
    return jnp.transpose(out, (0, 3, 1, 2))                       # back to NCHW


# ---------------- pure-JAX reference (for correctness check) ----------------
def _bn_ref(y, gamma, beta):
    mean = jnp.mean(y, axis=(0, 2, 3), keepdims=True)
    var = jnp.mean(jnp.square(y - mean), axis=(0, 2, 3), keepdims=True)
    return (y - mean) * lax.rsqrt(var + EPS) * gamma[None, :, None, None] \
        + beta[None, :, None, None]


def stl_basic_block_ref(x, params, stride):
    dn = ("NCHW", "OIHW", "NCHW")
    c1 = lax.conv_general_dilated(x, params["w1"], (stride, stride),
                                  ((1, 1), (1, 1)), dimension_numbers=dn)
    h = jnp.maximum(_bn_ref(c1, params["g1"], params["b1"]), 0.0)
    c2 = lax.conv_general_dilated(h, params["w2"], (1, 1),
                                  ((1, 1), (1, 1)), dimension_numbers=dn)
    out = _bn_ref(c2, params["g2"], params["b2"])
    Cin, C = x.shape[1], params["w1"].shape[0]
    if stride != 1 or Cin != C:
        s = lax.conv_general_dilated(x, params["ws"], (stride, stride),
                                     ((0, 0), (0, 0)), dimension_numbers=dn)
        s = _bn_ref(s, params["gs"], params["bs"])
    else:
        s = x
    return jnp.maximum(out + s, 0.0)


def init_params(key, in_planes, planes, stride):
    ks = jax.random.split(key, 9)
    p = {
        "w1": 0.1 * jax.random.normal(ks[0], (planes, in_planes, 3, 3), jnp.float32),
        "g1": 1.0 + 0.1 * jax.random.normal(ks[1], (planes,), jnp.float32),
        "b1": 0.1 * jax.random.normal(ks[2], (planes,), jnp.float32),
        "w2": 0.1 * jax.random.normal(ks[3], (planes, planes, 3, 3), jnp.float32),
        "g2": 1.0 + 0.1 * jax.random.normal(ks[4], (planes,), jnp.float32),
        "b2": 0.1 * jax.random.normal(ks[5], (planes,), jnp.float32),
    }
    if stride != 1 or in_planes != planes:
        p["ws"] = 0.1 * jax.random.normal(ks[6], (planes, in_planes, 1, 1), jnp.float32)
        p["gs"] = 1.0 + 0.05 * jax.random.normal(ks[7], (planes,), jnp.float32)
        p["bs"] = 0.05 * jax.random.normal(ks[8], (planes,), jnp.float32)
    return p


if __name__ == "__main__":
    key = jax.random.PRNGKey(0)
    kx, kp1, kp2 = jax.random.split(key, 3)

    mdt = _pick_matmul_dtype()
    tol = 5e-2 if mdt == jnp.bfloat16 else 2e-3   # bf16 MXU operands on v6e/v7x

    x = jax.random.normal(kx, (2, 4, 16, 16), jnp.float32)

    # Case 1: downsampling block with 1x1-conv shortcut (in=4, out=8, stride=2)
    params1 = init_params(kp1, 4, 8, 2)
    y1 = stl_basic_block_pallas(x, params1, stride=2)
    jax.block_until_ready(y1)
    r1 = stl_basic_block_ref(x, params1, stride=2)
    assert y1.shape == (2, 8, 8, 8)
    assert jnp.allclose(y1, r1, atol=tol, rtol=tol)

    # Case 2: identity-shortcut block (in=out=4, stride=1)
    params2 = init_params(kp2, 4, 4, 1)
    y2 = stl_basic_block_pallas(x, params2, stride=1)
    jax.block_until_ready(y2)
    r2 = stl_basic_block_ref(x, params2, stride=1)
    assert y2.shape == (2, 4, 16, 16)
    assert jnp.allclose(y2, r2, atol=tol, rtol=tol)

    print("KERNEL_OK")
</pallas_src>

<mosaic_0001>
module attributes {stable_mosaic.version = 11 : i64} {
  func.func @kernel(%arg0: memref<8x9x9x4xf32, #tpu.memory_space<vmem>>, %arg1: memref<1152x128xf32, #tpu.memory_space<vmem>>, %arg2: memref<1x128xf32, #tpu.memory_space<vmem>>, %arg3: memref<1x128xf32, #tpu.memory_space<vmem>>, %arg4: memref<1152x128xf32, #tpu.memory_space<vmem>>, %arg5: memref<1x128xf32, #tpu.memory_space<vmem>>, %arg6: memref<1x128xf32, #tpu.memory_space<vmem>>, %arg7: memref<128x128xf32, #tpu.memory_space<vmem>>, %arg8: memref<1x128xf32, #tpu.memory_space<vmem>>, %arg9: memref<1x128xf32, #tpu.memory_space<vmem>>, %arg10: memref<128x128xf32, #tpu.memory_space<vmem>>, %arg11: memref<8x9x9x128xf32, #tpu.memory_space<vmem>>, %arg12: memref<2x10x16x128xf32, #tpu.memory_space<vmem>>) attributes {dimension_semantics = [], scalar_prefetch = 0 : i64, scratch_operands = 2 : i64, tpu.core_type = #tpu.core_type<tc>} {
    %cst = arith.constant 0.000000e+00 : f32
    %0 = vector.broadcast %cst : f32 to vector<8x9x9x128xf32>
    %c0 = arith.constant 0 : index
    %c0_0 = arith.constant 0 : index
    %c0_1 = arith.constant 0 : index
    %c0_2 = arith.constant 0 : index
    %1 = vector.load %arg11[%c0, %c0_0, %c0_1, %c0_2] : memref<8x9x9x128xf32, #tpu.memory_space<vmem>>, vector<8x9x9x128xf32>
    tpu.vector_store %arg11[%c0, %c0_0, %c0_1, %c0_2], %0 {strides = array<i32>} : memref<8x9x9x128xf32, #tpu.memory_space<vmem>>, vector<8x9x9x128xf32>,
    %c0_3 = arith.constant 0 : index
    %c0_4 = arith.constant 0 : index
    %c0_5 = arith.constant 0 : index
    %c0_6 = arith.constant 0 : index
    %2 = vector.load %arg0[%c0_3, %c0_4, %c0_5, %c0_6] : memref<8x9x9x4xf32, #tpu.memory_space<vmem>>, vector<8x9x9x4xf32>
    %c0_7 = arith.constant 0 : index
    %c0_8 = arith.constant 0 : index
    %c0_9 = arith.constant 0 : index
    %c0_10 = arith.constant 0 : index
    %3 = vector.load %arg11[%c0_7, %c0_8, %c0_9, %c0_10] : memref<8x9x9x128xf32, #tpu.memory_space<vmem>>, vector<8x9x9x4xf32>
    tpu.vector_store %arg11[%c0_7, %c0_8, %c0_9, %c0_10], %2 {strides = array<i32>} : memref<8x9x9x128xf32, #tpu.memory_space<vmem>>, vector<8x9x9x4xf32>,
    %c0_11 = arith.constant 0 : index
    %c0_12 = arith.constant 0 : index
    %c0_13 = arith.constant 0 : index
    %c0_14 = arith.constant 0 : index
    %4 = vector.load %arg11[%c0_11, %c0_12, %c0_13, %c0_14] : memref<8x9x9x128xf32, #tpu.memory_space<vmem>>, vector<2x8x8x128xf32>
    %5 = vector.shape_cast %4 : vector<2x8x8x128xf32> to vector<128x128xf32>
    %c0_15 = arith.constant 0 : index
    %c0_16 = arith.constant 0 : index
    %6 = vector.load %arg1[%c0_15, %c0_16] : memref<1152x128xf32, #tpu.memory_space<vmem>>, vector<128x128xf32>
    %cst_17 = arith.constant dense<0.000000e+00> : vector<128x128xf32>
    %7 = tpu.matmul %5, %6, %cst_17 {dimension_numbers = #tpu.dot_dimension_numbers<[1], [0], [0], [1], [0, 0, 1, 1], [], []>} : vector<128x128xf32>, vector<128x128xf32>, vector<128x128xf32> -> vector<128x128xf32>
    %c2 = arith.constant 2 : index
    %c0_18 = arith.constant 0 : index
    %c0_19 = arith.constant 0 : index
    %c0_20 = arith.constant 0 : index
    %8 = vector.load %arg11[%c2, %c0_18, %c0_19, %c0_20] : memref<8x9x9x128xf32, #tpu.memory_space<vmem>>, vector<2x8x8x128xf32>
    %9 = vector.shape_cast %8 : vector<2x8x8x128xf32> to vector<128x128xf32>
    %c128 = arith.constant 128 : index
    %c0_21 = arith.constant 0 : index
    %10 = vector.load %arg1[%c128, %c0_21] : memref<1152x128xf32, #tpu.memory_space<vmem>>, vector<128x128xf32>
    %cst_22 = arith.constant dense<0.000000e+00> : vector<128x128xf32>
    %11 = tpu.matmul %9, %10, %cst_22 {dimension_numbers = #tpu.dot_dimension_numbers<[1], [0], [0], [1], [0, 0, 1, 1], [], []>} : vector<128x128xf32>, vector<128x128xf32>, vector<128x128xf32> -> vector<128x128xf32>
    %12 = arith.addf %7, %11 : vector<128x128xf32>
    %c0_23 = arith.constant 0 : index
    %c0_24 = arith.constant 0 : index
    %c1 = arith.constant 1 : index
    %c0_25 = arith.constant 0 : index
    %13 = vector.load %arg11[%c0_23, %c0_24, %c1, %c0_25] : memref<8x9x9x128xf32, #tpu.memory_space<vmem>>, vector<2x8x8x128xf32>
    %14 = vector.shape_cast %13 : vector<2x8x8x128xf32> to vector<128x128xf32>
    %c256 = arith.constant 256 : index
    %c0_26 = arith.constant 0 : index
    %15 = vector.load %arg1[%c256, %c0_26] : memref<1152x128xf32, #tpu.memory_space<vmem>>, vector<128x128xf32>
    %cst_27 = arith.constant dense<0.000000e+00> : vector<128x128xf32>
    %16 = tpu.matmul %14, %15, %cst_27 {dimension_numbers = #tpu.dot_dimension_numbers<[1], [0], [0], [1], [0, 0, 1, 1], [], []>} : vector<128x128xf32>, vector<128x128xf32>, vector<128x128xf32> -> vector<128x128xf32>
    %17 = arith.addf %12, %16 : vector<128x128xf32>
    %c4 = arith.constant 4 : index
    %c0_28 = arith.constant 0 : index
    %c0_29 = arith.constant 0 : index
    %c0_30 = arith.constant 0 : index
    %18 = vector.load %arg11[%c4, %c0_28, %c0_29, %c0_30] : memref<8x9x9x128xf32, #tpu.memory_space<vmem>>, vector<2x8x8x128xf32>
    %19 = vector.shape_cast %18 : vector<2x8x8x128xf32> to vector<128x128xf32>
    %c384 = arith.constant 384 : index
    %c0_31 = arith.constant 0 : index
    %20 = vector.load %arg1[%c384, %c0_31] : memref<1152x128xf32, #tpu.memory_space<vmem>>, vector<128x128xf32>
    %cst_32 = arith.constant dense<0.000000e+00> : vector<128x128xf32>
    %21 = tpu.matmul %19, %20, %cst_32 {dimension_numbers = #tpu.dot_dimension_numbers<[1], [0], [0], [1], [0, 0, 1, 1], [], []>} : vector<128x128xf32>, vector<128x128xf32>, vector<128x128xf32> -> vector<128x128xf32>
    %22 = arith.addf %17, %21 : vector<128x128xf32>
    %c6 = arith.constant 6 : index
    %c0_33 = arith.constant 0 : index
    %c0_34 = arith.constant 0 : index
    %c0_35 = arith.constant 0 : index
    %23 = vector.load %arg11[%c6, %c0_33, %c0_34, %c0_35] : memref<8x9x9x128xf32, #tpu.memory_space<vmem>>, vector<2x8x8x128xf32>
    %24 = vector.shape_cast %23 : vector<2x8x8x128xf32> to vector<128x128xf32>
    %c512 = arith.constant 512 : index
    %c0_36 = arith.constant 0 : index
    %25 = vector.load %arg1[%c512, %c0_36] : memref<1152x128xf32, #tpu.memory_space<vmem>>, vector<128x128xf32>
    %cst_37 = arith.constant dense<0.000000e+00> : vector<128x128xf32>
    %26 = tpu.matmul %24, %25, %cst_37 {dimension_numbers = #tpu.dot_dimension_numbers<[1], [0], [0], [1], [0, 0, 1, 1], [], []>} : vector<128x128xf32>, vector<128x128xf32>, vector<128x128xf32> -> vector<128x128xf32>
    %27 = arith.addf %22, %26 : vector<128x128xf32>
    %c4_38 = arith.constant 4 : index
    %c0_39 = arith.constant 0 : index
    %c1_40 = arith.constant 1 : index
    %c0_41 = arith.constant 0 : index
    %28 = vector.load %arg11[%c4_38, %c0_39, %c1_40, %c0_41] : memref<8x9x9x128xf32, #tpu.memory_space<vmem>>, vector<2x8x8x128xf32>
    %29 = vector.shape_cast %28 : vector<2x8x8x128xf32> to vector<128x128xf32>
    %c640 = arith.constant 640 : index
    %c0_42 = arith.constant 0 : index
    %30 = vector.load %arg1[%c640, %c0_42] : memref<1152x128xf32, #tpu.memory_space<vmem>>, vector<128x128xf32>
    %cst_43 = arith.constant dense<0.000000e+00> : vector<128x128xf32>
    %31 = tpu.matmul %29, %30, %cst_43 {dimension_numbers = #tpu.dot_dimension_numbers<[1], [0], [0], [1], [0, 0, 1, 1], [], []>} : vector<128x128xf32>, vector<128x128xf32>, vector<128x128xf32> -> vector<128x128xf32>
    %32 = arith.addf %27, %31 : vector<128x128xf32>
    %c0_44 = arith.constant 0 : index
    %c1_45 = arith.constant 1 : index
    %c0_46 = arith.constant 0 : index
    %c0_47 = arith.constant 0 : index
    %33 = vector.load %arg11[%c0_44, %c1_45, %c0_46, %c0_47] : memref<8x9x9x128xf32, #tpu.memory_space<vmem>>, vector<2x8x8x128xf32>
    %34 = vector.shape_cast %33 : vector<2x8x8x128xf32> to vector<128x128xf32>
    %c768 = arith.constant 768 : index
    %c0_48 = arith.constant 0 : index
    %35 = vector.load %arg1[%c768, %c0_48] : memref<1152x128xf32, #tpu.memory_space<vmem>>, vector<128x128xf32>
    %cst_49 = arith.constant dense<0.000000e+00> : vector<128x128xf32>
    %36 = tpu.matmul %34, %35, %cst_49 {dimension_numbers = #tpu.dot_dimension_numbers<[1], [0], [0], [1], [0, 0, 1, 1], [], []>} : vector<128x128xf32>, vector<128x128xf32>, vector<128x128xf32> -> vector<128x128xf32>
    %37 = arith.addf %32, %36 : vector<128x128xf32>
    %c2_50 = arith.constant 2 : index
    %c1_51 = arith.constant 1 : index
    %c0_52 = arith.constant 0 : index
    %c0_53 = arith.constant 0 : index
    %38 = vector.load %arg11[%c2_50, %c1_51, %c0_52, %c0_53] : memref<8x9x9x128xf32, #tpu.memory_space<vmem>>, vector<2x8x8x128xf32>
    %39 = vector.shape_cast %38 : vector<2x8x8x128xf32> to vector<128x128xf32>
    %c896 = arith.constant 896 : index
    %c0_54 = arith.constant 0 : index
    %40 = vector.load %arg1[%c896, %c0_54] : memref<1152x128xf32, #tpu.memory_space<vmem>>, vector<128x128xf32>
    %cst_55 = arith.constant dense<0.000000e+00> : vector<128x128xf32>
    %41 = tpu.matmul %39, %40, %cst_55 {dimension_numbers = #tpu.dot_dimension_numbers<[1], [0], [0], [1], [0, 0, 1, 1], [], []>} : vector<128x128xf32>, vector<128x128xf32>, vector<128x128xf32> -> vector<128x128xf32>
    %42 = arith.addf %37, %41 : vector<128x128xf32>
    %c0_56 = arith.constant 0 : index
    %c1_57 = arith.constant 1 : index
    %c1_58 = arith.constant 1 : index
    %c0_59 = arith.constant 0 : index
    %43 = vector.load %arg11[%c0_56, %c1_57, %c1_58, %c0_59] : memref<8x9x9x128xf32, #tpu.memory_space<vmem>>, vector<2x8x8x128xf32>
    %44 = vector.shape_cast %43 : vector<2x8x8x128xf32> to vector<128x128xf32>
    %c1024 = arith.constant 1024 : index
    %c0_60 = arith.constant 0 : index
    %45 = vector.load %arg1[%c1024, %c0_60] : memref<1152x128xf32, #tpu.memory_space<vmem>>, vector<128x128xf32>
    %cst_61 = arith.constant dense<0.000000e+00> : vector<128x128xf32>
    %46 = tpu.matmul %44, %45, %cst_61 {dimension_numbers = #tpu.dot_dimension_numbers<[1], [0], [0], [1], [0, 0, 1, 1], [], []>} : vector<128x128xf32>, vector<128x128xf32>, vector<128x128xf32> -> vector<128x128xf32>
    %47 = arith.addf %42, %46 : vector<128x128xf32>
    %c0_62 = arith.constant 0 : index
    %c0_63 = arith.constant 0 : index
    %48 = vector.load %arg2[%c0_62, %c0_63] : memref<1x128xf32, #tpu.memory_space<vmem>>, vector<1x128xf32>
    %c0_64 = arith.constant 0 : index
    %c0_65 = arith.constant 0 : index
    %49 = vector.load %arg3[%c0_64, %c0_65] : memref<1x128xf32, #tpu.memory_space<vmem>>, vector<1x128xf32>
    %cst_66 = arith.constant dense<0.000000e+00> : vector<128xf32>
    %50 = vector.multi_reduction <add>, %47, %cst_66 [0] : vector<128x128xf32> to vector<128xf32>
    %51 = vector.shape_cast %50 : vector<128xf32> to vector<1x128xf32>
    %52 = arith.mulf %47, %47 : vector<128x128xf32>
    %cst_67 = arith.constant dense<0.000000e+00> : vector<128xf32>
    %53 = vector.multi_reduction <add>, %52, %cst_67 [0] : vector<128x128xf32> to vector<128xf32>
    %54 = vector.shape_cast %53 : vector<128xf32> to vector<1x128xf32>
    %cst_68 = arith.constant 7.812500e-03 : f32
    %55 = vector.broadcast %cst_68 : f32 to vector<1x128xf32>
    %56 = arith.mulf %51, %55 : vector<1x128xf32>
    %cst_69 = arith.constant 7.812500e-03 : f32
    %57 = vector.broadcast %cst_69 : f32 to vector<1x128xf32>
    %58 = arith.mulf %54, %57 : vector<1x128xf32>
    %59 = arith.mulf %56, %56 : vector<1x128xf32>
    %60 = arith.subf %58, %59 : vector<1x128xf32>
    %61 = vector.broadcast %56 : vector<1x128xf32> to vector<128x128xf32>
    %62 = arith.subf %47, %61 : vector<128x128xf32>
    %cst_70 = arith.constant 9.99999974E-6 : f32
    %63 = vector.broadcast %cst_70 : f32 to vector<1x128xf32>
    %64 = arith.addf %60, %63 : vector<1x128xf32>
    %65 = math.rsqrt %64 : vector<1x128xf32>
    %66 = vector.broadcast %65 : vector<1x128xf32> to vector<128x128xf32>
    %67 = arith.mulf %62, %66 : vector<128x128xf32>
    %68 = vector.broadcast %48 : vector<1x128xf32> to vector<128x128xf32>
    %69 = arith.mulf %67, %68 : vector<128x128xf32>
    %70 = vector.broadcast %49 : vector<1x128xf32> to vector<128x128xf32>
    %71 = arith.addf %69, %70 : vector<128x128xf32>
    %cst_71 = arith.constant 0.000000e+00 : f32
    %72 = vector.broadcast %cst_71 : f32 to vector<128x128xf32>
    %73 = arith.maximumf %71, %72 : vector<128x128xf32>
    %cst_72 = arith.constant 0.000000e+00 : f32
    %74 = vector.broadcast %cst_72 : f32 to vector<2x10x16x128xf32>
    %c0_73 = arith.constant 0 : index
    %c0_74 = arith.constant 0 : index
    %c0_75 = arith.constant 0 : index
    %c0_76 = arith.constant 0 : index
    %75 = vector.load %arg12[%c0_73, %c0_74, %c0_75, %c0_76] : memref<2x10x16x128xf32, #tpu.memory_space<vmem>>, vector<2x10x16x128xf32>
    tpu.vector_store %arg12[%c0_73, %c0_74, %c0_75, %c0_76], %74 {strides = array<i32>} : memref<2x10x16x128xf32, #tpu.memory_space<vmem>>, vector<2x10x16x128xf32>,
    %76 = vector.shape_cast %73 : vector<128x128xf32> to vector<2x8x8x128xf32>
    %c0_77 = arith.constant 0 : index
    %c1_78 = arith.constant 1 : index
    %c1_79 = arith.constant 1 : index
    %c0_80 = arith.constant 0 : index
    %77 = vector.load %arg12[%c0_77, %c1_78, %c1_79, %c0_80] : memref<2x10x16x128xf32, #tpu.memory_space<vmem>>, vector<2x8x8x128xf32>
    tpu.vector_store %arg12[%c0_77, %c1_78, %c1_79, %c0_80], %76 {strides = array<i32>} : memref<2x10x16x128xf32, #tpu.memory_space<vmem>>, vector<2x8x8x128xf32>,
    %c0_81 = arith.constant 0 : index
    %c0_82 = arith.constant 0 : index
    %c0_83 = arith.constant 0 : index
    %c0_84 = arith.constant 0 : index
    %78 = vector.load %arg12[%c0_81, %c0_82, %c0_83, %c0_84] : memref<2x10x16x128xf32, #tpu.memory_space<vmem>>, vector<2x8x8x128xf32>
    %79 = vector.shape_cast %78 : vector<2x8x8x128xf32> to vector<128x128xf32>
    %c0_85 = arith.constant 0 : index
    %c0_86 = arith.constant 0 : index
    %80 = vector.load %arg4[%c0_85, %c0_86] : memref<1152x128xf32, #tpu.memory_space<vmem>>, vector<128x128xf32>
    %cst_87 = arith.constant dense<0.000000e+00> : vector<128x128xf32>
    %81 = tpu.matmul %79, %80, %cst_87 {dimension_numbers = #tpu.dot_dimension_numbers<[1], [0], [0], [1], [0, 0, 1, 1], [], []>} : vector<128x128xf32>, vector<128x128xf32>, vector<128x128xf32> -> vector<128x128xf32>
    %c0_88 = arith.constant 0 : index
    %c0_89 = arith.constant 0 : index
    %c1_90 = arith.constant 1 : index
    %c0_91 = arith.constant 0 : index
    %82 = vector.load %arg12[%c0_88, %c0_89, %c1_90, %c0_91] : memref<2x10x16x128xf32, #tpu.memory_space<vmem>>, vector<2x8x8x128xf32>
    %83 = vector.shape_cast %82 : vector<2x8x8x128xf32> to vector<128x128xf32>
    %c128_92 = arith.constant 128 : index
    %c0_93 = arith.constant 0 : index
    %84 = vector.load %arg4[%c128_92, %c0_93] : memref<1152x128xf32, #tpu.memory_space<vmem>>, vector<128x128xf32>
    %cst_94 = arith.constant dense<0.000000e+00> : vector<128x128xf32>
    %85 = tpu.matmul %83, %84, %cst_94 {dimension_numbers = #tpu.dot_dimension_numbers<[1], [0], [0], [1], [0, 0, 1, 1], [], []>} : vector<128x128xf32>, vector<128x128xf32>, vector<128x128xf32> -> vector<128x128xf32>
    %86 = arith.addf %81, %85 : vector<128x128xf32>
    %c0_95 = arith.constant 0 : index
    %c0_96 = arith.constant 0 : index
    %c2_97 = arith.constant 2 : index
    %c0_98 = arith.constant 0 : index
    %87 = vector.load %arg12[%c0_95, %c0_96, %c2_97, %c0_98] : memref<2x10x16x128xf32, #tpu.memory_space<vmem>>, vector<2x8x8x128xf32>
    %88 = vector.shape_cast %87 : vector<2x8x8x128xf32> to vector<128x128xf32>
    %c256_99 = arith.constant 256 : index
    %c0_100 = arith.constant 0 : index
    %89 = vector.load %arg4[%c256_99, %c0_100] : memref<1152x128xf32, #tpu.memory_space<vmem>>, vector<128x128xf32>
    %cst_101 = arith.constant dense<0.000000e+00> : vector<128x128xf32>
    %90 = tpu.matmul %88, %89, %cst_101 {dimension_numbers = #tpu.dot_dimension_numbers<[1], [0], [0], [1], [0, 0, 1, 1], [], []>} : vector<128x128xf32>, vector<128x128xf32>, vector<128x128xf32> -> vector<128x128xf32>
    %91 = arith.addf %86, %90 : vector<128x128xf32>
    %c0_102 = arith.constant 0 : index
    %c1_103 = arith.constant 1 : index
    %c0_104 = arith.constant 0 : index
    %c0_105 = arith.constant 0 : index
    %92 = vector.load %arg12[%c0_102, %c1_103, %c0_104, %c0_105] : memref<2x10x16x128xf32, #tpu.memory_space<vmem>>, vector<2x8x8x128xf32>
    %93 = vector.shape_cast %92 : vector<2x8x8x128xf32> to vector<128x128xf32>
    %c384_106 = arith.constant 384 : index
    %c0_107 = arith.constant 0 : index
    %94 = vector.load %arg4[%c384_106, %c0_107] : memref<1152x128xf32, #tpu.memory_space<vmem>>, vector<128x128xf32>
    %cst_108 = arith.constant dense<0.000000e+00> : vector<128x128xf32>
    %95 = tpu.matmul %93, %94, %cst_108 {dimension_numbers = #tpu.dot_dimension_numbers<[1], [0], [0], [1], [0, 0, 1, 1], [], []>} : vector<128x128xf32>, vector<128x128xf32>, vector<128x128xf32> -> vector<128x128xf32>
    %96 = arith.addf %91, %95 : vector<128x128xf32>
    %c0_109 = arith.constant 0 : index
    %c1_110 = arith.constant 1 : index
    %c1_111 = arith.constant 1 : index
    %c0_112 = arith.constant 0 : index
    %97 = vector.load %arg12[%c0_109, %c1_110, %c1_111, %c0_112] : memref<2x10x16x128xf32, #tpu.memory_space<vmem>>, vector<2x8x8x128xf32>
    %98 = vector.shape_cast %97 : vector<2x8x8x128xf32> to vector<128x128xf32>
    %c512_113 = arith.constant 512 : index
    %c0_114 = arith.constant 0 : index
    %99 = vector.load %arg4[%c512_113, %c0_114] : memref<1152x128xf32, #tpu.memory_space<vmem>>, vector<128x128xf32>
    %cst_115 = arith.constant dense<0.000000e+00> : vector<128x128xf32>
    %100 = tpu.matmul %98, %99, %cst_115 {dimension_numbers = #tpu.dot_dimension_numbers<[1], [0], [0], [1], [0, 0, 1, 1], [], []>} : vector<128x128xf32>, vector<128x128xf32>, vector<128x128xf32> -> vector<128x128xf32>
    %101 = arith.addf %96, %100 : vector<128x128xf32>
    %c0_116 = arith.constant 0 : index
    %c1_117 = arith.constant 1 : index
    %c2_118 = arith.constant 2 : index
    %c0_119 = arith.constant 0 : index
    %102 = vector.load %arg12[%c0_116, %c1_117, %c2_118, %c0_119] : memref<2x10x16x128xf32, #tpu.memory_space<vmem>>, vector<2x8x8x128xf32>
    %103 = vector.shape_cast %102 : vector<2x8x8x128xf32> to vector<128x128xf32>
    %c640_120 = arith.constant 640 : index
    %c0_121 = arith.constant 0 : index
    %104 = vector.load %arg4[%c640_120, %c0_121] : memref<1152x128xf32, #tpu.memory_space<vmem>>, vector<128x128xf32>
    %cst_122 = arith.constant dense<0.000000e+00> : vector<128x128xf32>
    %105 = tpu.matmul %103, %104, %cst_122 {dimension_numbers = #tpu.dot_dimension_numbers<[1], [0], [0], [1], [0, 0, 1, 1], [], []>} : vector<128x128xf32>, vector<128x128xf32>, vector<128x128xf32> -> vector<128x128xf32>
    %106 = arith.addf %101, %105 : vector<128x128xf32>
    %c0_123 = arith.constant 0 : index
    %c2_124 = arith.constant 2 : index
    %c0_125 = arith.constant 0 : index
    %c0_126 = arith.constant 0 : index
    %107 = vector.load %arg12[%c0_123, %c2_124, %c0_125, %c0_126] : memref<2x10x16x128xf32, #tpu.memory_space<vmem>>, vector<2x8x8x128xf32>
    %108 = vector.shape_cast %107 : vector<2x8x8x128xf32> to vector<128x128xf32>
    %c768_127 = arith.constant 768 : index
    %c0_128 = arith.constant 0 : index
    %109 = vector.load %arg4[%c768_127, %c0_128] : memref<1152x128xf32, #tpu.memory_space<vmem>>, vector<128x128xf32>
    %cst_129 = arith.constant dense<0.000000e+00> : vector<128x128xf32>
    %110 = tpu.matmul %108, %109, %cst_129 {dimension_numbers = #tpu.dot_dimension_numbers<[1], [0], [0], [1], [0, 0, 1, 1], [], []>} : vector<128x128xf32>, vector<128x128xf32>, vector<128x128xf32> -> vector<128x128xf32>
    %111 = arith.addf %106, %110 : vector<128x128xf32>
    %c0_130 = arith.constant 0 : index
    %c2_131 = arith.constant 2 : index
    %c1_132 = arith.constant 1 : index
    %c0_133 = arith.constant 0 : index
    %112 = vector.load %arg12[%c0_130, %c2_131, %c1_132, %c0_133] : memref<2x10x16x128xf32, #tpu.memory_space<vmem>>, vector<2x8x8x128xf32>
    %113 = vector.shape_cast %112 : vector<2x8x8x128xf32> to vector<128x128xf32>
    %c896_134 = arith.constant 896 : index
    %c0_135 = arith.constant 0 : index
    %114 = vector.load %arg4[%c896_134, %c0_135] : memref<1152x128xf32, #tpu.memory_space<vmem>>, vector<128x128xf32>
    %cst_136 = arith.constant dense<0.000000e+00> : vector<128x128xf32>
    %115 = tpu.matmul %113, %114, %cst_136 {dimension_numbers = #tpu.dot_dimension_numbers<[1], [0], [0], [1], [0, 0, 1, 1], [], []>} : vector<128x128xf32>, vector<128x128xf32>, vector<128x128xf32> -> vector<128x128xf32>
    %116 = arith.addf %111, %115 : vector<128x128xf32>
    %c0_137 = arith.constant 0 : index
    %c2_138 = arith.constant 2 : index
    %c2_139 = arith.constant 2 : index
    %c0_140 = arith.constant 0 : index
    %117 = vector.load %arg12[%c0_137, %c2_138, %c2_139, %c0_140] : memref<2x10x16x128xf32, #tpu.memory_space<vmem>>, vector<2x8x8x128xf32>
    %118 = vector.shape_cast %117 : vector<2x8x8x128xf32> to vector<128x128xf32>
    %c1024_141 = arith.constant 1024 : index
    %c0_142 = arith.constant 0 : index
    %119 = vector.load %arg4[%c1024_141, %c0_142] : memref<1152x128xf32, #tpu.memory_space<vmem>>, vector<128x128xf32>
    %cst_143 = arith.constant dense<0.000000e+00> : vector<128x128xf32>
    %120 = tpu.matmul %118, %119, %cst_143 {dimension_numbers = #tpu.dot_dimension_numbers<[1], [0], [0], [1], [0, 0, 1, 1], [], []>} : vector<128x128xf32>, vector<128x128xf32>, vector<128x128xf32> -> vector<128x128xf32>
    %121 = arith.addf %116, %120 : vector<128x128xf32>
    %c0_144 = arith.constant 0 : index
    %c0_145 = arith.constant 0 : index
    %122 = vector.load %arg5[%c0_144, %c0_145] : memref<1x128xf32, #tpu.memory_space<vmem>>, vector<1x128xf32>
    %c0_146 = arith.constant 0 : index
    %c0_147 = arith.constant 0 : index
    %123 = vector.load %arg6[%c0_146, %c0_147] : memref<1x128xf32, #tpu.memory_space<vmem>>, vector<1x128xf32>
    %cst_148 = arith.constant dense<0.000000e+00> : vector<128xf32>
    %124 = vector.multi_reduction <add>, %121, %cst_148 [0] : vector<128x128xf32> to vector<128xf32>
    %125 = vector.shape_cast %124 : vector<128xf32> to vector<1x128xf32>
    %126 = arith.mulf %121, %121 : vector<128x128xf32>
    %cst_149 = arith.constant dense<0.000000e+00> : vector<128xf32>
    %127 = vector.multi_reduction <add>, %126, %cst_149 [0] : vector<128x128xf32> to vector<128xf32>
    %128 = vector.shape_cast %127 : vector<128xf32> to vector<1x128xf32>
    %cst_150 = arith.constant 7.812500e-03 : f32
    %129 = vector.broadcast %cst_150 : f32 to vector<1x128xf32>
    %130 = arith.mulf %125, %129 : vector<1x128xf32>
    %cst_151 = arith.constant 7.812500e-03 : f32
    %131 = vector.broadcast %cst_151 : f32 to vector<1x128xf32>
    %132 = arith.mulf %128, %131 : vector<1x128xf32>
    %133 = arith.mulf %130, %130 : vector<1x128xf32>
    %134 = arith.subf %132, %133 : vector<1x128xf32>
    %135 = vector.broadcast %130 : vector<1x128xf32> to vector<128x128xf32>
    %136 = arith.subf %121, %135 : vector<128x128xf32>
    %cst_152 = arith.constant 9.99999974E-6 : f32
    %137 = vector.broadcast %cst_152 : f32 to vector<1x128xf32>
    %138 = arith.addf %134, %137 : vector<1x128xf32>
    %139 = math.rsqrt %138 : vector<1x128xf32>
    %140 = vector.broadcast %139 : vector<1x128xf32> to vector<128x128xf32>
    %141 = arith.mulf %136, %140 : vector<128x128xf32>
    %142 = vector.broadcast %122 : vector<1x128xf32> to vector<128x128xf32>
    %143 = arith.mulf %141, %142 : vector<128x128xf32>
    %144 = vector.broadcast %123 : vector<1x128xf32> to vector<128x128xf32>
    %145 = arith.addf %143, %144 : vector<128x128xf32>
    %c0_153 = arith.constant 0 : index
    %c0_154 = arith.constant 0 : index
    %146 = vector.load %arg7[%c0_153, %c0_154] : memref<128x128xf32, #tpu.memory_space<vmem>>, vector<128x128xf32>
    %cst_155 = arith.constant dense<0.000000e+00> : vector<128x128xf32>
    %147 = tpu.matmul %24, %146, %cst_155 {dimension_numbers = #tpu.dot_dimension_numbers<[1], [0], [0], [1], [0, 0, 1, 1], [], []>} : vector<128x128xf32>, vector<128x128xf32>, vector<128x128xf32> -> vector<128x128xf32>
    %c0_156 = arith.constant 0 : index
    %c0_157 = arith.constant 0 : index
    %148 = vector.load %arg8[%c0_156, %c0_157] : memref<1x128xf32, #tpu.memory_space<vmem>>, vector<1x128xf32>
    %c0_158 = arith.constant 0 : index
    %c0_159 = arith.constant 0 : index
    %149 = vector.load %arg9[%c0_158, %c0_159] : memref<1x128xf32, #tpu.memory_space<vmem>>, vector<1x128xf32>
    %cst_160 = arith.constant dense<0.000000e+00> : vector<128xf32>
    %150 = vector.multi_reduction <add>, %147, %cst_160 [0] : vector<128x128xf32> to vector<128xf32>
    %151 = vector.shape_cast %150 : vector<128xf32> to vector<1x128xf32>
    %152 = arith.mulf %147, %147 : vector<128x128xf32>
    %cst_161 = arith.constant dense<0.000000e+00> : vector<128xf32>
    %153 = vector.multi_reduction <add>, %152, %cst_161 [0] : vector<128x128xf32> to vector<128xf32>
    %154 = vector.shape_cast %153 : vector<128xf32> to vector<1x128xf32>
    %cst_162 = arith.constant 7.812500e-03 : f32
    %155 = vector.broadcast %cst_162 : f32 to vector<1x128xf32>
    %156 = arith.mulf %151, %155 : vector<1x128xf32>
    %cst_163 = arith.constant 7.812500e-03 : f32
    %157 = vector.broadcast %cst_163 : f32 to vector<1x128xf32>
    %158 = arith.mulf %154, %157 : vector<1x128xf32>
    %159 = arith.mulf %156, %156 : vector<1x128xf32>
    %160 = arith.subf %158, %159 : vector<1x128xf32>
    %161 = vector.broadcast %156 : vector<1x128xf32> to vector<128x128xf32>
    %162 = arith.subf %147, %161 : vector<128x128xf32>
    %cst_164 = arith.constant 9.99999974E-6 : f32
    %163 = vector.broadcast %cst_164 : f32 to vector<1x128xf32>
    %164 = arith.addf %160, %163 : vector<1x128xf32>
    %165 = math.rsqrt %164 : vector<1x128xf32>
    %166 = vector.broadcast %165 : vector<1x128xf32> to vector<128x128xf32>
    %167 = arith.mulf %162, %166 : vector<128x128xf32>
    %168 = vector.broadcast %148 : vector<1x128xf32> to vector<128x128xf32>
    %169 = arith.mulf %167, %168 : vector<128x128xf32>
    %170 = vector.broadcast %149 : vector<1x128xf32> to vector<128x128xf32>
    %171 = arith.addf %169, %170 : vector<128x128xf32>
    %172 = arith.addf %145, %171 : vector<128x128xf32>
    %cst_165 = arith.constant 0.000000e+00 : f32
    %173 = vector.broadcast %cst_165 : f32 to vector<128x128xf32>
    %174 = arith.maximumf %172, %173 : vector<128x128xf32>
    %c0_166 = arith.constant 0 : index
    %c0_167 = arith.constant 0 : index
    %175 = vector.load %arg10[%c0_166, %c0_167] : memref<128x128xf32, #tpu.memory_space<vmem>>, vector<128x128xf32>
    tpu.vector_store %arg10[%c0_166, %c0_167], %174 {strides = array<i32>} : memref<128x128xf32, #tpu.memory_space<vmem>>, vector<128x128xf32>,
    return
  }
}

</mosaic_0001>

<bundles_post_ra>
// kernel: tpu_custom_call.1
= control target key start
LH: loop header
LB: loop body
LE: loop exit
PB: predicated region body
PF: predicated region fallthrough
CT: control target
= control target key end

     0   :  { %15 = vsyncpa [#allocation5], 0  ;;  %s8872_s0 = inlined_call_operand.vmem [shape: f32[8,9,9,4], index: 0, kind: input, shape index: {}]   ;;  %s8873_s1 = inlined_call_operand.vmem [shape: f32[1152,128], index: 1, kind: input, shape index: {}]   ;;  %s8874_s2 = inlined_call_operand.vmem [shape: f32[1,128], index: 2, kind: input, shape index: {}]   ;;  %s8875_s3 = inlined_call_operand.vmem [shape: f32[1,128], index: 3, kind: input, shape index: {}]   ;;  %s8876_s4 = inlined_call_operand.hbm [shape: f32[1152,128], index: 4, kind: input, shape index: {}]   ;;  %s8877_s5 = inlined_call_operand.vmem [shape: f32[1,128], index: 5, kind: input, shape index: {}]   ;;  %s8878_s6 = inlined_call_operand.vmem [shape: f32[1,128], index: 6, kind: input, shape index: {}]   ;;  %s8879_s7 = inlined_call_operand.vmem [shape: f32[128,128], index: 7, kind: input, shape index: {}]   ;;  %s8880_s8 = inlined_call_operand.vmem [shape: f32[1,128], index: 8, kind: input, shape index: {}]   ;;  %s8881_s9 = inlined_call_operand.vmem [shape: f32[1,128], index: 9, kind: input, shape index: {}]   ;;  %s8882_s10 = inlined_call_operand.hbm [shape: f32[128,128], index: 10, kind: output, shape index: {}]  }
   0x1   :  { %16 = vsyncpa [#allocation6], 0  ;;  %s6408_s13 = smov [#allocation4]  }
   0x2   :  { %s30_s14 = sshll.u32 %s6408_s13, 4  ;;  %s31_s14 = int_to_ptr.vmem [resolvable:$true] %s30_s14 }
   0x3   :  { %s6372_s15 = scalar_lea.vmem %s31_s14, 18432  ;;  %p6377_p1 = scmp.lt.s32.totalorder %s31_s14, %s31_s14 }
   0x4   :  { %p6373_p0 = scmp.ne.s32.totalorder %s31_s14, %s6372_s15  ;;  %p6378_p2 = scmp.lt.s32.totalorder %s6372_s15, %s6372_s15 }
   0x6   :  { %p6379_p3 = por %p6378_p2, %p6377_p1 }
   0x8   :  { %p6380_p4 = pnand %p6379_p3, %p6373_p0 }
   0xa   :  { %6383 = shalt.err (!%p6380_p4)
}
   0xb   :  { %s6409_s16 = smov 128   ;;  %s6410_s17 = smov 8  }
   0xc   :  { %36 = dma.hbm_to_vmem [thread:$0]  %s8876_s4, 18432, %s31_s14, [#allocation5], %s6409_s16, %s6409_s16, %s6410_s17  }
   0xd   :  { %6404 = dma.done.wait [#allocation5], 18432  }
   0xe   :  { %6405 = vsyncadd [#allocation5], 4294948864  ;;  %v6411_v0 = vmov 0.0   ;;  %vm340_vm0 = vcmask 24576   ;;  %vm338_vm1 = vcmask 31744   ;;  %v548_v1 = vld [vmem:[%s8873_s1 + $0xf8] sm:$0xff] }
   0xf   :  { %50 = vst [vmem:[#allocation2] sm:$0xff] %v6411_v0  ;;  %51 = vst [vmem:[#allocation2 + $0x8] sm:$0x1] %v6411_v0  ;;  %v515_v2 = vld [vmem:[%s8873_s1 + $0x78] sm:$0xff]  ;;  %v547_v3 = vld [vmem:[%s8873_s1 + $0xf0] sm:$0xff]  ;;  %5239 = vmatprep.subr.mxu0 %v548_v1 }
  0x10   :  { %52 = vst [vmem:[#allocation2 + $0x10] sm:$0xff] %v6411_v0  ;;  %53 = vst [vmem:[#allocation2 + $0x18] sm:$0x1] %v6411_v0  ;;  %5295 = vmatprep.subr.mxu1 %v515_v2  ;;  %v514_v4 = vld [vmem:[%s8873_s1 + $0x70] sm:$0xff]  ;;  %5240 = vmatpush3.msra.mxu0 %v548_v1  ;;  %v546_v5 = vld [vmem:[%s8873_s1 + $0xe8] sm:$0xff] }
  0x11   :  { %54 = vst [vmem:[#allocation2 + $0x20] sm:$0xff] %v6411_v0  ;;  %55 = vst [vmem:[#allocation2 + $0x28] sm:$0x1] %v6411_v0  ;;  %5296 = vmatpush3.msra.mxu1 %v515_v2  ;;  %v513_v6 = vld [vmem:[%s8873_s1 + $0x68] sm:$0xff]  ;;  %5241 = vmatprep.subr.mxu0 %v547_v3  ;;  %v545_v7 = vld [vmem:[%s8873_s1 + $0xe0] sm:$0xff] }
  0x12   :  { %56 = vst [vmem:[#allocation2 + $0x30] sm:$0xff] %v6411_v0  ;;  %57 = vst [vmem:[#allocation2 + $0x38] sm:$0x1] %v6411_v0  ;;  %5297 = vmatprep.subr.mxu1 %v514_v4  ;;  %5242 = vmatpush3.msra.mxu0 %v547_v3  ;;  %v512_v8 = vld [vmem:[%s8873_s1 + $0x60] sm:$0xff]  ;;  %v544_v9 = vld [vmem:[%s8873_s1 + $0xd8] sm:$0xff] }
  0x13   :  { %58 = vst [vmem:[#allocation2 + $0x40] sm:$0xff] %v6411_v0  ;;  %59 = vst [vmem:[#allocation2 + $0x48] sm:$0x1] %v6411_v0  ;;  %5298 = vmatpush3.msra.mxu1 %v514_v4  ;;  %5243 = vmatprep.subr.mxu0 %v546_v5  ;;  %v511_v10 = vld [vmem:[%s8873_s1 + $0x58] sm:$0xff]  ;;  %v543_v11 = vld [vmem:[%s8873_s1 + $0xd0] sm:$0xff] }
  0x14   :  { %60 = vst [vmem:[#allocation2 + $0x50] sm:$0xff] %v6411_v0  ;;  %61 = vst [vmem:[#allocation2 + $0x58] sm:$0x1] %v6411_v0  ;;  %5299 = vmatprep.subr.mxu1 %v513_v6  ;;  %5244 = vmatpush3.msra.mxu0 %v546_v5  ;;  %v510_v12 = vld [vmem:[%s8873_s1 + $0x50] sm:$0xff]  ;;  %v542_v13 = vld [vmem:[%s8873_s1 + $0xc8] sm:$0xff] }
  0x15   :  { %62 = vst [vmem:[#allocation2 + $0x60] sm:$0xff] %v6411_v0  ;;  %63 = vst [vmem:[#allocation2 + $0x68] sm:$0x1] %v6411_v0  ;;  %5300 = vmatpush3.msra.mxu1 %v513_v6  ;;  %5245 = vmatprep.subr.mxu0 %v545_v7  ;;  %v509_v14 = vld [vmem:[%s8873_s1 + $0x48] sm:$0xff]  ;;  %v230_v15 = vld [vmem:[%s8872_s0 + $0x120] sm:$0xff] }
  0x16   :  { %64 = vst [vmem:[#allocation2 + $0x70] sm:$0xff] %v6411_v0  ;;  %65 = vst [vmem:[#allocation2 + $0x78] sm:$0x1] %v6411_v0  ;;  %5301 = vmatprep.subr.mxu1 %v512_v8  ;;  %5246 = vmatpush3.msra.mxu0 %v545_v7  ;;  %v194_v16 = vld [vmem:[%s8872_s0] sm:$0xff]  ;;  %v232_v17 = vld [vmem:[%s8872_s0 + $0x130] sm:$0xff] }
  0x17   :  { %66 = vst [vmem:[#allocation2 + $0x80] sm:$0xff] %v6411_v0  ;;  %67 = vst [vmem:[#allocation2 + $0x88] sm:$0x1] %v6411_v0  ;;  %5302 = vmatpush3.msra.mxu1 %v512_v8  ;;  %5247 = vmatprep.subr.mxu0 %v544_v9  ;;  %v196_v18 = vld [vmem:[%s8872_s0 + $0x10] sm:$0xff]  ;;  %v541_v19 = vld [vmem:[%s8873_s1 + $0xc0] sm:$0xff] }
  0x18   :  { %68 = vst [vmem:[#allocation2 + $0x90] sm:$0xff] %v6411_v0  ;;  %69 = vst [vmem:[#allocation2 + $0x98] sm:$0x1] %v6411_v0  ;;  %5303 = vmatprep.subr.mxu1 %v511_v10  ;;  %5248 = vmatpush3.msra.mxu0 %v544_v9  ;;  %v508_v20 = vld [vmem:[%s8873_s1 + $0x40] sm:$0xff]  ;;  %v236_v23 = vld [vmem:[%s8872_s0 + $0x150] sm:$0xff] }
  0x19   :  { %70 = vst [vmem:[#allocation2 + $0xa0] sm:$0xff] %v6411_v0  ;;  %71 = vst [vmem:[#allocation2 + $0xa8] sm:$0x1] %v6411_v0  ;;  %5304 = vmatpush3.msra.mxu1 %v511_v10  ;;  %5249 = vmatprep.subr.mxu0 %v543_v11  ;;  %v234_v21 = vld [vmem:[%s8872_s0 + $0x140] sm:$0xff]  ;;  %v540_v24 = vld [vmem:[%s8873_s1 + $0xb8] sm:$0xff] }
  0x1a   :  { %72 = vst [vmem:[#allocation2 + $0xb0] sm:$0xff] %v6411_v0  ;;  %73 = vst [vmem:[#allocation2 + $0xb8] sm:$0x1] %v6411_v0  ;;  %5305 = vmatprep.subr.mxu1 %v510_v12  ;;  %5250 = vmatpush3.msra.mxu0 %v543_v11  ;;  %v198_v22 = vld [vmem:[%s8872_s0 + $0x20] sm:$0xff]  ;;  %v507_v25 = vld [vmem:[%s8873_s1 + $0x38] sm:$0xff] }
  0x1b   :  { %74 = vst [vmem:[#allocation2 + $0xc0] sm:$0xff] %v6411_v0  ;;  %75 = vst [vmem:[#allocation2 + $0xc8] sm:$0x1] %v6411_v0  ;;  %5306 = vmatpush3.msra.mxu1 %v510_v12  ;;  %5251 = vmatprep.subr.mxu0 %v542_v13  ;;  %v200_v26 = vld [vmem:[%s8872_s0 + $0x30] sm:$0xff]  ;;  %v238_v29 = vld [vmem:[%s8872_s0 + $0x160] sm:$0xff] }
  0x1c   :  { %76 = vst [vmem:[#allocation2 + $0xd0] sm:$0xff] %v6411_v0  ;;  %77 = vst [vmem:[#allocation2 + $0xd8] sm:$0x1] %v6411_v0  ;;  %5307 = vmatprep.subr.mxu1 %v509_v14  ;;  %5252 = vmatpush3.msra.mxu0 %v542_v13  ;;  %v539_v27 = vld [vmem:[%s8873_s1 + $0xb0] sm:$0xff]  ;;  %v202_v30 = vld [vmem:[%s8872_s0 + $0x40] sm:$0xff] }
  0x1d   :  { %78 = vst [vmem:[#allocation2 + $0xe0] sm:$0xff] %v6411_v0  ;;  %79 = vst [vmem:[#allocation2 + $0xe8] sm:$0x1] %v6411_v0  ;;  %5308 = vmatpush3.msra.mxu1 %v509_v14  ;;  %5253 = vmatprep.subr.mxu0 %v541_v19  ;;  %v506_v28 = vld [vmem:[%s8873_s1 + $0x30] sm:$0xff]  ;;  %v538_v33 = vld [vmem:[%s8873_s1 + $0xa8] sm:$0xff] }
  0x1e   :  { %80 = vst [vmem:[#allocation2 + $0xf0] sm:$0xff] %v6411_v0  ;;  %81 = vst [vmem:[#allocation2 + $0xf8] sm:$0x1] %v6411_v0  ;;  %5309 = vmatprep.subr.mxu1 %v508_v20  ;;  %5254 = vmatpush3.msra.mxu0 %v541_v19  ;;  %v240_v31 = vld [vmem:[%s8872_s0 + $0x170] sm:$0xff]  ;;  %v505_v34 = vld [vmem:[%s8873_s1 + $0x28] sm:$0xff] }
  0x1f   :  { %82 = vst [vmem:[#allocation2 + $0x100] sm:$0xff] %v6411_v0  ;;  %83 = vst [vmem:[#allocation2 + $0x108] sm:$0x1] %v6411_v0  ;;  %5310 = vmatpush3.msra.mxu1 %v508_v20  ;;  %v204_v32 = vld [vmem:[%s8872_s0 + $0x50] sm:$0xff]  ;;  %5255 = vmatprep.subr.mxu0 %v540_v24  ;;  %v242_v35 = vld [vmem:[%s8872_s0 + $0x180] sm:$0xff] }
  0x20   :  { %84 = vst [vmem:[#allocation2 + $0x110] sm:$0xff] %v6411_v0  ;;  %85 = vst [vmem:[#allocation2 + $0x118] sm:$0x1] %v6411_v0  ;;  %5311 = vmatprep.subr.mxu1 %v507_v25  ;;  %5256 = vmatpush3.msra.mxu0 %v540_v24  ;;  %v537_v36 = vld [vmem:[%s8873_s1 + $0xa0] sm:$0xff]  ;;  %v244_v39 = vld [vmem:[%s8872_s0 + $0x190] sm:$0xff] }
  0x21   :  { %86 = vst [vmem:[#allocation2 + $0x120] sm:$0xff] %v6411_v0  ;;  %88 = vst [vmem:[#allocation2 + $0x130] sm:$0xff] %v6411_v0  ;;  %5312 = vmatpush3.msra.mxu1 %v507_v25  ;;  %5257 = vmatprep.subr.mxu0 %v539_v27  ;;  %v504_v37 = vld [vmem:[%s8873_s1 + $0x20] sm:$0xff]  ;;  %v208_v40 = vld [vmem:[%s8872_s0 + $0x70] sm:$0xff] }
  0x22   :  { %90 = vst [vmem:[#allocation2 + $0x140] sm:$0xff] %v6411_v0  ;;  %92 = vst [vmem:[#allocation2 + $0x150] sm:$0xff] %v6411_v0  ;;  %5313 = vmatprep.subr.mxu1 %v506_v28  ;;  %5258 = vmatpush3.msra.mxu0 %v539_v27  ;;  %v206_v38 = vld [vmem:[%s8872_s0 + $0x60] sm:$0xff]  ;;  %v536_v41 = vld [vmem:[%s8873_s1 + $0x98] sm:$0xff] }
  0x23   :  { %94 = vst [vmem:[#allocation2 + $0x160] sm:$0xff] %v6411_v0  ;;  %96 = vst [vmem:[#allocation2 + $0x170] sm:$0xff] %v6411_v0  ;;  %5314 = vmatpush3.msra.mxu1 %v506_v28  ;;  %5259 = vmatprep.subr.mxu0 %v538_v33  ;;  %v503_v42 = vld [vmem:[%s8873_s1 + $0x18] sm:$0xff]  ;;  %v535_v43 = vld [vmem:[%s8873_s1 + $0x90] sm:$0xff] }
  0x24   :  { %98 = vst [vmem:[#allocation2 + $0x180] sm:$0xff] %v6411_v0  ;;  %100 = vst [vmem:[#allocation2 + $0x190] sm:$0xff] %v6411_v0  ;;  %5315 = vmatprep.subr.mxu1 %v505_v34  ;;  %5260 = vmatpush3.msra.mxu0 %v538_v33  ;;  %v502_v44 = vld [vmem:[%s8873_s1 + $0x10] sm:$0xff]  ;;  %v250_v47 = vld [vmem:[%s8872_s0 + $0x1c0] sm:$0xff] }
  0x25   :  { %102 = vst [vmem:[#allocation2 + $0x1a0] sm:$0xff] %v6411_v0  ;;  %104 = vst [vmem:[#allocation2 + $0x1b0] sm:$0xff] %v6411_v0  ;;  %5316 = vmatpush3.msra.mxu1 %v505_v34  ;;  %5261 = vmatprep.subr.mxu0 %v537_v36  ;;  %v248_v45 = vld [vmem:[%s8872_s0 + $0x1b0] sm:$0xff]  ;;  %v534_v48 = vld [vmem:[%s8873_s1 + $0x88] sm:$0xff] }
  0x26   :  { %106 = vst [vmem:[#allocation2 + $0x1c0] sm:$0xff] %v6411_v0  ;;  %108 = vst [vmem:[#allocation2 + $0x1d0] sm:$0xff] %v6411_v0  ;;  %5317 = vmatprep.subr.mxu1 %v504_v37  ;;  %5262 = vmatpush3.msra.mxu0 %v537_v36  ;;  %v212_v46 = vld [vmem:[%s8872_s0 + $0x90] sm:$0xff]  ;;  %v501_v49 = vld [vmem:[%s8873_s1 + $0x8] sm:$0xff] }
  0x27   :  { %110 = vst [vmem:[#allocation2 + $0x1e0] sm:$0xff] %v6411_v0  ;;  %112 = vst [vmem:[#allocation2 + $0x1f0] sm:$0xff] %v6411_v0  ;;  %5318 = vmatpush3.msra.mxu1 %v504_v37  ;;  %5263 = vmatprep.subr.mxu0 %v536_v41  ;;  %v214_v50 = vld [vmem:[%s8872_s0 + $0xa0] sm:$0xff]  ;;  %v252_v54 = vld [vmem:[%s8872_s0 + $0x1d0] sm:$0xff] }
  0x28   :  { %114 = vst [vmem:[#allocation2 + $0x200] sm:$0xff] %v6411_v0  ;;  %116 = vst [vmem:[#allocation2 + $0x210] sm:$0xff] %v6411_v0  ;;  %5319 = vmatprep.subr.mxu1 %v503_v42  ;;  %5264 = vmatpush3.msra.mxu0 %v536_v41  ;;  %v533_v51 = vld [vmem:[%s8873_s1 + $0x80] sm:$0xff]  ;;  %v216_v55 = vld [vmem:[%s8872_s0 + $0xb0] sm:$0xff] }
  0x29   :  { %118 = vst [vmem:[#allocation2 + $0x220] sm:$0xff] %v6411_v0  ;;  %120 = vst [vmem:[#allocation2 + $0x230] sm:$0xff] %v6411_v0  ;;  %5320 = vmatpush3.msra.mxu1 %v503_v42  ;;  %5265 = vmatprep.subr.mxu0 %v535_v43  ;;  %v500_v52 = vld [vmem:[%s8873_s1] sm:$0xff]  ;;  %v870_v58 = vld [vmem:[%s8873_s1 + $0x178] sm:$0xff] }
  0x2a   :  { %122 = vst [vmem:[#allocation2 + $0x240] sm:$0xff] %v6411_v0  ;;  %123 = vst [vmem:[#allocation2 + $0x248] sm:$0x1] %v6411_v0  ;;  %5321 = vmatprep.subr.mxu1 %v502_v44  ;;  %5266 = vmatpush3.msra.mxu0 %v535_v43  ;;  %v254_v56 = vld [vmem:[%s8872_s0 + $0x1e0] sm:$0xff]  ;;  %v1064_v59 = vld [vmem:[%s8873_s1 + $0x1f8] sm:$0xff] }
  0x2b   :  { %124 = vst [vmem:[#allocation2 + $0x250] sm:$0xff] %v6411_v0  ;;  %125 = vst [vmem:[#allocation2 + $0x258] sm:$0x1] %v6411_v0  ;;  %5322 = vmatpush3.msra.mxu1 %v502_v44  ;;  %5267 = vmatprep.subr.mxu0 %v534_v48  ;;  %v218_v60 = vld [vmem:[%s8872_s0 + $0xc0] sm:$0xff]  ;;  %v256_v63 = vld [vmem:[%s8872_s0 + $0x1f0] sm:$0xff] }
  0x2c   :  { %126 = vst [vmem:[#allocation2 + $0x260] sm:$0xff] %v6411_v0  ;;  %127 = vst [vmem:[#allocation2 + $0x268] sm:$0x1] %v6411_v0  ;;  %5323 = vmatprep.subr.mxu1 %v501_v49  ;;  %5268 = vmatpush3.msra.mxu0 %v534_v48  ;;  %v258_v1 = vld [vmem:[%s8872_s0 + $0x200] sm:$0xff]  ;;  %v869_v4 = vld [vmem:[%s8873_s1 + $0x170] sm:$0xff] }
  0x2d   :  { %128 = vst [vmem:[#allocation2 + $0x270] sm:$0xff] %v6411_v0  ;;  %129 = vst [vmem:[#allocation2 + $0x278] sm:$0x1] %v6411_v0  ;;  %5324 = vmatpush3.msra.mxu1 %v501_v49  ;;  %5269 = vmatprep.subr.mxu0 %v533_v51  ;;  %v222_v2 = vld [vmem:[%s8872_s0 + $0xe0] sm:$0xff]  ;;  %v260_v8 = vld [vmem:[%s8872_s0 + $0x210] sm:$0xff] }
  0x2e   :  { %130 = vst [vmem:[#allocation2 + $0x280] sm:$0xff] %v6411_v0  ;;  %131 = vst [vmem:[#allocation2 + $0x288] sm:$0x1] %v6411_v0  ;;  %5325 = vmatprep.subr.mxu1 %v500_v52  ;;  %5270 = vmatpush3.msra.mxu0 %v533_v51  ;;  %v224_v9 = vld [vmem:[%s8872_s0 + $0xf0] sm:$0xff]  ;;  %v262_v10 = vld [vmem:[%s8872_s0 + $0x220] sm:$0xff] }
  0x2f   :  { %132 = vst [vmem:[#allocation2 + $0x290] sm:$0xff] %v6411_v0  ;;  %133 = vst [vmem:[#allocation2 + $0x298] sm:$0x1] %v6411_v0  ;;  %5326 = vmatpush3.msra.mxu1 %v500_v52  ;;  %5351 = vmatprep.subr.mxu0 %v870_v58  ;;  %v226_v11 = vld [vmem:[%s8872_s0 + $0x100] sm:$0xff]  ;;  %v868_v12 = vld [vmem:[%s8873_s1 + $0x168] sm:$0xff] }
  0x30   :  { %134 = vst [vmem:[#allocation2 + $0x2a0] sm:$0xff] %v6411_v0  ;;  %135 = vst [vmem:[#allocation2 + $0x2a8] sm:$0x1] %v6411_v0  ;;  %5407 = vmatprep.subr.mxu1 %v1064_v59  ;;  %v1063_v13 = vld [vmem:[%s8873_s1 + $0x1f0] sm:$0xff]  ;;  %v867_v14 = vld [vmem:[%s8873_s1 + $0x160] sm:$0xff] }
  0x31   :  { %136 = vst [vmem:[#allocation2 + $0x2b0] sm:$0xff] %v6411_v0  ;;  %137 = vst [vmem:[#allocation2 + $0x2b8] sm:$0x1] %v6411_v0  ;;  %v195_v19 = vld [vmem:[%s8872_s0 + $0x8] sm:$0x1]  ;;  %v866_v24 = vld [vmem:[%s8873_s1 + $0x158] sm:$0xff] }
  0x32   :  { %140 = vst [vmem:[#allocation2 + $0x2d0] sm:$0xff] %v6411_v0  ;;  %141 = vst [vmem:[#allocation2 + $0x2d8] sm:$0x1] %v6411_v0  ;;  %v197_v20 = vld [vmem:[%s8872_s0 + $0x18] sm:$0x1]  ;;  %v1061_v25 = vld [vmem:[%s8873_s1 + $0x1e0] sm:$0xff] }
  0x33   :  { %142 = vst [vmem:[#allocation2 + $0x2e0] sm:$0xff] %v6411_v0  ;;  %143 = vst [vmem:[#allocation2 + $0x2e8] sm:$0x1] %v6411_v0  ;;  %v1060_v27 = vld [vmem:[%s8873_s1 + $0x1d8] sm:$0xff]  ;;  %v272_v33 = vld [vmem:[%s8872_s0 + $0x270] sm:$0xff] }
  0x34   :  { %144 = vst [vmem:[#allocation2 + $0x2f0] sm:$0xff] %v6411_v0  ;;  %145 = vst [vmem:[#allocation2 + $0x2f8] sm:$0x1] %v6411_v0  ;;  %v203_v34 = vld [vmem:[%s8872_s0 + $0x48] sm:$0x1]  ;;  %v276_v41 = vld [vmem:[%s8872_s0 + $0x290] sm:$0xff] }
  0x35   :  { %146 = vst [vmem:[#allocation2 + $0x300] sm:$0xff] %v6411_v0  ;;  %147 = vst [vmem:[#allocation2 + $0x308] sm:$0x1] %v6411_v0  ;;  %v205_v37 = vld [vmem:[%s8872_s0 + $0x58] sm:$0x1]  ;;  %v863_v42 = vld [vmem:[%s8873_s1 + $0x140] sm:$0xff] }
  0x36   :  { %148 = vst [vmem:[#allocation2 + $0x310] sm:$0xff] %v6411_v0  ;;  %149 = vst [vmem:[#allocation2 + $0x318] sm:$0x1] %v6411_v0  ;;  %v1058_v43 = vld [vmem:[%s8873_s1 + $0x1c8] sm:$0xff]  ;;  %v278_v48 = vld [vmem:[%s8872_s0 + $0x2a0] sm:$0xff] }
  0x37   :  { %150 = vst [vmem:[#allocation2 + $0x320] sm:$0xff] %v6411_v0  ;;  %151 = vst [vmem:[#allocation2 + $0x328] sm:$0x1] %v6411_v0  ;;  %v207_v44 = vld [vmem:[%s8872_s0 + $0x68] sm:$0x1]  ;;  %v280_v51 = vld [vmem:[%s8872_s0 + $0x2b0] sm:$0xff] }
  0x38   :  { %152 = vst [vmem:[#allocation2 + $0x330] sm:$0xff] %v6411_v0  ;;  %153 = vst [vmem:[#allocation2 + $0x338] sm:$0x1] %v6411_v0  ;;  %v862_v52 = vld [vmem:[%s8873_s1 + $0x138] sm:$0xff] }
  0x39   :  { %154 = vst [vmem:[#allocation2 + $0x340] sm:$0xff] %v6411_v0  ;;  %155 = vst [vmem:[#allocation2 + $0x348] sm:$0x1] %v6411_v0 }
  0x3a   :  { %158 = vst [vmem:[#allocation2 + $0x360] sm:$0xff] %v6411_v0  ;;  %160 = vst [vmem:[#allocation2 + $0x370] sm:$0xff] %v6411_v0 }
  0x3b   :  { %162 = vst [vmem:[#allocation2 + $0x380] sm:$0xff] %v6411_v0  ;;  %164 = vst [vmem:[#allocation2 + $0x390] sm:$0xff] %v6411_v0 }
  0x3c   :  { %166 = vst [vmem:[#allocation2 + $0x3a0] sm:$0xff] %v6411_v0  ;;  %168 = vst [vmem:[#allocation2 + $0x3b0] sm:$0xff] %v6411_v0 }
  0x3d   :  { %170 = vst [vmem:[#allocation2 + $0x3c0] sm:$0xff] %v6411_v0  ;;  %172 = vst [vmem:[#allocation2 + $0x3d0] sm:$0xff] %v6411_v0 }
  0x3e   :  { %176 = vst [vmem:[#allocation2 + $0x3f0] sm:$0xff] %v6411_v0  ;;  %178 = vst [vmem:[#allocation2 + $0x400] sm:$0xff] %v6411_v0 }
  0x3f   :  { %180 = vst [vmem:[#allocation2 + $0x410] sm:$0xff] %v6411_v0  ;;  %182 = vst [vmem:[#allocation2 + $0x420] sm:$0xff] %v6411_v0 }
  0x40   :  { %184 = vst [vmem:[#allocation2 + $0x430] sm:$0xff] %v6411_v0  ;;  %186 = vst [vmem:[#allocation2 + $0x440] sm:$0xff] %v6411_v0 }
  0x41   :  { %188 = vst [vmem:[#allocation2 + $0x450] sm:$0xff] %v6411_v0  ;;  %190 = vst [vmem:[#allocation2 + $0x460] sm:$0xff] %v6411_v0 }
  0x42   :  { %2352 = vst [vmem:[#allocation3] sm:$0xff] %v6411_v0  ;;  %2353 = vst [vmem:[#allocation3 + $0x8] sm:$0xff] %v6411_v0 }
  0x43   :  { %2354 = vst [vmem:[#allocation3 + $0x10] sm:$0xff] %v6411_v0  ;;  %2355 = vst [vmem:[#allocation3 + $0x18] sm:$0xff] %v6411_v0 }
  0x44   :  { %2356 = vst [vmem:[#allocation3 + $0x20] sm:$0xff] %v6411_v0  ;;  %2357 = vst [vmem:[#allocation3 + $0x28] sm:$0xff] %v6411_v0 }
  0x45   :  { %2358 = vst [vmem:[#allocation3 + $0x30] sm:$0xff] %v6411_v0  ;;  %2359 = vst [vmem:[#allocation3 + $0x38] sm:$0xff] %v6411_v0 }
  0x46   :  { %2360 = vst [vmem:[#allocation3 + $0x40] sm:$0xff] %v6411_v0  ;;  %2361 = vst [vmem:[#allocation3 + $0x48] sm:$0xff] %v6411_v0 }
  0x47   :  { %2362 = vst [vmem:[#allocation3 + $0x50] sm:$0xff] %v6411_v0  ;;  %2363 = vst [vmem:[#allocation3 + $0x58] sm:$0xff] %v6411_v0 }
  0x48   :  { %2364 = vst [vmem:[#allocation3 + $0x60] sm:$0xff] %v6411_v0  ;;  %2365 = vst [vmem:[#allocation3 + $0x68] sm:$0xff] %v6411_v0 }
  0x49   :  { %2366 = vst [vmem:[#allocation3 + $0x70] sm:$0xff] %v6411_v0  ;;  %2367 = vst [vmem:[#allocation3 + $0x78] sm:$0xff] %v6411_v0 }
  0x4a   :  { %2368 = vst [vmem:[#allocation3 + $0x80] sm:$0xff] %v6411_v0  ;;  %2369 = vst [vmem:[#allocation3 + $0x88] sm:$0xff] %v6411_v0 }
  0x4b   :  { %2370 = vst [vmem:[#allocation3 + $0x90] sm:$0xff] %v6411_v0  ;;  %2371 = vst [vmem:[#allocation3 + $0x98] sm:$0xff] %v6411_v0 }
  0x4c   :  { %2372 = vst [vmem:[#allocation3 + $0xa0] sm:$0xff] %v6411_v0  ;;  %2373 = vst [vmem:[#allocation3 + $0xa8] sm:$0xff] %v6411_v0 }
  0x4d   :  { %2374 = vst [vmem:[#allocation3 + $0xb0] sm:$0xff] %v6411_v0  ;;  %2375 = vst [vmem:[#allocation3 + $0xb8] sm:$0xff] %v6411_v0 }
  0x4e   :  { %2376 = vst [vmem:[#allocation3 + $0xc0] sm:$0xff] %v6411_v0  ;;  %2377 = vst [vmem:[#allocation3 + $0xc8] sm:$0xff] %v6411_v0 }
  0x4f   :  { %2378 = vst [vmem:[#allocation3 + $0xd0] sm:$0xff] %v6411_v0  ;;  %2379 = vst [vmem:[#allocation3 + $0xd8] sm:$0xff] %v6411_v0 }
  0x50   :  { %2380 = vst [vmem:[#allocation3 + $0xe0] sm:$0xff] %v6411_v0  ;;  %2381 = vst [vmem:[#allocation3 + $0xe8] sm:$0xff] %v6411_v0 }
  0x51   :  { %2382 = vst [vmem:[#allocation3 + $0xf0] sm:$0xff] %v6411_v0  ;;  %2383 = vst [vmem:[#allocation3 + $0xf8] sm:$0xff] %v6411_v0 }
  0x52   :  { %2384 = vst [vmem:[#allocation3 + $0x100] sm:$0xff] %v6411_v0  ;;  %2385 = vst [vmem:[#allocation3 + $0x108] sm:$0xff] %v6411_v0 }
  0x53   :  { %2386 = vst [vmem:[#allocation3 + $0x110] sm:$0xff] %v6411_v0  ;;  %2387 = vst [vmem:[#allocation3 + $0x118] sm:$0xff] %v6411_v0 }
  0x54   :  { %2388 = vst [vmem:[#allocation3 + $0x120] sm:$0xff] %v6411_v0  ;;  %2389 = vst [vmem:[#allocation3 + $0x128] sm:$0xff] %v6411_v0 }
  0x55   :  { %2390 = vst [vmem:[#allocation3 + $0x130] sm:$0xff] %v6411_v0  ;;  %2391 = vst [vmem:[#allocation3 + $0x138] sm:$0xff] %v6411_v0  ;;  %v220_v0 = vld [vmem:[%s8872_s0 + $0xd0] sm:$0xff] }
  0x56   :  { %376 = vst.msk [vmem:[#allocation2 + $0x120] sm:$0xff] %vm338_vm1, %v230_v15  ;;  %339 = vst.msk [vmem:[#allocation2] sm:$0xff] %vm338_vm1, %v194_v16  ;;  %v1062_v15 = vld [vmem:[%s8873_s1 + $0x1e8] sm:$0xff] }
  0x57   :  { %378 = vst.msk [vmem:[#allocation2 + $0x130] sm:$0xff] %vm338_vm1, %v232_v17  ;;  %342 = vst.msk [vmem:[#allocation2 + $0x10] sm:$0xff] %vm338_vm1, %v196_v18 }
  0x58   :  { %380 = vst.msk [vmem:[#allocation2 + $0x140] sm:$0xff] %vm338_vm1, %v234_v21  ;;  %344 = vst.msk [vmem:[#allocation2 + $0x20] sm:$0xff] %vm338_vm1, %v198_v22  ;;  %v266_v22 = vld [vmem:[%s8872_s0 + $0x240] sm:$0xff] }
  0x59   :  { %382 = vst.msk [vmem:[#allocation2 + $0x150] sm:$0xff] %vm338_vm1, %v236_v23  ;;  %346 = vst.msk [vmem:[#allocation2 + $0x30] sm:$0xff] %vm338_vm1, %v200_v26  ;;  %v268_v23 = vld [vmem:[%s8872_s0 + $0x250] sm:$0xff] }
  0x5a   :  { %384 = vst.msk [vmem:[#allocation2 + $0x160] sm:$0xff] %vm338_vm1, %v238_v29  ;;  %348 = vst.msk [vmem:[#allocation2 + $0x40] sm:$0xff] %vm338_vm1, %v202_v30  ;;  %v865_v26 = vld [vmem:[%s8873_s1 + $0x150] sm:$0xff]  ;;  %v199_v29 = vld [vmem:[%s8872_s0 + $0x28] sm:$0x1] }
  0x5b   :  { %386 = vst.msk [vmem:[#allocation2 + $0x170] sm:$0xff] %vm338_vm1, %v240_v31  ;;  %350 = vst.msk [vmem:[#allocation2 + $0x50] sm:$0xff] %vm338_vm1, %v204_v32  ;;  %v201_v30 = vld [vmem:[%s8872_s0 + $0x38] sm:$0x1]  ;;  %v270_v32 = vld [vmem:[%s8872_s0 + $0x260] sm:$0xff] }
  0x5c   :  { %388 = vst.msk [vmem:[#allocation2 + $0x180] sm:$0xff] %vm338_vm1, %v242_v35  ;;  %352 = vst.msk [vmem:[#allocation2 + $0x60] sm:$0xff] %vm338_vm1, %v206_v38  ;;  %v864_v38 = vld [vmem:[%s8873_s1 + $0x148] sm:$0xff] }
  0x5d   :  { %390 = vst.msk [vmem:[#allocation2 + $0x190] sm:$0xff] %vm338_vm1, %v244_v39  ;;  %354 = vst.msk [vmem:[#allocation2 + $0x70] sm:$0xff] %vm338_vm1, %v208_v40  ;;  %v517_v53 = vld [vmem:[#allocation2 + $0x120] sm:$0xff]  ;;  %v1059_v39 = vld [vmem:[%s8873_s1 + $0x1d0] sm:$0xff] }
  0x5e   :  { %394 = vst.msk [vmem:[#allocation2 + $0x1b0] sm:$0xff] %vm338_vm1, %v248_v45  ;;  %358 = vst.msk [vmem:[#allocation2 + $0x90] sm:$0xff] %vm338_vm1, %v212_v46  ;;  %v484_v57 = vld [vmem:[#allocation2] sm:$0xff]  ;;  %v518_v61 = vld [vmem:[#allocation2 + $0x130] sm:$0xff]  ;;  %5271 = vmatprep.mubr.f32.mxu0 %v517_v53 }
  0x5f   :  { %396 = vst.msk [vmem:[#allocation2 + $0x1c0] sm:$0xff] %vm338_vm1, %v250_v47  ;;  %360 = vst.msk [vmem:[#allocation2 + $0xa0] sm:$0xff] %vm338_vm1, %v214_v50  ;;  %v485_v62 = vld [vmem:[#allocation2 + $0x10] sm:$0xff]  ;;  %5327 = vmatprep.mubr.f32.mxu1 %v484_v57  ;;  %v519_v3 = vld [vmem:[#allocation2 + $0x140] sm:$0xff]  ;;  %5272 = vmatmul.mubr.f32.vlgmr.msra.gmra.mxu0 %v518_v61 }
  0x60   :  { %398 = vst.msk [vmem:[#allocation2 + $0x1d0] sm:$0xff] %vm338_vm1, %v252_v54  ;;  %362 = vst.msk [vmem:[#allocation2 + $0xb0] sm:$0xff] %vm338_vm1, %v216_v55  ;;  %5328 = vmatmul.mubr.f32.vlgmr.msra.gmra.mxu1 %v485_v62  ;;  %v486_v5 = vld [vmem:[#allocation2 + $0x20] sm:$0xff]  ;;  %v520_v6 = vld [vmem:[#allocation2 + $0x150] sm:$0xff]  ;;  %5352 = vmatpush3.msra.mxu0 %v870_v58 }
  0x61   :  { %400 = vst.msk [vmem:[#allocation2 + $0x1e0] sm:$0xff] %vm338_vm1, %v254_v56  ;;  %364 = vst.msk [vmem:[#allocation2 + $0xc0] sm:$0xff] %vm338_vm1, %v218_v60  ;;  %v487_v7 = vld [vmem:[#allocation2 + $0x30] sm:$0xff]  ;;  %5274 = vmatprep.mubr.f32.mxu0 %v519_v3  ;;  %5353 = vmatprep.subr.mxu0 %v869_v4  ;;  %v521_v16 = vld [vmem:[#allocation2 + $0x160] sm:$0xff] }
  0x62   :  { %402 = vst.msk [vmem:[#allocation2 + $0x1f0] sm:$0xff] %vm338_vm1, %v256_v63  ;;  %366 = vst.msk [vmem:[#allocation2 + $0xd0] sm:$0xff] %vm338_vm1, %v220_v0  ;;  %5330 = vmatprep.mubr.f32.mxu1 %v486_v5  ;;  %5354 = vmatpush3.msra.mxu0 %v869_v4  ;;  %v488_v17 = vld [vmem:[#allocation2 + $0x40] sm:$0xff]  ;;  %v522_v18 = vld [vmem:[#allocation2 + $0x170] sm:$0xff] }
  0x63   :  { %404 = vst.msk [vmem:[#allocation2 + $0x200] sm:$0xff] %vm338_vm1, %v258_v1  ;;  %368 = vst.msk [vmem:[#allocation2 + $0xe0] sm:$0xff] %vm338_vm1, %v222_v2  ;;  %5408 = vmatpush3.msra.mxu1 %v1064_v59  ;;  %5275 = vmatmul.mubr.f32.gmra.mxu0 %v520_v6  ;;  %v489_v21 = vld [vmem:[#allocation2 + $0x50] sm:$0xff]  ;;  %v523_v28 = vld [vmem:[#allocation2 + $0x180] sm:$0xff] }
  0x64   :  { %406 = vst.msk [vmem:[#allocation2 + $0x210] sm:$0xff] %vm338_vm1, %v260_v8  ;;  %370 = vst.msk [vmem:[#allocation2 + $0xf0] sm:$0xff] %vm338_vm1, %v224_v9  ;;  %5331 = vmatmul.mubr.f32.gmra.mxu1 %v487_v7  ;;  %5355 = vmatprep.subr.mxu0 %v868_v12  ;;  %v490_v31 = vld [vmem:[#allocation2 + $0x60] sm:$0xff]  ;;  %v524_v35 = vld [vmem:[#allocation2 + $0x190] sm:$0xff] }
  0x65   :  { %408 = vst.msk [vmem:[#allocation2 + $0x220] sm:$0xff] %vm338_vm1, %v262_v10  ;;  %372 = vst.msk [vmem:[#allocation2 + $0x100] sm:$0xff] %vm338_vm1, %v226_v11  ;;  %5409 = vmatprep.subr.mxu1 %v1063_v13  ;;  %5356 = vmatpush3.msra.mxu0 %v868_v12  ;;  %v491_v36 = vld [vmem:[#allocation2 + $0x70] sm:$0xff]  ;;  %v274_v40 = vld [vmem:[%s8872_s0 + $0x280] sm:$0xff] }
  0x66   :  { %5410 = vmatpush3.msra.mxu1 %v1063_v13  ;;  %5357 = vmatprep.subr.mxu0 %v867_v14  ;;  %341 = vst.msk [vmem:[#allocation2 + $0x8] sm:$0x1] %vm340_vm0, %v195_v19  ;;  %343 = vst.msk [vmem:[#allocation2 + $0x18] sm:$0x1] %vm340_vm0, %v197_v20  ;;  %v525_v45 = vld [vmem:[#allocation2 + $0x1b0] sm:$0xff]  ;;  %v526_v49 = vld [vmem:[#allocation2 + $0x1c0] sm:$0xff] }
  0x67   :  { %5411 = vmatprep.subr.mxu1 %v1062_v15  ;;  %5277 = vmatprep.mubr.f32.mxu0 %v521_v16  ;;  %412 = vst.msk [vmem:[#allocation2 + $0x240] sm:$0xff] %vm338_vm1, %v266_v22  ;;  %414 = vst.msk [vmem:[#allocation2 + $0x250] sm:$0xff] %vm338_vm1, %v268_v23  ;;  %v492_v46 = vld [vmem:[#allocation2 + $0x90] sm:$0xff]  ;;  %v209_v47 = vld [vmem:[%s8872_s0 + $0x78] sm:$0x1] }
  0x68   :  { %5333 = vmatprep.mubr.f32.mxu1 %v488_v17  ;;  %5358 = vmatpush3.msra.mxu0 %v867_v14  ;;  %345 = vst.msk [vmem:[#allocation2 + $0x28] sm:$0x1] %vm340_vm0, %v199_v29  ;;  %347 = vst.msk [vmem:[#allocation2 + $0x38] sm:$0x1] %vm340_vm0, %v201_v30  ;;  %v493_v50 = vld [vmem:[#allocation2 + $0xa0] sm:$0xff]  ;;  %v861_v56 = vld [vmem:[%s8873_s1 + $0x130] sm:$0xff] }
  0x69   :  { %5412 = vmatpush3.msra.mxu1 %v1062_v15  ;;  %5278 = vmatmul.mubr.f32.gmra.mxu0 %v522_v18  ;;  %416 = vst.msk [vmem:[#allocation2 + $0x260] sm:$0xff] %vm338_vm1, %v270_v32  ;;  %418 = vst.msk [vmem:[#allocation2 + $0x270] sm:$0xff] %vm338_vm1, %v272_v33  ;;  %v1057_v53 = vld [vmem:[%s8873_s1 + $0x1c0] sm:$0xff]  ;;  %v213_v54 = vld [vmem:[%s8872_s0 + $0x98] sm:$0x1] }
  0x6a   :  { %5334 = vmatmul.mubr.f32.gmra.mxu1 %v489_v21  ;;  %5359 = vmatprep.subr.mxu0 %v866_v24  ;;  %349 = vst.msk [vmem:[#allocation2 + $0x48] sm:$0x1] %vm340_vm0, %v203_v34  ;;  %351 = vst.msk [vmem:[#allocation2 + $0x58] sm:$0x1] %vm340_vm0, %v205_v37  ;;  %v215_v55 = vld [vmem:[%s8872_s0 + $0xa8] sm:$0x1] }
  0x6b   :  { %5413 = vmatprep.subr.mxu1 %v1061_v25  ;;  %5360 = vmatpush3.msra.mxu0 %v866_v24  ;;  %420 = vst.msk [vmem:[#allocation2 + $0x280] sm:$0xff] %vm338_vm1, %v274_v40  ;;  %422 = vst.msk [vmem:[#allocation2 + $0x290] sm:$0xff] %vm338_vm1, %v276_v41  ;;  %v1056_v57 = vld [vmem:[%s8873_s1 + $0x1b8] sm:$0xff]  ;;  %v527_v58 = vld [vmem:[#allocation2 + $0x1d0] sm:$0xff] }
  0x6c   :  { %5414 = vmatpush3.msra.mxu1 %v1061_v25  ;;  %5361 = vmatprep.subr.mxu0 %v865_v26  ;;  %353 = vst.msk [vmem:[#allocation2 + $0x68] sm:$0x1] %vm340_vm0, %v207_v44  ;;  %355 = vst.msk [vmem:[#allocation2 + $0x78] sm:$0x1] %vm340_vm0, %v209_v47  ;;  %v494_v59 = vld [vmem:[#allocation2 + $0xb0] sm:$0xff]  ;;  %v286_v61 = vld [vmem:[%s8872_s0 + $0x2e0] sm:$0xff] }
  0x6d   :  { %5415 = vmatprep.subr.mxu1 %v1060_v27  ;;  %5280 = vmatprep.mubr.f32.mxu0 %v523_v28  ;;  %424 = vst.msk [vmem:[#allocation2 + $0x2a0] sm:$0xff] %vm338_vm1, %v278_v48  ;;  %426 = vst.msk [vmem:[#allocation2 + $0x2b0] sm:$0xff] %vm338_vm1, %v280_v51  ;;  %v284_v60 = vld [vmem:[%s8872_s0 + $0x2d0] sm:$0xff]  ;;  %v528_v62 = vld [vmem:[#allocation2 + $0x1e0] sm:$0xff] }
  0x6e   :  { %5336 = vmatprep.mubr.f32.mxu1 %v490_v31  ;;  %5362 = vmatpush3.msra.mxu0 %v865_v26  ;;  %359 = vst.msk [vmem:[#allocation2 + $0x98] sm:$0x1] %vm340_vm0, %v213_v54  ;;  %361 = vst.msk [vmem:[#allocation2 + $0xa8] sm:$0x1] %vm340_vm0, %v215_v55  ;;  %v495_v63 = vld [vmem:[#allocation2 + $0xc0] sm:$0xff]  ;;  %v860_v2 = vld [vmem:[%s8873_s1 + $0x128] sm:$0xff] }
  0x6f   :  { %5416 = vmatpush3.msra.mxu1 %v1060_v27  ;;  %5281 = vmatmul.mubr.f32.gmra.mxu0 %v524_v35  ;;  %430 = vst.msk [vmem:[#allocation2 + $0x2d0] sm:$0xff] %vm338_vm1, %v284_v60  ;;  %432 = vst.msk [vmem:[#allocation2 + $0x2e0] sm:$0xff] %vm338_vm1, %v286_v61  ;;  %v217_v0 = vld [vmem:[%s8872_s0 + $0xb8] sm:$0x1]  ;;  %v219_v1 = vld [vmem:[%s8872_s0 + $0xc8] sm:$0x1] }
  0x70   :  { %5337 = vmatmul.mubr.f32.gmra.mxu1 %v491_v36  ;;  %5363 = vmatprep.subr.mxu0 %v864_v38  ;;  %v1055_v3 = vld [vmem:[%s8873_s1 + $0x1b0] sm:$0xff]  ;;  %363 = vst.msk [vmem:[#allocation2 + $0xb8] sm:$0x1] %vm340_vm0, %v217_v0  ;;  %365 = vst.msk [vmem:[#allocation2 + $0xc8] sm:$0x1] %vm340_vm0, %v219_v1  ;;  %v290_v5 = vld [vmem:[%s8872_s0 + $0x300] sm:$0xff] }
  0x71   :  { %5417 = vmatprep.subr.mxu1 %v1059_v39  ;;  %5364 = vmatpush3.msra.mxu0 %v864_v38  ;;  %v288_v4 = vld [vmem:[%s8872_s0 + $0x2f0] sm:$0xff]  ;;  %v859_v6 = vld [vmem:[%s8873_s1 + $0x120] sm:$0xff]  ;;  %v1054_v7 = vld [vmem:[%s8873_s1 + $0x1a8] sm:$0xff]  ;;  %436 = vst.msk [vmem:[#allocation2 + $0x300] sm:$0xff] %vm338_vm1, %v290_v5 }
  0x72   :  { %5418 = vmatpush3.msra.mxu1 %v1059_v39  ;;  %5365 = vmatprep.subr.mxu0 %v863_v42  ;;  %434 = vst.msk [vmem:[#allocation2 + $0x2f0] sm:$0xff] %vm338_vm1, %v288_v4  ;;  %v221_v8 = vld [vmem:[%s8872_s0 + $0xd8] sm:$0x1]  ;;  %v529_v9 = vld [vmem:[#allocation2 + $0x1f0] sm:$0xff]  ;;  %v223_v11 = vld [vmem:[%s8872_s0 + $0xe8] sm:$0x1] }
  0x73   :  { %5419 = vmatprep.subr.mxu1 %v1058_v43  ;;  %5283 = vmatprep.mubr.f32.mxu0 %v525_v45  ;;  %v496_v10 = vld [vmem:[#allocation2 + $0xd0] sm:$0xff]  ;;  %367 = vst.msk [vmem:[#allocation2 + $0xd8] sm:$0x1] %vm340_vm0, %v221_v8  ;;  %369 = vst.msk [vmem:[#allocation2 + $0xe8] sm:$0x1] %vm340_vm0, %v223_v11  ;;  %v530_v13 = vld [vmem:[#allocation2 + $0x200] sm:$0xff] }
  0x74   :  { %5339 = vmatprep.mubr.f32.mxu1 %v492_v46  ;;  %5366 = vmatpush3.msra.mxu0 %v863_v42  ;;  %v292_v12 = vld [vmem:[%s8872_s0 + $0x310] sm:$0xff]  ;;  %v497_v14 = vld [vmem:[#allocation2 + $0xe0] sm:$0xff]  ;;  %v858_v16 = vld [vmem:[%s8873_s1 + $0x118] sm:$0xff] }
  0x75   :  { %5420 = vmatpush3.msra.mxu1 %v1058_v43  ;;  %5284 = vmatmul.mubr.f32.gmra.mxu0 %v526_v49  ;;  %438 = vst.msk [vmem:[#allocation2 + $0x310] sm:$0xff] %vm338_vm1, %v292_v12  ;;  %v294_v15 = vld [vmem:[%s8872_s0 + $0x320] sm:$0xff]  ;;  %v225_v18 = vld [vmem:[%s8872_s0 + $0xf8] sm:$0x1]  ;;  %v227_v19 = vld [vmem:[%s8872_s0 + $0x108] sm:$0x1] }
  0x76   :  { %5340 = vmatmul.mubr.f32.gmra.mxu1 %v493_v50  ;;  %5367 = vmatprep.subr.mxu0 %v862_v52  ;;  %v1053_v17 = vld [vmem:[%s8873_s1 + $0x1a0] sm:$0xff]  ;;  %440 = vst.msk [vmem:[#allocation2 + $0x320] sm:$0xff] %vm338_vm1, %v294_v15  ;;  %v857_v20 = vld [vmem:[%s8873_s1 + $0x110] sm:$0xff]  ;;  %v1052_v21 = vld [vmem:[%s8873_s1 + $0x198] sm:$0xff] }
  0x77   :  { %5421 = vmatprep.subr.mxu1 %v1057_v53  ;;  %5368 = vmatpush3.msra.mxu0 %v862_v52  ;;  %371 = vst.msk [vmem:[#allocation2 + $0xf8] sm:$0x1] %vm340_vm0, %v225_v18  ;;  %373 = vst.msk [vmem:[#allocation2 + $0x108] sm:$0x1] %vm340_vm0, %v227_v19  ;;  %v296_v22 = vld [vmem:[%s8872_s0 + $0x330] sm:$0xff]  ;;  %v298_v25 = vld [vmem:[%s8872_s0 + $0x340] sm:$0xff] }
  0x78   :  { %5422 = vmatpush3.msra.mxu1 %v1057_v53  ;;  %5369 = vmatprep.subr.mxu0 %v861_v56  ;;  %v531_v23 = vld [vmem:[#allocation2 + $0x210] sm:$0xff]  ;;  %442 = vst.msk [vmem:[#allocation2 + $0x330] sm:$0xff] %vm338_vm1, %v296_v22  ;;  %v532_v26 = vld [vmem:[#allocation2 + $0x220] sm:$0xff]  ;;  %444 = vst.msk [vmem:[#allocation2 + $0x340] sm:$0xff] %vm338_vm1, %v298_v25 }
  0x79   :  { %5423 = vmatprep.subr.mxu1 %v1056_v57  ;;  %5286 = vmatprep.mubr.f32.mxu0 %v527_v58  ;;  %v498_v24 = vld [vmem:[#allocation2 + $0xf0] sm:$0xff]  ;;  %v499_v27 = vld [vmem:[#allocation2 + $0x100] sm:$0xff]  ;;  %v856_v30 = vld [vmem:[%s8873_s1 + $0x108] sm:$0xff] }
  0x7a   :  { %5342 = vmatprep.mubr.f32.mxu1 %v494_v59  ;;  %5370 = vmatpush3.msra.mxu0 %v861_v56  ;;  %v302_v28 = vld [vmem:[%s8872_s0 + $0x360] sm:$0xff]  ;;  %v304_v29 = vld [vmem:[%s8872_s0 + $0x370] sm:$0xff]  ;;  %v267_v32 = vld [vmem:[%s8872_s0 + $0x248] sm:$0x1] }
  0x7b   :  { %5424 = vmatpush3.msra.mxu1 %v1056_v57  ;;  %5287 = vmatmul.mubr.f32.gmra.mxu0 %v528_v62  ;;  %v1051_v31 = vld [vmem:[%s8873_s1 + $0x190] sm:$0xff]  ;;  %448 = vst.msk [vmem:[#allocation2 + $0x360] sm:$0xff] %vm338_vm1, %v302_v28  ;;  %450 = vst.msk [vmem:[#allocation2 + $0x370] sm:$0xff] %vm338_vm1, %v304_v29  ;;  %v269_v33 = vld [vmem:[%s8872_s0 + $0x258] sm:$0x1] }
  0x7c   :  { %5343 = vmatmul.mubr.f32.gmra.mxu1 %v495_v63  ;;  %5371 = vmatprep.subr.mxu0 %v860_v2  ;;  %v855_v34 = vld [vmem:[%s8873_s1 + $0x100] sm:$0xff]  ;;  %v1050_v35 = vld [vmem:[%s8873_s1 + $0x188] sm:$0xff]  ;;  %413 = vst.msk [vmem:[#allocation2 + $0x248] sm:$0x1] %vm340_vm0, %v267_v32  ;;  %415 = vst.msk [vmem:[#allocation2 + $0x258] sm:$0x1] %vm340_vm0, %v269_v33 }
  0x7d   :  { %5425 = vmatprep.subr.mxu1 %v1055_v3  ;;  %5372 = vmatpush3.msra.mxu0 %v860_v2  ;;  %v839_v36 = vld [vmem:[#allocation2 + $0x1] sm:$0xff]  ;;  %v308_v38 = vld [vmem:[%s8872_s0 + $0x390] sm:$0xff]  ;;  %v1258_v41 = vld [vmem:[%s8873_s1 + $0x278] sm:$0xff] }
  0x7e   :  { %5426 = vmatpush3.msra.mxu1 %v1055_v3  ;;  %5373 = vmatprep.subr.mxu0 %v859_v6  ;;  %v306_v37 = vld [vmem:[%s8872_s0 + $0x380] sm:$0xff]  ;;  %v840_v39 = vld [vmem:[#allocation2 + $0x11] sm:$0xff]  ;;  %454 = vst.msk [vmem:[#allocation2 + $0x390] sm:$0xff] %vm338_vm1, %v308_v38  ;;  %v271_v42 = vld [vmem:[%s8872_s0 + $0x268] sm:$0x1] }
  0x7f   :  { %5427 = vmatprep.subr.mxu1 %v1054_v7  ;;  %5289 = vmatprep.mubr.f32.mxu0 %v529_v9  ;;  %v1049_v40 = vld [vmem:[%s8873_s1 + $0x180] sm:$0xff]  ;;  %452 = vst.msk [vmem:[#allocation2 + $0x380] sm:$0xff] %vm338_vm1, %v306_v37  ;;  %v273_v43 = vld [vmem:[%s8872_s0 + $0x278] sm:$0x1]  ;;  %v1034_v46 = vld [vmem:[#allocation2 + $0x250] sm:$0xff] }
  0x80   :  { %5345 = vmatprep.mubr.f32.mxu1 %v496_v10  ;;  %5374 = vmatpush3.msra.mxu0 %v859_v6  ;;  %v1033_v44 = vld [vmem:[#allocation2 + $0x240] sm:$0xff]  ;;  %417 = vst.msk [vmem:[#allocation2 + $0x268] sm:$0x1] %vm340_vm0, %v271_v42  ;;  %419 = vst.msk [vmem:[#allocation2 + $0x278] sm:$0x1] %vm340_vm0, %v273_v43  ;;  %v312_v47 = vld [vmem:[%s8872_s0 + $0x3b0] sm:$0xff] }
  0x81   :  { %5428 = vmatpush3.msra.mxu1 %v1054_v7  ;;  %5290 = vmatmul.mubr.f32.gmra.mxu0 %v530_v13  ;;  %v310_v45 = vld [vmem:[%s8872_s0 + $0x3a0] sm:$0xff]  ;;  %v1257_v48 = vld [vmem:[%s8873_s1 + $0x270] sm:$0xff]  ;;  %v1451_v49 = vld [vmem:[%s8873_s1 + $0x2f8] sm:$0xff]  ;;  %458 = vst.msk [vmem:[#allocation2 + $0x3b0] sm:$0xff] %vm338_vm1, %v312_v47 }
  0x82   :  { %5346 = vmatmul.mubr.f32.gmra.mxu1 %v497_v14  ;;  %5375 = vmatprep.subr.mxu0 %v858_v16  ;;  %456 = vst.msk [vmem:[#allocation2 + $0x3a0] sm:$0xff] %vm338_vm1, %v310_v45  ;;  %v275_v50 = vld [vmem:[%s8872_s0 + $0x288] sm:$0x1]  ;;  %v277_v52 = vld [vmem:[%s8872_s0 + $0x298] sm:$0x1]  ;;  %v314_v54 = vld [vmem:[%s8872_s0 + $0x3c0] sm:$0xff] }
  0x83   :  { %5429 = vmatprep.subr.mxu1 %v1053_v17  ;;  %5376 = vmatpush3.msra.mxu0 %v858_v16  ;;  %v841_v51 = vld [vmem:[#allocation2 + $0x21] sm:$0xff]  ;;  %421 = vst.msk [vmem:[#allocation2 + $0x288] sm:$0x1] %vm340_vm0, %v275_v50  ;;  %v842_v53 = vld [vmem:[#allocation2 + $0x31] sm:$0xff]  ;;  %423 = vst.msk [vmem:[#allocation2 + $0x298] sm:$0x1] %vm340_vm0, %v277_v52 }
  0x84   :  { %5430 = vmatpush3.msra.mxu1 %v1053_v17  ;;  %5377 = vmatprep.subr.mxu0 %v857_v20  ;;  %v1256_v55 = vld [vmem:[%s8873_s1 + $0x268] sm:$0xff]  ;;  %v1450_v56 = vld [vmem:[%s8873_s1 + $0x2f0] sm:$0xff]  ;;  %460 = vst.msk [vmem:[#allocation2 + $0x3c0] sm:$0xff] %vm338_vm1, %v314_v54  ;;  %v1035_v58 = vld [vmem:[#allocation2 + $0x260] sm:$0xff] }
  0x85   :  { %5431 = vmatprep.subr.mxu1 %v1052_v21  ;;  %5292 = vmatprep.mubr.f32.mxu0 %v531_v23  ;;  %v316_v57 = vld [vmem:[%s8872_s0 + $0x3d0] sm:$0xff]  ;;  %v279_v59 = vld [vmem:[%s8872_s0 + $0x2a8] sm:$0x1]  ;;  %v1255_v60 = vld [vmem:[%s8873_s1 + $0x260] sm:$0xff] }
  0x86   :  { %5348 = vmatprep.mubr.f32.mxu1 %v498_v24  ;;  %5378 = vmatpush3.msra.mxu0 %v857_v20  ;;  %462 = vst.msk [vmem:[#allocation2 + $0x3d0] sm:$0xff] %vm338_vm1, %v316_v57  ;;  %v281_v61 = vld [vmem:[%s8872_s0 + $0x2b8] sm:$0x1]  ;;  %v1036_v62 = vld [vmem:[#allocation2 + $0x270] sm:$0xff]  ;;  %v1449_v63 = vld [vmem:[%s8873_s1 + $0x2e8] sm:$0xff] }
  0x87   :  { %5432 = vmatpush3.msra.mxu1 %v1052_v21  ;;  %5293 = vmatmul.mubr.f32.gmra.mxu0 %v532_v26  ;;  %425 = vst.msk [vmem:[#allocation2 + $0x2a8] sm:$0x1] %vm340_vm0, %v279_v59  ;;  %427 = vst.msk [vmem:[#allocation2 + $0x2b8] sm:$0x1] %vm340_vm0, %v281_v61  ;;  %v843_v0 = vld [vmem:[#allocation2 + $0x41] sm:$0xff]  ;;  %v320_v1 = vld [vmem:[%s8872_s0 + $0x3f0] sm:$0xff] }
  0x88   :  { %5349 = vmatmul.mubr.f32.gmra.mxu1 %v499_v27  ;;  %5379 = vmatprep.subr.mxu0 %v856_v30  ;;  %v322_v2 = vld [vmem:[%s8872_s0 + $0x400] sm:$0xff]  ;;  %v844_v3 = vld [vmem:[#allocation2 + $0x51] sm:$0xff]  ;;  %466 = vst.msk [vmem:[#allocation2 + $0x3f0] sm:$0xff] %vm338_vm1, %v320_v1  ;;  %v287_v7 = vld [vmem:[%s8872_s0 + $0x2e8] sm:$0x1] }
  0x89   :  { %5433 = vmatprep.subr.mxu1 %v1051_v31  ;;  %5380 = vmatpush3.msra.mxu0 %v856_v30  ;;  %v1254_v4 = vld [vmem:[%s8873_s1 + $0x258] sm:$0xff]  ;;  %468 = vst.msk [vmem:[#allocation2 + $0x400] sm:$0xff] %vm338_vm1, %v322_v2  ;;  %v1448_v5 = vld [vmem:[%s8873_s1 + $0x2e0] sm:$0xff]  ;;  %v1253_v9 = vld [vmem:[%s8873_s1 + $0x250] sm:$0xff] }
  0x8a   :  { %5434 = vmatpush3.msra.mxu1 %v1051_v31  ;;  %5381 = vmatprep.subr.mxu0 %v855_v34  ;;  %v285_v6 = vld [vmem:[%s8872_s0 + $0x2d8] sm:$0x1]  ;;  %v1037_v8 = vld [vmem:[#allocation2 + $0x280] sm:$0xff]  ;;  %433 = vst.msk [vmem:[#allocation2 + $0x2e8] sm:$0x1] %vm340_vm0, %v287_v7  ;;  %v324_v10 = vld [vmem:[%s8872_s0 + $0x410] sm:$0xff] }
  0x8b   :  { %5435 = vmatprep.subr.mxu1 %v1050_v35  ;;  %5382 = vmatpush3.msra.mxu0 %v855_v34  ;;  %431 = vst.msk [vmem:[#allocation2 + $0x2d8] sm:$0x1] %vm340_vm0, %v285_v6  ;;  %v326_v11 = vld [vmem:[%s8872_s0 + $0x420] sm:$0xff]  ;;  %v1038_v12 = vld [vmem:[#allocation2 + $0x290] sm:$0xff]  ;;  %v1447_v13 = vld [vmem:[%s8873_s1 + $0x2d8] sm:$0xff] }
  0x8c   :  { %5383 = vmatprep.mubr.f32.mxu0 %v839_v36  ;;  %5436 = vmatpush3.msra.mxu1 %v1050_v35  ;;  %470 = vst.msk [vmem:[#allocation2 + $0x410] sm:$0xff] %vm338_vm1, %v324_v10  ;;  %472 = vst.msk [vmem:[#allocation2 + $0x420] sm:$0xff] %vm338_vm1, %v326_v11  ;;  %v7185_v14 = vld [vmem:[#allocation2 + $0x61] sm:$0xff]  ;;  %v289_v15 = vld [vmem:[%s8872_s0 + $0x2f8] sm:$0x1] }
  0x8d   :  { %5384 = vmatmul.mubr.f32.vlgmr.msra.gmra.mxu0 %v840_v39  ;;  %5437 = vmatprep.subr.mxu1 %v1049_v40  ;;  %v291_v16 = vld [vmem:[%s8872_s0 + $0x308] sm:$0x1]  ;;  %v7193_v17 = vld [vmem:[#allocation2 + $0x71] sm:$0xff]  ;;  %435 = vst.msk [vmem:[#allocation2 + $0x2f8] sm:$0x1] %vm340_vm0, %v289_v15  ;;  %v330_v21 = vld [vmem:[%s8872_s0 + $0x440] sm:$0xff] }
  0x8e   :  { %5463 = vmatprep.subr.mxu0 %v1258_v41  ;;  %5438 = vmatpush3.msra.mxu1 %v1049_v40  ;;  %437 = vst.msk [vmem:[#allocation2 + $0x308] sm:$0x1] %vm340_vm0, %v291_v16  ;;  %v328_v18 = vld [vmem:[%s8872_s0 + $0x430] sm:$0xff]  ;;  %v1252_v19 = vld [vmem:[%s8873_s1 + $0x248] sm:$0xff]  ;;  %v1039_v22 = vld [vmem:[#allocation2 + $0x2a0] sm:$0xff] }
  0x8f   :  { %5439 = vmatprep.mubr.f32.mxu1 %v1033_v44  ;;  %5464 = vmatpush3.msra.mxu0 %v1258_v41  ;;  %v1446_v20 = vld [vmem:[%s8873_s1 + $0x2d0] sm:$0xff]  ;;  %474 = vst.msk [vmem:[#allocation2 + $0x430] sm:$0xff] %vm338_vm1, %v328_v18  ;;  %476 = vst.msk [vmem:[#allocation2 + $0x440] sm:$0xff] %vm338_vm1, %v330_v21  ;;  %v293_v23 = vld [vmem:[%s8872_s0 + $0x318] sm:$0x1] }
  0x90   :  { %5440 = vmatmul.mubr.f32.vlgmr.msra.gmra.mxu1 %v1034_v46  ;;  %5465 = vmatprep.subr.mxu0 %v1257_v48  ;;  %v1251_v24 = vld [vmem:[%s8873_s1 + $0x240] sm:$0xff]  ;;  %439 = vst.msk [vmem:[#allocation2 + $0x318] sm:$0x1] %vm340_vm0, %v293_v23  ;;  %v295_v25 = vld [vmem:[%s8872_s0 + $0x328] sm:$0x1]  ;;  %v1040_v26 = vld [vmem:[#allocation2 + $0x2b0] sm:$0xff] }
  0x91   :  { %5519 = vmatprep.subr.mxu1 %v1451_v49  ;;  %5386 = vmatprep.mubr.f32.mxu0 %v841_v51  ;;  %v1445_v27 = vld [vmem:[%s8873_s1 + $0x2c8] sm:$0xff]  ;;  %441 = vst.msk [vmem:[#allocation2 + $0x328] sm:$0x1] %vm340_vm0, %v295_v25  ;;  %v332_v28 = vld [vmem:[%s8872_s0 + $0x450] sm:$0xff]  ;;  %v334_v30 = vld [vmem:[%s8872_s0 + $0x460] sm:$0xff] }
  0x92   :  { %5466 = vmatpush3.msra.mxu0 %v1257_v48  ;;  %5520 = vmatpush3.msra.mxu1 %v1451_v49  ;;  %v847_v29 = vld [vmem:[#allocation2 + $0x91] sm:$0xff]  ;;  %478 = vst.msk [vmem:[#allocation2 + $0x450] sm:$0xff] %vm338_vm1, %v332_v28  ;;  %v7234_v31 = vld [vmem:[#allocation2 + $0xa1] sm:$0xff]  ;;  %480 = vst.msk [vmem:[#allocation2 + $0x460] sm:$0xff] %vm338_vm1, %v334_v30 }
  0x93   :  { %5387 = vmatmul.mubr.f32.gmra.mxu0 %v842_v53  ;;  %5467 = vmatprep.subr.mxu0 %v1256_v55  ;;  %v297_v32 = vld [vmem:[%s8872_s0 + $0x338] sm:$0x1]  ;;  %v1444_v34 = vld [vmem:[%s8873_s1 + $0x2c0] sm:$0xff]  ;;  %v299_v35 = vld [vmem:[%s8872_s0 + $0x348] sm:$0x1] }
  0x94   :  { %5521 = vmatprep.subr.mxu1 %v1450_v56  ;;  %5442 = vmatprep.mubr.f32.mxu1 %v1035_v58  ;;  %v1250_v33 = vld [vmem:[%s8873_s1 + $0x238] sm:$0xff]  ;;  %443 = vst.msk [vmem:[#allocation2 + $0x338] sm:$0x1] %vm340_vm0, %v297_v32  ;;  %v1041_v36 = vld [vmem:[#allocation2 + $0x2d0] sm:$0xff]  ;;  %445 = vst.msk [vmem:[#allocation2 + $0x348] sm:$0x1] %vm340_vm0, %v299_v35 }
  0x95   :  { %5468 = vmatpush3.msra.mxu0 %v1256_v55  ;;  %5522 = vmatpush3.msra.mxu1 %v1450_v56  ;;  %v1249_v37 = vld [vmem:[%s8873_s1 + $0x230] sm:$0xff]  ;;  %v1042_v38 = vld [vmem:[#allocation2 + $0x2e0] sm:$0xff]  ;;  %v1443_v39 = vld [vmem:[%s8873_s1 + $0x2b8] sm:$0xff] }
  0x96   :  { %5469 = vmatprep.subr.mxu0 %v1255_v60  ;;  %5443 = vmatmul.mubr.f32.gmra.mxu1 %v1036_v62  ;;  %v7258_v40 = vld [vmem:[#allocation2 + $0xb1] sm:$0xff]  ;;  %v7260_v41 = vld [vmem:[#allocation2 + $0xc1] sm:$0xff] }
  0x97   :  { %5523 = vmatprep.subr.mxu1 %v1449_v63  ;;  %5389 = vmatprep.mubr.f32.mxu0 %v843_v0  ;;  %v1248_v42 = vld [vmem:[%s8873_s1 + $0x228] sm:$0xff]  ;;  %v1442_v43 = vld [vmem:[%s8873_s1 + $0x2b0] sm:$0xff]  ;;  %v1247_v45 = vld [vmem:[%s8873_s1 + $0x220] sm:$0xff] }
  0x98   :  { %5470 = vmatpush3.msra.mxu0 %v1255_v60  ;;  %5524 = vmatpush3.msra.mxu1 %v1449_v63  ;;  %v1043_v44 = vld [vmem:[#allocation2 + $0x2f0] sm:$0xff]  ;;  %v1044_v46 = vld [vmem:[#allocation2 + $0x300] sm:$0xff]  ;;  %v1441_v47 = vld [vmem:[%s8873_s1 + $0x2a8] sm:$0xff] }
  0x99   :  { %5390 = vmatmul.mubr.f32.gmra.mxu0 %v844_v3  ;;  %5471 = vmatprep.subr.mxu0 %v1254_v4  ;;  %v7276_v48 = vld [vmem:[#allocation2 + $0xd1] sm:$0xff]  ;;  %v7278_v49 = vld [vmem:[#allocation2 + $0xe1] sm:$0xff] }
  0x9a   :  { %5525 = vmatprep.subr.mxu1 %v1448_v5  ;;  %5445 = vmatprep.mubr.f32.mxu1 %v1037_v8  ;;  %v210_v50 = vld [vmem:[%s8872_s0 + $0x80] sm:$0xff]  ;;  %v1246_v51 = vld [vmem:[%s8873_s1 + $0x218] sm:$0xff]  ;;  %v1045_v54 = vld [vmem:[#allocation2 + $0x310] sm:$0xff] }
  0x9b   :  { %5472 = vmatpush3.msra.mxu0 %v1254_v4  ;;  %5526 = vmatpush3.msra.mxu1 %v1448_v5  ;;  %v1440_v52 = vld [vmem:[%s8873_s1 + $0x2a0] sm:$0xff]  ;;  %356 = vst.msk [vmem:[#allocation2 + $0x80] sm:$0xff] %vm338_vm1, %v210_v50  ;;  %v1245_v55 = vld [vmem:[%s8873_s1 + $0x210] sm:$0xff]  ;;  %v1439_v57 = vld [vmem:[%s8873_s1 + $0x298] sm:$0xff] }
  0x9c   :  { %5473 = vmatprep.subr.mxu0 %v1253_v9  ;;  %5446 = vmatmul.mubr.f32.gmra.mxu1 %v1038_v12  ;;  %v246_v53 = vld [vmem:[%s8872_s0 + $0x1a0] sm:$0xff]  ;;  %v7302_v58 = vld [vmem:[#allocation2 + $0xf1] sm:$0xff]  ;;  %v1244_v60 = vld [vmem:[%s8873_s1 + $0x208] sm:$0xff] }
  0x9d   :  { %5527 = vmatprep.subr.mxu1 %v1447_v13  ;;  %5392 = vmatprep.mubr.f32.mxu0 %v7185_v14  ;;  %392 = vst.msk [vmem:[#allocation2 + $0x1a0] sm:$0xff] %vm338_vm1, %v246_v53  ;;  %v1046_v56 = vld [vmem:[#allocation2 + $0x320] sm:$0xff]  ;;  %v1438_v61 = vld [vmem:[%s8873_s1 + $0x290] sm:$0xff]  ;;  %v1437_v3 = vld [vmem:[%s8873_s1 + $0x288] sm:$0xff] }
  0x9e   :  { %5474 = vmatpush3.msra.mxu0 %v1253_v9  ;;  %5528 = vmatpush3.msra.mxu1 %v1447_v13  ;;  %v7304_v59 = vld [vmem:[#allocation2 + $0x101] sm:$0xff]  ;;  %v1047_v62 = vld [vmem:[#allocation2 + $0x330] sm:$0xff]  ;;  %v229_v7 = vld [vmem:[%s8872_s0 + $0x118] sm:$0x1] }
  0x9f   :  { %5393 = vmatmul.mubr.f32.gmra.mxu0 %v7193_v17  ;;  %5475 = vmatprep.subr.mxu0 %v1252_v19  ;;  %v228_v63 = vld [vmem:[%s8872_s0 + $0x110] sm:$0xff]  ;;  %v1243_v0 = vld [vmem:[%s8873_s1 + $0x200] sm:$0xff]  ;;  %v211_v6 = vld [vmem:[%s8872_s0 + $0x88] sm:$0x1]  ;;  %375 = vst.msk [vmem:[#allocation2 + $0x118] sm:$0x1] %vm340_vm0, %v229_v7 }
  0xa0   :  { %5529 = vmatprep.subr.mxu1 %v1446_v20  ;;  %5448 = vmatprep.mubr.f32.mxu1 %v1039_v22  ;;  %374 = vst.msk [vmem:[#allocation2 + $0x110] sm:$0xff] %vm338_vm1, %v228_v63  ;;  %v264_v1 = vld [vmem:[%s8872_s0 + $0x230] sm:$0xff]  ;;  %v1048_v2 = vld [vmem:[#allocation2 + $0x340] sm:$0xff]  ;;  %v1645_v9 = vld [vmem:[%s8873_s1 + $0x378] sm:$0xff] }
  0xa1   :  { %5476 = vmatpush3.msra.mxu0 %v1252_v19  ;;  %5530 = vmatpush3.msra.mxu1 %v1446_v20  ;;  %410 = vst.msk [vmem:[#allocation2 + $0x230] sm:$0xff] %vm338_vm1, %v264_v1  ;;  %v1227_v4 = vld [vmem:[#allocation2 + $0x360] sm:$0xff]  ;;  %v1228_v5 = vld [vmem:[#allocation2 + $0x370] sm:$0xff]  ;;  %v1839_v13 = vld [vmem:[%s8873_s1 + $0x3f8] sm:$0xff] }
  0xa2   :  { %5477 = vmatprep.subr.mxu0 %v1251_v24  ;;  %5449 = vmatmul.mubr.f32.gmra.mxu1 %v1040_v26  ;;  %v1436_v8 = vld [vmem:[%s8873_s1 + $0x280] sm:$0xff]  ;;  %357 = vst.msk [vmem:[#allocation2 + $0x88] sm:$0x1] %vm340_vm0, %v211_v6  ;;  %v1421_v11 = vld [vmem:[#allocation2 + $0x251] sm:$0xff]  ;;  %v1643_v18 = vld [vmem:[%s8873_s1 + $0x368] sm:$0xff] }
  0xa3   :  { %5531 = vmatprep.subr.mxu1 %v1445_v27  ;;  %5395 = vmatprep.mubr.f32.mxu0 %v847_v29  ;;  %v1420_v10 = vld [vmem:[#allocation2 + $0x241] sm:$0xff]  ;;  %v1644_v12 = vld [vmem:[%s8873_s1 + $0x370] sm:$0xff]  ;;  %v1641_v26 = vld [vmem:[%s8873_s1 + $0x358] sm:$0xff] }
  0xa4   :  { %5478 = vmatpush3.msra.mxu0 %v1251_v24  ;;  %5532 = vmatpush3.msra.mxu1 %v1445_v27  ;;  %v1229_v15 = vld [vmem:[#allocation2 + $0x380] sm:$0xff]  ;;  %v1230_v16 = vld [vmem:[#allocation2 + $0x390] sm:$0xff]  ;;  %v1837_v23 = vld [vmem:[%s8873_s1 + $0x3e8] sm:$0xff] }
  0xa5   :  { %5396 = vmatmul.mubr.f32.gmra.mxu0 %v7234_v31  ;;  %5479 = vmatprep.subr.mxu0 %v1250_v33  ;;  %v1838_v19 = vld [vmem:[%s8873_s1 + $0x3f0] sm:$0xff]  ;;  %v1422_v20 = vld [vmem:[#allocation2 + $0x261] sm:$0xff]  ;;  %v1835_v32 = vld [vmem:[%s8873_s1 + $0x3d8] sm:$0xff] }
  0xa6   :  { %5533 = vmatprep.subr.mxu1 %v1444_v34  ;;  %5451 = vmatprep.mubr.f32.mxu1 %v1041_v36  ;;  %v1642_v21 = vld [vmem:[%s8873_s1 + $0x360] sm:$0xff]  ;;  %v1423_v22 = vld [vmem:[#allocation2 + $0x271] sm:$0xff]  ;;  %v1639_v35 = vld [vmem:[%s8873_s1 + $0x348] sm:$0xff] }
  0xa7   :  { %5480 = vmatpush3.msra.mxu0 %v1250_v33  ;;  %5534 = vmatpush3.msra.mxu1 %v1444_v34  ;;  %v1231_v24 = vld [vmem:[#allocation2 + $0x3a0] sm:$0xff]  ;;  %v1232_v25 = vld [vmem:[#allocation2 + $0x3b0] sm:$0xff]  ;;  %v1633_v1 = vld [vmem:[%s8873_s1 + $0x318] sm:$0xff] }
  0xa8   :  { %5481 = vmatprep.subr.mxu0 %v1249_v37  ;;  %5452 = vmatmul.mubr.f32.gmra.mxu1 %v1042_v38  ;;  %v1836_v27 = vld [vmem:[%s8873_s1 + $0x3e0] sm:$0xff]  ;;  %v1640_v29 = vld [vmem:[%s8873_s1 + $0x350] sm:$0xff]  ;;  %v1827_v6 = vld [vmem:[%s8873_s1 + $0x398] sm:$0xff] }
  0xa9   :  { %5535 = vmatprep.subr.mxu1 %v1443_v39  ;;  %5398 = vmatprep.mubr.f32.mxu0 %v7258_v40  ;;  %v1424_v28 = vld [vmem:[#allocation2 + $0x281] sm:$0xff]  ;;  %v1425_v30 = vld [vmem:[#allocation2 + $0x291] sm:$0xff] }
  0xaa   :  { %5482 = vmatpush3.msra.mxu0 %v1249_v37  ;;  %5536 = vmatpush3.msra.mxu1 %v1443_v39  ;;  %v1233_v33 = vld [vmem:[#allocation2 + $0x3c0] sm:$0xff]  ;;  %v1234_v34 = vld [vmem:[#allocation2 + $0x3d0] sm:$0xff] }
  0xab   :  { %5399 = vmatmul.mubr.f32.gmra.mxu0 %v7260_v41  ;;  %5483 = vmatprep.subr.mxu0 %v1248_v42  ;;  %v1834_v36 = vld [vmem:[%s8873_s1 + $0x3d0] sm:$0xff]  ;;  %v1426_v37 = vld [vmem:[#allocation2 + $0x2a1] sm:$0xff] }
  0xac   :  { %5537 = vmatprep.subr.mxu1 %v1442_v43  ;;  %5454 = vmatprep.mubr.f32.mxu1 %v1043_v44  ;;  %v1638_v38 = vld [vmem:[%s8873_s1 + $0x340] sm:$0xff]  ;;  %v1427_v39 = vld [vmem:[#allocation2 + $0x2b1] sm:$0xff] }
  0xad   :  { %5484 = vmatpush3.msra.mxu0 %v1248_v42  ;;  %5538 = vmatpush3.msra.mxu1 %v1442_v43  ;;  %v1833_v42 = vld [vmem:[%s8873_s1 + $0x3c8] sm:$0xff]  ;;  %v1235_v43 = vld [vmem:[#allocation2 + $0x3f0] sm:$0xff]  ;;  %v1236_v44 = vld [vmem:[#allocation2 + $0x400] sm:$0xff] }
  0xae   :  { %5485 = vmatprep.subr.mxu0 %v1247_v45  ;;  %5455 = vmatmul.mubr.f32.gmra.mxu1 %v1044_v46  ;;  %v1832_v46 = vld [vmem:[%s8873_s1 + $0x3c0] sm:$0xff]  ;;  %v1636_v50 = vld [vmem:[%s8873_s1 + $0x330] sm:$0xff] }
  0xaf   :  { %5539 = vmatprep.subr.mxu1 %v1441_v47  ;;  %5401 = vmatprep.mubr.f32.mxu0 %v7276_v48  ;;  %v1237_v53 = vld [vmem:[#allocation2 + $0x410] sm:$0xff] }
  0xb0   :  { %5486 = vmatpush3.msra.mxu0 %v1247_v45  ;;  %5540 = vmatpush3.msra.mxu1 %v1441_v47  ;;  %v1637_v45 = vld [vmem:[%s8873_s1 + $0x338] sm:$0xff]  ;;  %v1239_v63 = vld [vmem:[#allocation2 + $0x430] sm:$0xff] }
  0xb1   :  { %5402 = vmatmul.mubr.f32.gmra.mxu0 %v7278_v49  ;;  %5487 = vmatprep.subr.mxu0 %v1246_v51  ;;  %v1428_v47 = vld [vmem:[#allocation2 + $0x2d1] sm:$0xff] }
  0xb2   :  { %5541 = vmatprep.subr.mxu1 %v1440_v52  ;;  %5457 = vmatprep.mubr.f32.mxu1 %v1045_v54  ;;  %v1238_v54 = vld [vmem:[#allocation2 + $0x420] sm:$0xff]  ;;  %v1241_v7 = vld [vmem:[#allocation2 + $0x450] sm:$0xff] }
  0xb3   :  { %5488 = vmatpush3.msra.mxu0 %v1246_v51  ;;  %5542 = vmatpush3.msra.mxu1 %v1440_v52  ;;  %v1429_v51 = vld [vmem:[#allocation2 + $0x2e1] sm:$0xff]  ;;  %v1831_v52 = vld [vmem:[%s8873_s1 + $0x3b8] sm:$0xff] }
  0xb4   :  { %5489 = vmatprep.subr.mxu0 %v1245_v55  ;;  %5458 = vmatmul.mubr.f32.gmra.mxu1 %v1046_v56  ;;  %v1830_v56 = vld [vmem:[%s8873_s1 + $0x3b0] sm:$0xff] }
  0xb5   :  { %5543 = vmatprep.subr.mxu1 %v1439_v57  ;;  %5404 = vmatprep.mubr.f32.mxu0 %v7302_v58 }
  0xb6   :  { %5490 = vmatpush3.msra.mxu0 %v1245_v55  ;;  %5544 = vmatpush3.msra.mxu1 %v1439_v57  ;;  %v1635_v55 = vld [vmem:[%s8873_s1 + $0x328] sm:$0xff]  ;;  %v1430_v57 = vld [vmem:[#allocation2 + $0x2f1] sm:$0xff] }
  0xb7   :  { %5405 = vmatmul.mubr.f32.gmra.mxu0 %v7304_v59  ;;  %5491 = vmatprep.subr.mxu0 %v1244_v60 }
  0xb8   :  { %5545 = vmatprep.subr.mxu1 %v1438_v61  ;;  %5460 = vmatprep.mubr.f32.mxu1 %v1047_v62  ;;  %v1829_v62 = vld [vmem:[%s8873_s1 + $0x3a8] sm:$0xff] }
  0xb9   :  { %5492 = vmatpush3.msra.mxu0 %v1244_v60  ;;  %5546 = vmatpush3.msra.mxu1 %v1438_v61  ;;  %v1634_v60 = vld [vmem:[%s8873_s1 + $0x320] sm:$0xff] }
  0xba   :  { %5493 = vmatprep.subr.mxu0 %v1243_v0  ;;  %5461 = vmatmul.mubr.f32.gmra.mxu1 %v1048_v2  ;;  %v1431_v61 = vld [vmem:[#allocation2 + $0x301] sm:$0xff] }
  0xbb   :  { %5547 = vmatprep.subr.mxu1 %v1437_v3  ;;  %5494 = vmatpush3.msra.mxu0 %v1243_v0  ;;  %v1240_v0 = vld [vmem:[#allocation2 + $0x440] sm:$0xff] }
  0xbc   :  { %5495 = vmatprep.mubr.f32.mxu0 %v1227_v4  ;;  %5548 = vmatpush3.msra.mxu1 %v1437_v3  ;;  %v1828_v2 = vld [vmem:[%s8873_s1 + $0x3a0] sm:$0xff]  ;;  %v1432_v3 = vld [vmem:[#allocation2 + $0x311] sm:$0xff] }
  0xbd   :  { %5496 = vmatmul.mubr.f32.vlgmr.msra.gmra.mxu0 %v1228_v5  ;;  %5549 = vmatprep.subr.mxu1 %v1436_v8  ;;  %v1632_v4 = vld [vmem:[%s8873_s1 + $0x310] sm:$0xff]  ;;  %v1433_v5 = vld [vmem:[#allocation2 + $0x321] sm:$0xff] }
  0xbe   :  { %5575 = vmatprep.subr.mxu0 %v1645_v9  ;;  %5550 = vmatpush3.msra.mxu1 %v1436_v8  ;;  %v1242_v8 = vld [vmem:[#allocation2 + $0x460] sm:$0xff] }
  0xbf   :  { %5551 = vmatprep.mubr.f32.mxu1 %v1420_v10  ;;  %5576 = vmatpush3.msra.mxu0 %v1645_v9  ;;  %v1631_v9 = vld [vmem:[%s8873_s1 + $0x308] sm:$0xff]  ;;  %v1826_v10 = vld [vmem:[%s8873_s1 + $0x390] sm:$0xff] }
  0xc0   :  { %5552 = vmatmul.mubr.f32.vlgmr.msra.gmra.mxu1 %v1421_v11  ;;  %5577 = vmatprep.subr.mxu0 %v1644_v12  ;;  %v1434_v11 = vld [vmem:[#allocation2 + $0x331] sm:$0xff] }
  0xc1   :  { %5631 = vmatprep.subr.mxu1 %v1839_v13  ;;  %5498 = vmatprep.mubr.f32.mxu0 %v1229_v15  ;;  %v1825_v15 = vld [vmem:[%s8873_s1 + $0x388] sm:$0xff] }
  0xc2   :  { %5578 = vmatpush3.msra.mxu0 %v1644_v12  ;;  %5632 = vmatpush3.msra.mxu1 %v1839_v13  ;;  %v1630_v12 = vld [vmem:[%s8873_s1 + $0x300] sm:$0xff] }
  0xc3   :  { %5499 = vmatmul.mubr.f32.gmra.mxu0 %v1230_v16  ;;  %5579 = vmatprep.subr.mxu0 %v1643_v18  ;;  %v1435_v13 = vld [vmem:[#allocation2 + $0x341] sm:$0xff]  ;;  %v1614_v16 = vld [vmem:[#allocation2 + $0x10] sm:$0xff] }
  0xc4   :  { %5633 = vmatprep.subr.mxu1 %v1838_v19  ;;  %5554 = vmatprep.mubr.f32.mxu1 %v1422_v20  ;;  %v2032_v20 = vld [vmem:[%s8873_s1 + $0x478] sm:$0xff] }
  0xc5   :  { %5580 = vmatpush3.msra.mxu0 %v1643_v18  ;;  %5634 = vmatpush3.msra.mxu1 %v1838_v19  ;;  %v1615_v18 = vld [vmem:[#allocation2 + $0x20] sm:$0xff] }
  0xc6   :  { %5581 = vmatprep.subr.mxu0 %v1642_v21  ;;  %5555 = vmatmul.mubr.f32.gmra.mxu1 %v1423_v22  ;;  %v1824_v19 = vld [vmem:[%s8873_s1 + $0x380] sm:$0xff] }
  0xc7   :  { %5635 = vmatprep.subr.mxu1 %v1837_v23  ;;  %5501 = vmatprep.mubr.f32.mxu0 %v1231_v24  ;;  %v1809_v22 = vld [vmem:[#allocation2 + $0x140] sm:$0xff]  ;;  %v1616_v24 = vld [vmem:[#allocation2 + $0x30] sm:$0xff] }
  0xc8   :  { %5582 = vmatpush3.msra.mxu0 %v1642_v21  ;;  %5636 = vmatpush3.msra.mxu1 %v1837_v23  ;;  %v1808_v21 = vld [vmem:[#allocation2 + $0x130] sm:$0xff] }
  0xc9   :  { %5502 = vmatmul.mubr.f32.gmra.mxu0 %v1232_v25  ;;  %5583 = vmatprep.subr.mxu0 %v1641_v26  ;;  %v2031_v23 = vld [vmem:[%s8873_s1 + $0x470] sm:$0xff] }
  0xca   :  { %5637 = vmatprep.subr.mxu1 %v1836_v27  ;;  %5557 = vmatprep.mubr.f32.mxu1 %v1424_v28  ;;  %v1810_v25 = vld [vmem:[#allocation2 + $0x150] sm:$0xff]  ;;  %v1811_v28 = vld [vmem:[#allocation2 + $0x160] sm:$0xff] }
  0xcb   :  { %5584 = vmatpush3.msra.mxu0 %v1641_v26  ;;  %5638 = vmatpush3.msra.mxu1 %v1836_v27  ;;  %v1617_v26 = vld [vmem:[#allocation2 + $0x40] sm:$0xff]  ;;  %v2030_v27 = vld [vmem:[%s8873_s1 + $0x468] sm:$0xff] }
  0xcc   :  { %5585 = vmatprep.subr.mxu0 %v1640_v29  ;;  %5558 = vmatmul.mubr.f32.gmra.mxu1 %v1425_v30  ;;  %v1618_v30 = vld [vmem:[#allocation2 + $0x50] sm:$0xff] }
  0xcd   :  { %5639 = vmatprep.subr.mxu1 %v1835_v32  ;;  %5504 = vmatprep.mubr.f32.mxu0 %v1233_v33  ;;  %v1619_v33 = vld [vmem:[#allocation2 + $0x60] sm:$0xff] }
  0xce   :  { %5586 = vmatpush3.msra.mxu0 %v1640_v29  ;;  %5640 = vmatpush3.msra.mxu1 %v1835_v32  ;;  %v2029_v29 = vld [vmem:[%s8873_s1 + $0x460] sm:$0xff]  ;;  %v1812_v32 = vld [vmem:[#allocation2 + $0x170] sm:$0xff] }
  0xcf   :  { %5505 = vmatmul.mubr.f32.gmra.mxu0 %v1234_v34  ;;  %5587 = vmatprep.subr.mxu0 %v1639_v35  ;;  %v2028_v34 = vld [vmem:[%s8873_s1 + $0x458] sm:$0xff] }
  0xd0   :  { %5641 = vmatprep.subr.mxu1 %v1834_v36  ;;  %5560 = vmatprep.mubr.f32.mxu1 %v1426_v37  ;;  %v1620_v37 = vld [vmem:[#allocation2 + $0x70] sm:$0xff] }
  0xd1   :  { %5588 = vmatpush3.msra.mxu0 %v1639_v35  ;;  %5642 = vmatpush3.msra.mxu1 %v1834_v36  ;;  %v1813_v35 = vld [vmem:[#allocation2 + $0x180] sm:$0xff]  ;;  %v2027_v36 = vld [vmem:[%s8873_s1 + $0x450] sm:$0xff] }
  0xd2   :  { %5589 = vmatprep.subr.mxu0 %v1638_v38  ;;  %5561 = vmatmul.mubr.f32.gmra.mxu1 %v1427_v39  ;;  %v1621_v39 = vld [vmem:[#allocation2 + $0x80] sm:$0xff] }
  0xd3   :  { %5643 = vmatprep.subr.mxu1 %v1833_v42  ;;  %5507 = vmatprep.mubr.f32.mxu0 %v1235_v43  ;;  %v1815_v43 = vld [vmem:[#allocation2 + $0x1a0] sm:$0xff] }
  0xd4   :  { %5590 = vmatpush3.msra.mxu0 %v1638_v38  ;;  %5644 = vmatpush3.msra.mxu1 %v1833_v42  ;;  %v1814_v38 = vld [vmem:[#allocation2 + $0x190] sm:$0xff]  ;;  %v2026_v42 = vld [vmem:[%s8873_s1 + $0x448] sm:$0xff] }
  0xd5   :  { %5508 = vmatmul.mubr.f32.gmra.mxu0 %v1236_v44  ;;  %5591 = vmatprep.subr.mxu0 %v1637_v45  ;;  %v2025_v44 = vld [vmem:[%s8873_s1 + $0x440] sm:$0xff] }
  0xd6   :  { %5645 = vmatprep.subr.mxu1 %v1832_v46  ;;  %5563 = vmatprep.mubr.f32.mxu1 %v1428_v47  ;;  %v1623_v47 = vld [vmem:[#allocation2 + $0xb0] sm:$0xff] }
  0xd7   :  { %5592 = vmatpush3.msra.mxu0 %v1637_v45  ;;  %5646 = vmatpush3.msra.mxu1 %v1832_v46  ;;  %v1622_v45 = vld [vmem:[#allocation2 + $0xa0] sm:$0xff] }
  0xd8   :  { %5593 = vmatprep.subr.mxu0 %v1636_v50  ;;  %5564 = vmatmul.mubr.f32.gmra.mxu1 %v1429_v51  ;;  %v1816_v46 = vld [vmem:[#allocation2 + $0x1c0] sm:$0xff]  ;;  %v1817_v51 = vld [vmem:[#allocation2 + $0x1d0] sm:$0xff] }
  0xd9   :  { %5647 = vmatprep.subr.mxu1 %v1831_v52  ;;  %5510 = vmatprep.mubr.f32.mxu0 %v1237_v53  ;;  %v1624_v53 = vld [vmem:[#allocation2 + $0xc0] sm:$0xff] }
  0xda   :  { %5594 = vmatpush3.msra.mxu0 %v1636_v50  ;;  %5648 = vmatpush3.msra.mxu1 %v1831_v52  ;;  %v2024_v50 = vld [vmem:[%s8873_s1 + $0x438] sm:$0xff]  ;;  %v2023_v52 = vld [vmem:[%s8873_s1 + $0x430] sm:$0xff] }
  0xdb   :  { %5511 = vmatmul.mubr.f32.gmra.mxu0 %v1238_v54  ;;  %5595 = vmatprep.subr.mxu0 %v1635_v55  ;;  %v1818_v54 = vld [vmem:[#allocation2 + $0x1e0] sm:$0xff] }
  0xdc   :  { %5649 = vmatprep.subr.mxu1 %v1830_v56  ;;  %5566 = vmatprep.mubr.f32.mxu1 %v1430_v57  ;;  %v1819_v57 = vld [vmem:[#allocation2 + $0x1f0] sm:$0xff] }
  0xdd   :  { %5596 = vmatpush3.msra.mxu0 %v1635_v55  ;;  %5650 = vmatpush3.msra.mxu1 %v1830_v56  ;;  %v1625_v55 = vld [vmem:[#allocation2 + $0xd0] sm:$0xff]  ;;  %v2022_v56 = vld [vmem:[%s8873_s1 + $0x428] sm:$0xff] }
  0xde   :  { %5597 = vmatprep.subr.mxu0 %v1634_v60  ;;  %5567 = vmatmul.mubr.f32.gmra.mxu1 %v1431_v61  ;;  %v1626_v61 = vld [vmem:[#allocation2 + $0xe0] sm:$0xff] }
  0xdf   :  { %5651 = vmatprep.subr.mxu1 %v1829_v62  ;;  %5513 = vmatprep.mubr.f32.mxu0 %v1239_v63  ;;  %v1627_v63 = vld [vmem:[#allocation2 + $0xf0] sm:$0xff] }
  0xe0   :  { %5598 = vmatpush3.msra.mxu0 %v1634_v60  ;;  %5652 = vmatpush3.msra.mxu1 %v1829_v62  ;;  %v2021_v60 = vld [vmem:[%s8873_s1 + $0x420] sm:$0xff] }
  0xe1   :  { %5514 = vmatmul.mubr.f32.gmra.mxu0 %v1240_v0  ;;  %5599 = vmatprep.subr.mxu0 %v1633_v1  ;;  %v1820_v62 = vld [vmem:[#allocation2 + $0x200] sm:$0xff]  ;;  %v2020_v0 = vld [vmem:[%s8873_s1 + $0x418] sm:$0xff] }
  0xe2   :  { %5653 = vmatprep.subr.mxu1 %v1828_v2  ;;  %5569 = vmatprep.mubr.f32.mxu1 %v1432_v3  ;;  %v1628_v3 = vld [vmem:[#allocation2 + $0x100] sm:$0xff] }
  0xe3   :  { %5600 = vmatpush3.msra.mxu0 %v1633_v1  ;;  %5654 = vmatpush3.msra.mxu1 %v1828_v2  ;;  %v1821_v1 = vld [vmem:[#allocation2 + $0x210] sm:$0xff] }
  0xe4   :  { %5601 = vmatprep.subr.mxu0 %v1632_v4  ;;  %5570 = vmatmul.mubr.f32.gmra.mxu1 %v1433_v5  ;;  %v2019_v2 = vld [vmem:[%s8873_s1 + $0x410] sm:$0xff] }
  0xe5   :  { %5655 = vmatprep.subr.mxu1 %v1827_v6  ;;  %5516 = vmatprep.mubr.f32.mxu0 %v1241_v7  ;;  %v1629_v5 = vld [vmem:[#allocation2 + $0x110] sm:$0xff] }
  0xe6   :  { %5602 = vmatpush3.msra.mxu0 %v1632_v4  ;;  %5656 = vmatpush3.msra.mxu1 %v1827_v6  ;;  %v1822_v4 = vld [vmem:[#allocation2 + $0x220] sm:$0xff]  ;;  %v2018_v6 = vld [vmem:[%s8873_s1 + $0x408] sm:$0xff]  ;;  %v1823_v7 = vld [vmem:[#allocation2 + $0x230] sm:$0xff] }
  0xe7   :  { %5517 = vmatmul.mubr.f32.gmra.mxu0 %v1242_v8  ;;  %5603 = vmatprep.subr.mxu0 %v1631_v9  ;;  %v2017_v8 = vld [vmem:[%s8873_s1 + $0x400] sm:$0xff] }
  0xe8   :  { %5657 = vmatprep.subr.mxu1 %v1826_v10  ;;  %5572 = vmatprep.mubr.f32.mxu1 %v1434_v11  ;;  %v2003_v11 = vld [vmem:[#allocation2 + $0x31] sm:$0xff] }
  0xe9   :  { %5604 = vmatpush3.msra.mxu0 %v1631_v9  ;;  %5658 = vmatpush3.msra.mxu1 %v1826_v10  ;;  %v2001_v9 = vld [vmem:[#allocation2 + $0x11] sm:$0xff]  ;;  %v2002_v10 = vld [vmem:[#allocation2 + $0x21] sm:$0xff] }
  0xea   :  { %5605 = vmatprep.subr.mxu0 %v1630_v12  ;;  %5573 = vmatmul.mubr.f32.gmra.mxu1 %v1435_v13  ;;  %v2005_v13 = vld [vmem:[#allocation2 + $0x51] sm:$0xff] }
  0xeb   :  { %5659 = vmatprep.subr.mxu1 %v1825_v15  ;;  %5606 = vmatpush3.msra.mxu0 %v1630_v12  ;;  %v2004_v12 = vld [vmem:[#allocation2 + $0x41] sm:$0xff] }
  0xec   :  { %5607 = vmatprep.mubr.f32.mxu0 %v1614_v16  ;;  %5660 = vmatpush3.msra.mxu1 %v1825_v15  ;;  %v2008_v15 = vld [vmem:[#allocation2 + $0x81] sm:$0xff] }
  0xed   :  { %5608 = vmatmul.mubr.f32.vlgmr.msra.gmra.mxu0 %v1615_v18  ;;  %5661 = vmatprep.subr.mxu1 %v1824_v19 }
  0xee   :  { %5687 = vmatprep.subr.mxu0 %v2032_v20  ;;  %5662 = vmatpush3.msra.mxu1 %v1824_v19 }
  0xef   :  { %5663 = vmatprep.mubr.f32.mxu1 %v1808_v21  ;;  %5688 = vmatpush3.msra.mxu0 %v2032_v20 }
  0xf0   :  { %5664 = vmatmul.mubr.f32.vlgmr.msra.gmra.mxu1 %v1809_v22  ;;  %5689 = vmatprep.subr.mxu0 %v2031_v23 }
  0xf1   :  { %5610 = vmatprep.mubr.f32.mxu0 %v1616_v24  ;;  %5690 = vmatpush3.msra.mxu0 %v2031_v23 }
  0xf2   :  { %5666 = vmatprep.mubr.f32.mxu1 %v1810_v25  ;;  %5611 = vmatmul.mubr.f32.gmra.mxu0 %v1617_v26 }
  0xf3   :  { %5691 = vmatprep.subr.mxu0 %v2030_v27  ;;  %5613 = vmatprep.mubr.f32.mxu0 %v1618_v30 }
  0xf4   :  { %5692 = vmatpush3.msra.mxu0 %v2030_v27  ;;  %5667 = vmatmul.mubr.f32.gmra.mxu1 %v1811_v28 }
  0xf5   :  { %5693 = vmatprep.subr.mxu0 %v2029_v29  ;;  %5669 = vmatprep.mubr.f32.mxu1 %v1812_v32 }
  0xf6   :  { %5694 = vmatpush3.msra.mxu0 %v2029_v29 }
  0xf7   :  { %5614 = vmatmul.mubr.f32.gmra.mxu0 %v1619_v33  ;;  %5695 = vmatprep.subr.mxu0 %v2028_v34 }
  0xf8   :  { %5696 = vmatpush3.msra.mxu0 %v2028_v34  ;;  %5670 = vmatmul.mubr.f32.gmra.mxu1 %v1813_v35 }
  0xf9   :  { %5697 = vmatprep.subr.mxu0 %v2027_v36  ;;  %5616 = vmatprep.mubr.f32.mxu0 %v1620_v37 }
  0xfa   :  { %5698 = vmatpush3.msra.mxu0 %v2027_v36  ;;  %5672 = vmatprep.mubr.f32.mxu1 %v1814_v38 }
  0xfb   :  { %5617 = vmatmul.mubr.f32.gmra.mxu0 %v1621_v39  ;;  %5699 = vmatprep.subr.mxu0 %v2026_v42 }
  0xfc   :  { %5700 = vmatpush3.msra.mxu0 %v2026_v42  ;;  %5673 = vmatmul.mubr.f32.gmra.mxu1 %v1815_v43 }
  0xfd   :  { %5701 = vmatprep.subr.mxu0 %v2025_v44  ;;  %5619 = vmatprep.mubr.f32.mxu0 %v1622_v45 }
  0xfe   :  { %5702 = vmatpush3.msra.mxu0 %v2025_v44  ;;  %5675 = vmatprep.mubr.f32.mxu1 %v1816_v46 }
  0xff   :  { %5620 = vmatmul.mubr.f32.gmra.mxu0 %v1623_v47  ;;  %5703 = vmatprep.subr.mxu0 %v2024_v50 }
 0x100   :  { %5704 = vmatpush3.msra.mxu0 %v2024_v50  ;;  %5676 = vmatmul.mubr.f32.gmra.mxu1 %v1817_v51 }
 0x101   :  { %5705 = vmatprep.subr.mxu0 %v2023_v52  ;;  %5622 = vmatprep.mubr.f32.mxu0 %v1624_v53 }
 0x102   :  { %5706 = vmatpush3.msra.mxu0 %v2023_v52  ;;  %5678 = vmatprep.mubr.f32.mxu1 %v1818_v54 }
 0x103   :  { %5623 = vmatmul.mubr.f32.gmra.mxu0 %v1625_v55  ;;  %5707 = vmatprep.subr.mxu0 %v2022_v56 }
 0x104   :  { %5708 = vmatpush3.msra.mxu0 %v2022_v56  ;;  %5679 = vmatmul.mubr.f32.gmra.mxu1 %v1819_v57 }
 0x105   :  { %5709 = vmatprep.subr.mxu0 %v2021_v60  ;;  %5625 = vmatprep.mubr.f32.mxu0 %v1626_v61 }
 0x106   :  { %5710 = vmatpush3.msra.mxu0 %v2021_v60  ;;  %5681 = vmatprep.mubr.f32.mxu1 %v1820_v62 }
 0x107   :  { %5626 = vmatmul.mubr.f32.gmra.mxu0 %v1627_v63  ;;  %5711 = vmatprep.subr.mxu0 %v2020_v0 }
 0x108   :  { %5712 = vmatpush3.msra.mxu0 %v2020_v0  ;;  %5682 = vmatmul.mubr.f32.gmra.mxu1 %v1821_v1 }
 0x109   :  { %5713 = vmatprep.subr.mxu0 %v2019_v2  ;;  %5628 = vmatprep.mubr.f32.mxu0 %v1628_v3 }
 0x10a   :  { %5714 = vmatpush3.msra.mxu0 %v2019_v2  ;;  %5684 = vmatprep.mubr.f32.mxu1 %v1822_v4 }
 0x10b   :  { %5629 = vmatmul.mubr.f32.gmra.mxu0 %v1629_v5  ;;  %5715 = vmatprep.subr.mxu0 %v2018_v6 }
 0x10c   :  { %5716 = vmatpush3.msra.mxu0 %v2018_v6  ;;  %5685 = vmatmul.mubr.f32.gmra.mxu1 %v1823_v7 }
 0x10d   :  { %5717 = vmatprep.subr.mxu0 %v2017_v8  ;;  %5719 = vmatprep.mubr.f32.mxu0 %v2001_v9 }
 0x10e   :  { %5718 = vmatpush3.msra.mxu0 %v2017_v8 }
 0x10f   :  { %5720 = vmatmul.mubr.f32.vlgmr.msra.gmra.mxu0 %v2002_v10 }
 0x110   :  { %5722 = vmatprep.mubr.f32.mxu0 %v2003_v11 }
 0x113   :  { %5723 = vmatmul.mubr.f32.gmra.mxu0 %v2004_v12 }
 0x114   :  { %5725 = vmatprep.mubr.f32.mxu0 %v2005_v13 }
 0x117   :  { %5726 = vmatmul.mubr.f32.gmra.mxu0 %v7185_v14 }
 0x118   :  { %5728 = vmatprep.mubr.f32.mxu0 %v7193_v17 }
 0x11b   :  { %5729 = vmatmul.mubr.f32.gmra.mxu0 %v2008_v15 }
 0x11c   :  { %5731 = vmatprep.mubr.f32.mxu0 %v7234_v31 }
 0x11f   :  { %5732 = vmatmul.mubr.f32.gmra.mxu0 %v7258_v40  ;;  %v5273_v16 = vpop.f32.mrf.mxu0  ;;  %v2016_v40 = vld [vmem:[#allocation2 + $0x111] sm:$0xff] }
 0x120   :  { %v5329_v18 = vpop.f32.mrf.mxu1  ;;  %5734 = vmatprep.mubr.f32.mxu0 %v7260_v41 }
 0x121   :  { %v766_v19 = vadd.f32 %v5329_v18, %v5273_v16  ;;  %v7488_v20 = vpop.f32.mrf.mxu0 }
 0x122   :  { %v7490_v21 = vpop.f32.mrf.mxu1 }
 0x123   :  { %5735 = vmatmul.mubr.f32.gmra.mxu0 %v7276_v48  ;;  %v5276_v14 = vpop.f32.mrf.mxu0 }
 0x124   :  { %5737 = vmatprep.mubr.f32.mxu0 %v7278_v49  ;;  %v5332_v17 = vpop.f32.mrf.mxu1  ;;  %v6346_v49 = vld [vmem:[#allocation3] sm:$0xff] }
 0x125   :  { %v776_v22 = vadd.f32 %v5332_v17, %v5276_v14  ;;  %v7494_v23 = vpop.f32.mrf.mxu0 }
 0x126   :  { %v7496_v31 = vpop.f32.mrf.mxu1 }
 0x127   :  { %5738 = vmatmul.mubr.f32.gmra.mxu0 %v7302_v58 }
 0x128   :  { %5740 = vmatprep.mubr.f32.mxu0 %v7304_v59 }
 0x129   :  { %v5279_v41 = vpop.f32.mrf.mxu0 }
 0x12a   :  { %v5335_v24 = vpop.f32.mrf.mxu1 }
 0x12b   :  { %5741 = vmatmul.mubr.f32.gmra.mxu0 %v2016_v40  ;;  %v786_v25 = vadd.f32 %v5335_v24, %v5279_v41  ;;  %v7500_v26 = vpop.f32.mrf.mxu0 }
 0x12c   :  { %v7502_v48 = vpop.f32.mrf.mxu1  ;;  %5831 = vmatprep.mubr.f32.mxu0 %v6346_v49 }
 0x12f   :  { %v5282_v27 = vpop.f32.mrf.mxu0 }
 0x130   :  { %v5338_v28 = vpop.f32.mrf.mxu1 }
 0x131   :  { %v796_v29 = vadd.f32 %v5338_v28, %v5282_v27  ;;  %v7504_v30 = vpop.f32.mrf.mxu0 }
 0x132   :  { %v7506_v32 = vpop.f32.mrf.mxu1 }
 0x135   :  { %v5285_v58 = vpop.f32.mrf.mxu0 }
 0x136   :  { %v5341_v59 = vpop.f32.mrf.mxu1 }
 0x137   :  { %v806_v33 = vadd.f32 %v5341_v59, %v5285_v58  ;;  %v7508_v34 = vpop.f32.mrf.mxu0 }
 0x138   :  { %v7510_v35 = vpop.f32.mrf.mxu1 }
 0x13b   :  { %v5288_v36 = vpop.f32.mrf.mxu0 }
 0x13c   :  { %v5344_v37 = vpop.f32.mrf.mxu1 }
 0x13d   :  { %v816_v38 = vadd.f32 %v5344_v37, %v5288_v36  ;;  %v7512_v39 = vpop.f32.mrf.mxu0 }
 0x13e   :  { %v7514_v42 = vpop.f32.mrf.mxu1 }
 0x141   :  { %v5291_v43 = vpop.f32.mrf.mxu0 }
 0x142   :  { %v5347_v44 = vpop.f32.mrf.mxu1 }
 0x143   :  { %v826_v45 = vadd.f32 %v5347_v44, %v5291_v43  ;;  %v7516_v46 = vpop.f32.mrf.mxu0  ;;  %v2471_v44 = vld [vmem:[#allocation4 + $0xf0] sm:$0xff] }
 0x144   :  { %v7518_v47 = vpop.f32.mrf.mxu1 }
 0x147   :  { %v5294_v50 = vpop.f32.mrf.mxu0 }
 0x148   :  { %v5350_v51 = vpop.f32.mrf.mxu1 }
 0x149   :  { %v836_v52 = vadd.f32 %v5350_v51, %v5294_v50  ;;  %v7520_v53 = vpop.f32.mrf.mxu0  ;;  %v2470_v50 = vld [vmem:[#allocation4 + $0xe8] sm:$0xff] }
 0x14a   :  { %v7522_v55 = vpop.f32.mrf.mxu1 }
 0x14d   :  { %v5385_v54 = vpop.f32.mrf.mxu0 }
 0x14e   :  { %v7524_v56 = vadd.f32 %v5385_v54, %v766_v19  ;;  %v2469_v54 = vld [vmem:[#allocation4 + $0xe0] sm:$0xff] }
 0x14f   :  { %v7526_v57 = vpop.f32.mrf.mxu0 }
 0x150   :  { %v7528_v60 = vpop.f32.mrf.mxu1 }
 0x152   :  { %v7530_v62 = vpop.f32.mrf.mxu1 }
 0x153   :  { %v5388_v61 = vpop.f32.mrf.mxu0 }
 0x154   :  { %v7532_v63 = vadd.f32 %v5388_v61, %v776_v22 }
 0x155   :  { %v7534_v0 = vpop.f32.mrf.mxu0 }
 0x156   :  { %v7536_v1 = vpop.f32.mrf.mxu1 }
 0x158   :  { %v7538_v3 = vpop.f32.mrf.mxu1 }
 0x159   :  { %v5391_v2 = vpop.f32.mrf.mxu0 }
 0x15a   :  { %v7540_v4 = vadd.f32 %v5391_v2, %v786_v25  ;;  %v2440_v2 = vld [vmem:[#allocation4 + $0x78] sm:$0xff] }
 0x15b   :  { %v7542_v5 = vpop.f32.mrf.mxu0  ;;  %5799 = vmatprep.subr.mxu0 %v2440_v2 }
 0x15c   :  { %v7544_v6 = vpop.f32.mrf.mxu1  ;;  %5800 = vmatpush3.msra.mxu0 %v2440_v2  ;;  %v2465_v2 = vld [vmem:[#allocation4 + $0xc0] sm:$0xff] }
 0x15e   :  { %v7546_v8 = vpop.f32.mrf.mxu1 }
 0x15f   :  { %v5394_v7 = vpop.f32.mrf.mxu0 }
 0x160   :  { %v7548_v9 = vadd.f32 %v5394_v7, %v796_v29  ;;  %v2468_v7 = vld [vmem:[#allocation4 + $0xd8] sm:$0xff] }
 0x161   :  { %v7550_v10 = vpop.f32.mrf.mxu0 }
 0x162   :  { %v7552_v11 = vpop.f32.mrf.mxu1 }
 0x164   :  { %v7554_v13 = vpop.f32.mrf.mxu1 }
 0x165   :  { %v5397_v12 = vpop.f32.mrf.mxu0 }
 0x166   :  { %v7556_v15 = vadd.f32 %v5397_v12, %v806_v33 }
 0x167   :  { %v7558_v16 = vpop.f32.mrf.mxu0 }
 0x168   :  { %v7560_v18 = vpop.f32.mrf.mxu1 }
 0x16a   :  { %v7562_v14 = vpop.f32.mrf.mxu1 }
 0x16b   :  { %v5400_v19 = vpop.f32.mrf.mxu0 }
 0x16c   :  { %v7564_v17 = vadd.f32 %v5400_v19, %v816_v38  ;;  %v2472_v38 = vld [vmem:[#allocation4 + $0xf8] sm:$0xff]  ;;  %v2439_v19 = vld [vmem:[#allocation4 + $0x70] sm:$0xff] }
 0x16d   :  { %v7566_v22 = vpop.f32.mrf.mxu0  ;;  %5743 = vmatprep.subr.mxu1 %v2472_v38  ;;  %5801 = vmatprep.subr.mxu0 %v2439_v19 }
 0x16e   :  { %v7568_v40 = vpop.f32.mrf.mxu1  ;;  %5744 = vmatpush3.msra.mxu1 %v2472_v38  ;;  %5802 = vmatpush3.msra.mxu0 %v2439_v19 }
 0x16f   :  { %5745 = vmatprep.subr.mxu1 %v2471_v44 }
 0x170   :  { %v7570_v24 = vpop.f32.mrf.mxu1  ;;  %5746 = vmatpush3.msra.mxu1 %v2471_v44  ;;  %v2438_v44 = vld [vmem:[#allocation4 + $0x68] sm:$0xff] }
 0x171   :  { %v5403_v41 = vpop.f32.mrf.mxu0  ;;  %8885 = vst [vmem:[#allocation10_spill] sm:$0xff] %v7570_v24  ;;  %5747 = vmatprep.subr.mxu1 %v2470_v50  ;;  %5803 = vmatprep.subr.mxu0 %v2438_v44  ;;  %v2461_v24 = vld [vmem:[#allocation4 + $0xa0] sm:$0xff] }
 0x172   :  { %v7572_v25 = vadd.f32 %v5403_v41, %v826_v45  ;;  %5748 = vmatpush3.msra.mxu1 %v2470_v50  ;;  %v2467_v41 = vld [vmem:[#allocation4 + $0xd0] sm:$0xff]  ;;  %v2466_v50 = vld [vmem:[#allocation4 + $0xc8] sm:$0xff]  ;;  %5804 = vmatpush3.msra.mxu0 %v2438_v44 }
 0x173   :  { %v7574_v49 = vpop.f32.mrf.mxu0  ;;  %5749 = vmatprep.subr.mxu1 %v2469_v54  ;;  %v2463_v44 = vld [vmem:[#allocation4 + $0xb0] sm:$0xff] }
 0x174   :  { %8886 = vst [vmem:[#allocation11_spill] sm:$0xff] %v7572_v25  ;;  %v7576_v27 = vpop.f32.mrf.mxu1  ;;  %5750 = vmatpush3.msra.mxu1 %v2469_v54  ;;  %v2433_v25 = vld [vmem:[#allocation4 + $0x40] sm:$0xff] }
 0x175   :  { %8887 = vst [vmem:[#allocation12_spill] sm:$0xff] %v7576_v27  ;;  %5751 = vmatprep.subr.mxu1 %v2468_v7  ;;  %v2434_v27 = vld [vmem:[#allocation4 + $0x48] sm:$0xff] }
 0x176   :  { %v7578_v29 = vpop.f32.mrf.mxu1  ;;  %5752 = vmatpush3.msra.mxu1 %v2468_v7 }
 0x177   :  { %v5406_v28 = vpop.f32.mrf.mxu0  ;;  %8888 = vst [vmem:[#allocation13_spill] sm:$0xff] %v7578_v29  ;;  %5753 = vmatprep.subr.mxu1 %v2467_v41  ;;  %v2435_v29 = vld [vmem:[#allocation4 + $0x50] sm:$0xff] }
 0x178   :  { %v7580_v58 = vadd.f32 %v5406_v28, %v836_v52  ;;  %5754 = vmatpush3.msra.mxu1 %v2467_v41 }
 0x179   :  { %v7582_v59 = vpop.f32.mrf.mxu0  ;;  %5755 = vmatprep.subr.mxu1 %v2466_v50 }
 0x17a   :  { %8889 = vst [vmem:[#allocation14_spill] sm:$0xff] %v7580_v58  ;;  %v7584_v33 = vpop.f32.mrf.mxu1  ;;  %5756 = vmatpush3.msra.mxu1 %v2466_v50  ;;  %v2464_v58 = vld [vmem:[#allocation4 + $0xb8] sm:$0xff] }
 0x17b   :  { %8890 = vst [vmem:[#allocation15_spill] sm:$0xff] %v7584_v33  ;;  %5757 = vmatprep.subr.mxu1 %v2465_v2  ;;  %v2436_v33 = vld [vmem:[#allocation4 + $0x58] sm:$0xff] }
 0x17c   :  { %v7586_v36 = vpop.f32.mrf.mxu1  ;;  %5758 = vmatpush3.msra.mxu1 %v2465_v2 }
 0x17d   :  { %8891 = vst [vmem:[#allocation16_spill] sm:$0xff] %v7586_v36  ;;  %v7588_v37 = vpop.f32.mrf.mxu0  ;;  %v2437_v36 = vld [vmem:[#allocation4 + $0x60] sm:$0xff]  ;;  %5759 = vmatprep.subr.mxu1 %v2464_v58 }
 0x17e   :  { %5805 = vmatprep.subr.mxu0 %v2437_v36  ;;  %5760 = vmatpush3.msra.mxu1 %v2464_v58 }
 0x17f   :  { %v7590_v43 = vpop.f32.mrf.mxu0  ;;  %5806 = vmatpush3.msra.mxu0 %v2437_v36  ;;  %5761 = vmatprep.subr.mxu1 %v2463_v44  ;;  %v2462_v36 = vld [vmem:[#allocation4 + $0xa8] sm:$0xff] }
 0x180   :  { %v7592_v45 = vpop.f32.mrf.mxu1  ;;  %5807 = vmatprep.subr.mxu0 %v2436_v33  ;;  %5762 = vmatpush3.msra.mxu1 %v2463_v44 }
 0x181   :  { %5808 = vmatpush3.msra.mxu0 %v2436_v33  ;;  %5763 = vmatprep.subr.mxu1 %v2462_v36 }
 0x182   :  { %v7596_v52 = vpop.f32.mrf.mxu1  ;;  %5809 = vmatprep.subr.mxu0 %v2435_v29  ;;  %5764 = vmatpush3.msra.mxu1 %v2462_v36 }
 0x183   :  { %v7594_v51 = vpop.f32.mrf.mxu0  ;;  %5810 = vmatpush3.msra.mxu0 %v2435_v29  ;;  %5765 = vmatprep.subr.mxu1 %v2461_v24  ;;  %v2460_v29 = vld [vmem:[#allocation4 + $0x98] sm:$0xff] }
 0x184   :  { %5811 = vmatprep.subr.mxu0 %v2434_v27  ;;  %5766 = vmatpush3.msra.mxu1 %v2461_v24 }
 0x185   :  { %v7598_v61 = vpop.f32.mrf.mxu0  ;;  %5812 = vmatpush3.msra.mxu0 %v2434_v27  ;;  %5767 = vmatprep.subr.mxu1 %v2460_v29  ;;  %v2459_v27 = vld [vmem:[#allocation4 + $0x90] sm:$0xff] }
 0x186   :  { %v7600_v12 = vpop.f32.mrf.mxu1  ;;  %5813 = vmatprep.subr.mxu0 %v2433_v25  ;;  %5768 = vmatpush3.msra.mxu1 %v2460_v29  ;;  %v2441_v29 = vld [vmem:[#allocation3 + $0x1] sm:$0xff] }
 0x187   :  { %5814 = vmatpush3.msra.mxu0 %v2433_v25  ;;  %5769 = vmatprep.subr.mxu1 %v2459_v27 }
 0x188   :  { %v7604_v38 = vpop.f32.mrf.mxu1  ;;  %5770 = vmatpush3.msra.mxu1 %v2459_v27  ;;  %v7632_v27 = vld [vmem:[#allocation4 + $0x178] sm:$0xff]  ;;  %5775 = vmatprep.mubr.f32.mxu1 %v2441_v29 }
 0x189   :  { %v7602_v28 = vpop.f32.mrf.mxu0  ;;  %8904 = vst [vmem:[#allocation29_spill] sm:$0xff] %v7632_v27  ;;  %v7645_v29 = vld [vmem:[#allocation4 + $0x1f8] sm:$0xff] }
 0x18a   :  { %8910 = vst [vmem:[#allocation35_spill] sm:$0xff] %v7645_v29 }
 0x18b   :  { %v7606_v54 = vpop.f32.mrf.mxu0 }
 0x18c   :  { %v7608_v7 = vpop.f32.mrf.mxu1 }
 0x18d   :  { %8892 = vst [vmem:[#allocation17_spill] sm:$0xff] %v7608_v7 }
 0x18e   :  { %v7612_v41 = vpop.f32.mrf.mxu1 }
 0x18f   :  { %v7610_v19 = vpop.f32.mrf.mxu0  ;;  %8894 = vst [vmem:[#allocation19_spill] sm:$0xff] %v7612_v41 }
 0x190   :  { %8893 = vst [vmem:[#allocation18_spill] sm:$0xff] %v7610_v19 }
 0x191   :  { %v7614_v50 = vpop.f32.mrf.mxu0 }
 0x192   :  { %8895 = vst [vmem:[#allocation20_spill] sm:$0xff] %v7614_v50  ;;  %v7616_v2 = vpop.f32.mrf.mxu1  ;;  %v2432_v50 = vld [vmem:[#allocation4 + $0x38] sm:$0xff] }
 0x193   :  { %8896 = vst [vmem:[#allocation21_spill] sm:$0xff] %v7616_v2  ;;  %5815 = vmatprep.subr.mxu0 %v2432_v50  ;;  %v2431_v2 = vld [vmem:[#allocation4 + $0x30] sm:$0xff] }
 0x194   :  { %v7620_v33 = vpop.f32.mrf.mxu1  ;;  %5816 = vmatpush3.msra.mxu0 %v2432_v50  ;;  %v2457_v50 = vld [vmem:[#allocation4 + $0x80] sm:$0xff] }
 0x195   :  { %v7618_v58 = vpop.f32.mrf.mxu0  ;;  %8898 = vst [vmem:[#allocation23_spill] sm:$0xff] %v7620_v33  ;;  %5817 = vmatprep.subr.mxu0 %v2431_v2  ;;  %v2458_v33 = vld [vmem:[#allocation4 + $0x88] sm:$0xff] }
 0x196   :  { %8897 = vst [vmem:[#allocation22_spill] sm:$0xff] %v7618_v58  ;;  %5818 = vmatpush3.msra.mxu0 %v2431_v2  ;;  %v2430_v58 = vld [vmem:[#allocation4 + $0x28] sm:$0xff]  ;;  %5771 = vmatprep.subr.mxu1 %v2458_v33  ;;  %v2428_v2 = vld [vmem:[#allocation4 + $0x18] sm:$0xff] }
 0x197   :  { %v7622_v44 = vpop.f32.mrf.mxu0  ;;  %5819 = vmatprep.subr.mxu0 %v2430_v58  ;;  %5772 = vmatpush3.msra.mxu1 %v2458_v33 }
 0x198   :  { %8899 = vst [vmem:[#allocation24_spill] sm:$0xff] %v7622_v44  ;;  %v7624_v36 = vpop.f32.mrf.mxu1  ;;  %5820 = vmatpush3.msra.mxu0 %v2430_v58  ;;  %v2429_v44 = vld [vmem:[#allocation4 + $0x20] sm:$0xff]  ;;  %5773 = vmatprep.subr.mxu1 %v2457_v50  ;;  %v2426_v58 = vld [vmem:[#allocation4 + $0x8] sm:$0xff] }
 0x199   :  { %8900 = vst [vmem:[#allocation25_spill] sm:$0xff] %v7624_v36  ;;  %5821 = vmatprep.subr.mxu0 %v2429_v44  ;;  %5774 = vmatpush3.msra.mxu1 %v2457_v50  ;;  %v2427_v36 = vld [vmem:[#allocation4 + $0x10] sm:$0xff] }
 0x19a   :  { %v7628_v25 = vpop.f32.mrf.mxu1  ;;  %5822 = vmatpush3.msra.mxu0 %v2429_v44  ;;  %5855 = vmatprep.subr.mxu1 %v7632_v27  ;;  %v2425_v44 = vld [vmem:[#allocation4] sm:$0xff] }
 0x19b   :  { %v7626_v24 = vpop.f32.mrf.mxu0  ;;  %8902 = vst [vmem:[#allocation27_spill] sm:$0xff] %v7628_v25  ;;  %5823 = vmatprep.subr.mxu0 %v2428_v2 }
 0x19c   :  { %8901 = vst [vmem:[#allocation26_spill] sm:$0xff] %v7626_v24  ;;  %5824 = vmatpush3.msra.mxu0 %v2428_v2 }
 0x19d   :  { %v7630_v41 = vpop.f32.mrf.mxu0  ;;  %5825 = vmatprep.subr.mxu0 %v2427_v36 }
 0x19e   :  { %8903 = vst [vmem:[#allocation28_spill] sm:$0xff] %v7630_v41  ;;  %v7634_v24 = vpop.f32.mrf.mxu1  ;;  %5826 = vmatpush3.msra.mxu0 %v2427_v36 }
 0x19f   :  { %8905 = vst [vmem:[#allocation30_spill] sm:$0xff] %v7634_v24  ;;  %5827 = vmatprep.subr.mxu0 %v2426_v58 }
 0x1a0   :  { %v7639_v25 = vpop.f32.mrf.mxu1  ;;  %5828 = vmatpush3.msra.mxu0 %v2426_v58 }
 0x1a1   :  { %v7637_v33 = vpop.f32.mrf.mxu0  ;;  %8907 = vst [vmem:[#allocation32_spill] sm:$0xff] %v7639_v25  ;;  %5829 = vmatprep.subr.mxu0 %v2425_v44 }
 0x1a2   :  { %8906 = vst [vmem:[#allocation31_spill] sm:$0xff] %v7637_v33  ;;  %5830 = vmatpush3.msra.mxu0 %v2425_v44 }
 0x1a3   :  { %v7641_v50 = vpop.f32.mrf.mxu0  ;;  %5911 = vmatprep.subr.mxu0 %v7645_v29 }
 0x1a4   :  { %8908 = vst [vmem:[#allocation33_spill] sm:$0xff] %v7641_v50  ;;  %v7643_v41 = vpop.f32.mrf.mxu1 }
 0x1a5   :  { %8909 = vst [vmem:[#allocation34_spill] sm:$0xff] %v7643_v41 }
 0x1a6   :  { %v7650_v27 = vpop.f32.mrf.mxu1 }
 0x1a7   :  { %v7648_v2 = vpop.f32.mrf.mxu0  ;;  %8912 = vst [vmem:[#allocation37_spill] sm:$0xff] %v7650_v27 }
 0x1a8   :  { %8911 = vst [vmem:[#allocation36_spill] sm:$0xff] %v7648_v2 }
 0x1a9   :  { %v7652_v24 = vpop.f32.mrf.mxu0 }
 0x1aa   :  { %8913 = vst [vmem:[#allocation38_spill] sm:$0xff] %v7652_v24  ;;  %v7654_v36 = vpop.f32.mrf.mxu1 }
 0x1ab   :  { %8914 = vst [vmem:[#allocation39_spill] sm:$0xff] %v7654_v36 }
 0x1ac   :  { %v7656_v25 = vpop.f32.mrf.mxu1 }
 0x1ad   :  { %8915 = vst [vmem:[#allocation40_spill] sm:$0xff] %v7656_v25  ;;  %v5609_v50 = vpop.f32.mrf.mxu0 }
 0x1af   :  { %v1712_v58 = vpop.f32.mrf.mxu0 }
 0x1b0   :  { %v7658_v33 = vpop.f32.mrf.mxu1 }
 0x1b1   :  { %8916 = vst [vmem:[#allocation41_spill] sm:$0xff] %v7658_v33 }
 0x1b2   :  { %v7660_v41 = vpop.f32.mrf.mxu1  ;;  %v5612_v44 = vpop.f32.mrf.mxu0 }
 0x1b3   :  { %8917 = vst [vmem:[#allocation42_spill] sm:$0xff] %v7660_v41  ;;  %v761_v41 = vadd.f32 %v7490_v21, %v7488_v20  ;;  %v781_v21 = vadd.f32 %v7502_v48, %v7500_v26  ;;  %v801_v48 = vadd.f32 %v7510_v35, %v7508_v34  ;;  %v1215_v34 = vadd.f32 %v7544_v6, %v7540_v4 }
 0x1b4   :  { %v7662_v19 = vpop.f32.mrf.mxu0  ;;  %v7664_v29 = vpop.f32.mrf.mxu1 }
 0x1b5   :  { %8918 = vst [vmem:[#allocation43_spill] sm:$0xff] %v7662_v19  ;;  %8919 = vst [vmem:[#allocation44_spill] sm:$0xff] %v7664_v29  ;;  %v1016_v19 = vadd.f32 %v7526_v57, %v761_v41  ;;  %v1409_v4 = vadd.f32 %v7602_v28, %v1215_v34 }
 0x1b6   :  { %v7668_v27 = vpop.f32.mrf.mxu1 }
 0x1b7   :  { %v7666_v2 = vpop.f32.mrf.mxu0  ;;  %8921 = vst [vmem:[#allocation46_spill] sm:$0xff] %v7668_v27  ;;  %v771_v27 = vadd.f32 %v7496_v31, %v7494_v23  ;;  %v791_v31 = vadd.f32 %v7506_v32, %v7504_v30 }
 0x1b8   :  { %8920 = vst [vmem:[#allocation45_spill] sm:$0xff] %v7666_v2  ;;  %v7674_v25 = vpop.f32.mrf.mxu1 }
 0x1b9   :  { %v7670_v24 = vpop.f32.mrf.mxu0  ;;  %v1018_v20 = vadd.f32 %v7534_v0, %v771_v27  ;;  %v1022_v0 = vadd.f32 %v7550_v10, %v791_v31  ;;  %v821_v10 = vadd.f32 %v7518_v47, %v7516_v46  ;;  %v1219_v46 = vadd.f32 %v7560_v18, %v7556_v15  ;;  %v8935_v31 = vld [vmem:[#allocation12_spill] sm:$0xff] }
 0x1ba   :  { %8922 = vst [vmem:[#allocation47_spill] sm:$0xff] %v7670_v24  ;;  %v7683_v29 = vpop.f32.mrf.mxu1  ;;  %v8927_v15 = vld [vmem:[#allocation42_spill] sm:$0xff] }
 0x1bb   :  { %v7672_v36 = vpop.f32.mrf.mxu0  ;;  %v1212_v26 = vadd.f32 %v7538_v3, %v1018_v20  ;;  %v8932_v20 = vld [vmem:[#allocation20_spill] sm:$0xff] }
 0x1bc   :  { %8923 = vst [vmem:[#allocation48_spill] sm:$0xff] %v7672_v36  ;;  %v1211_v36 = vadd.f32 %v7528_v60, %v7524_v56  ;;  %v7697_v57 = vpop.f32.mrf.mxu1  ;;  %v1020_v56 = vadd.f32 %v7542_v5, %v781_v21 }
 0x1bd   :  { %v7676_v7 = vpop.f32.mrf.mxu0 }
 0x1be   :  { %8924 = vst [vmem:[#allocation49_spill] sm:$0xff] %v7676_v7  ;;  %v1210_v7 = vadd.f32 %v7530_v62, %v1016_v19  ;;  %v1213_v62 = vadd.f32 %v7536_v1, %v7532_v63  ;;  %v811_v63 = vadd.f32 %v7514_v42, %v7512_v39  ;;  %v1214_v35 = vadd.f32 %v7546_v8, %v1020_v56 }
 0x1bf   :  { %v7680_v33 = vpop.f32.mrf.mxu0  ;;  %v1024_v1 = vadd.f32 %v7558_v16, %v801_v48  ;;  %v1217_v39 = vadd.f32 %v7552_v11, %v7548_v9  ;;  %v1216_v42 = vadd.f32 %v7554_v13, %v1022_v0  ;;  %v1221_v11 = vadd.f32 %v7568_v40, %v7564_v17  ;;  %v8937_v0 = vld [vmem:[#allocation22_spill] sm:$0xff] }
 0x1c0   :  { %v1404_v23 = vadd.f32 %v7590_v43, %v1210_v7  ;;  %v1407_v32 = vadd.f32 %v7594_v51, %v1213_v62  ;;  %v1406_v7 = vadd.f32 %v7598_v61, %v1212_v26  ;;  %v1408_v6 = vadd.f32 %v7606_v54, %v1214_v35  ;;  %v8926_v54 = vld [vmem:[#allocation41_spill] sm:$0xff]  ;;  %v8940_v35 = vld [vmem:[#allocation14_spill] sm:$0xff] }
 0x1c1   :  { %v7685_v2 = vpop.f32.mrf.mxu0  ;;  %v1026_v47 = vadd.f32 %v7566_v22, %v811_v63  ;;  %v1218_v9 = vadd.f32 %v7562_v14, %v1024_v1  ;;  %v1028_v13 = vadd.f32 %v7574_v49, %v821_v10  ;;  %v8928_v22 = vld [vmem:[#allocation43_spill] sm:$0xff]  ;;  %v1410_v17 = vadd.f32 %v8932_v20, %v1216_v42  ;;  %v8936_v26 = vld [vmem:[#allocation13_spill] sm:$0xff] }
 0x1c2   :  { %8925 = vst [vmem:[#allocation50_spill] sm:$0xff] %v7685_v2  ;;  %v1405_v2 = vadd.f32 %v7588_v37, %v1211_v36  ;;  %v7714_v37 = vpop.f32.mrf.mxu1  ;;  %v1597_v5 = vadd.f32 %v7596_v52, %v1404_v23  ;;  %v8931_v14 = vld [vmem:[#allocation19_spill] sm:$0xff] }
 0x1c3   :  { %v7689_v24 = vpop.f32.mrf.mxu0  ;;  %v8934_v23 = vld [vmem:[#allocation11_spill] sm:$0xff]  ;;  %v1222_v48 = vadd.f32 %v8936_v26, %v1028_v13  ;;  %v8947_v13 = vld [vmem:[#allocation24_spill] sm:$0xff] }
 0x1c4   :  { %v1598_v30 = vadd.f32 %v7592_v45, %v1405_v2  ;;  %v831_v45 = vadd.f32 %v7522_v55, %v7520_v53  ;;  %v1791_v52 = vadd.f32 %v1712_v58, %v1597_v5  ;;  %v7739_v8 = vpop.f32.mrf.mxu1  ;;  %v1600_v53 = vadd.f32 %v7600_v12, %v1407_v32  ;;  %v8929_v12 = vld [vmem:[#allocation17_spill] sm:$0xff]  ;;  %v8941_v1 = vld [vmem:[#allocation15_spill] sm:$0xff] }
 0x1c5   :  { %v7699_v41 = vpop.f32.mrf.mxu0  ;;  %v1599_v55 = vadd.f32 %v7604_v38, %v1406_v7  ;;  %v1602_v2 = vadd.f32 %v8929_v12, %v1409_v4  ;;  %v8930_v38 = vld [vmem:[#allocation18_spill] sm:$0xff]  ;;  %v1601_v58 = vadd.f32 %v8931_v14, %v1408_v6  ;;  %v8938_v32 = vld [vmem:[#allocation45_spill] sm:$0xff]  ;;  %v8939_v7 = vld [vmem:[#allocation47_spill] sm:$0xff]  ;;  %v1225_v10 = vadd.f32 %v8941_v1, %v8940_v35 }
 0x1c6   :  { %v1792_v51 = vadd.f32 %v5609_v50, %v1598_v30  ;;  %v1030_v61 = vadd.f32 %v7582_v59, %v831_v45  ;;  %v1794_v27 = vadd.f32 %v5612_v44, %v1600_v53  ;;  %v1985_v18 = vadd.f32 %v8927_v15, %v1791_v52  ;;  %v7760_v40 = vpop.f32.mrf.mxu1  ;;  %v8933_v59 = vld [vmem:[#allocation10_spill] sm:$0xff]  ;;  %v8942_v45 = vld [vmem:[#allocation44_spill] sm:$0xff]  ;;  %v8950_v14 = vld [vmem:[#allocation49_spill] sm:$0xff] }
 0x1c7   :  { %v7706_v60 = vpop.f32.mrf.mxu0  ;;  %v1793_v50 = vadd.f32 %v8928_v22, %v1599_v55  ;;  %v1411_v36 = vadd.f32 %v8930_v38, %v1217_v39  ;;  %v1220_v21 = vadd.f32 %v8933_v59, %v1026_v47  ;;  %v1223_v44 = vadd.f32 %v8935_v31, %v8934_v23  ;;  %v8943_v52 = vld [vmem:[#allocation46_spill] sm:$0xff]  ;;  %v8944_v4 = vld [vmem:[#allocation16_spill] sm:$0xff]  ;;  %v8945_v47 = vld [vmem:[#allocation21_spill] sm:$0xff] }
 0x1c8   :  { %v1986_v19 = vadd.f32 %v8926_v54, %v1792_v51  ;;  %v1413_v30 = vadd.f32 %v8937_v0, %v1219_v46  ;;  %v1796_v5 = vadd.f32 %v8938_v32, %v1602_v2  ;;  %v1795_v63 = vadd.f32 %v8939_v7, %v1601_v58  ;;  %v8946_v46 = vld [vmem:[#allocation23_spill] sm:$0xff]  ;;  %v7783_v54 = vpop.f32.mrf.mxu1  ;;  %v8949_v2 = vld [vmem:[#allocation48_spill] sm:$0xff]  ;;  %v8951_v59 = vld [vmem:[#allocation26_spill] sm:$0xff] }
 0x1c9   :  { %v7716_v43 = vpop.f32.mrf.mxu0  ;;  %v1988_v51 = vadd.f32 %v8942_v45, %v1794_v27  ;;  %v1987_v39 = vadd.f32 %v8943_v52, %v1793_v50  ;;  %v1224_v6 = vadd.f32 %v8944_v4, %v1030_v61  ;;  %v1604_v53 = vadd.f32 %v8945_v47, %v1411_v36  ;;  %v8948_v61 = vld [vmem:[#allocation25_spill] sm:$0xff]  ;;  %v8952_v31 = vld [vmem:[#allocation27_spill] sm:$0xff]  ;;  %v8953_v0 = vld [vmem:[#allocation28_spill] sm:$0xff] }
 0x1ca   :  { %v1603_v55 = vadd.f32 %v8946_v46, %v1410_v17  ;;  %v1606_v50 = vadd.f32 %v8948_v61, %v1413_v30  ;;  %v1990_v12 = vadd.f32 %v7674_v25, %v1796_v5  ;;  %v1415_v23 = vadd.f32 %v8951_v59, %v1221_v11  ;;  %v1956_v25 = vpop.f32.mrf.mxu1  ;;  %v8954_v35 = vld [vmem:[#allocation31_spill] sm:$0xff]  ;;  %v8961_v59 = vld [vmem:[#allocation37_spill] sm:$0xff] }
 0x1cb   :  { %v7728_v3 = vpop.f32.mrf.mxu0  ;;  %v1798_v38 = vadd.f32 %v8949_v2, %v1604_v53  ;;  %v1414_v30 = vadd.f32 %v8953_v0, %v1220_v21  ;;  %v1417_v1 = vadd.f32 %v8954_v35, %v1223_v44  ;;  %v8956_v53 = vld [vmem:[#allocation30_spill] sm:$0xff]  ;;  %v8958_v44 = vld [vmem:[#allocation33_spill] sm:$0xff] }
 0x1cc   :  { %v1797_v58 = vadd.f32 %v8950_v14, %v1603_v55  ;;  %v1800_v45 = vadd.f32 %v7680_v33, %v1606_v50  ;;  %v1608_v46 = vadd.f32 %v8956_v53, %v1415_v23  ;;  %v8957_v55 = vld [vmem:[#allocation32_spill] sm:$0xff]  ;;  %v8959_v50 = vld [vmem:[#allocation34_spill] sm:$0xff] }
 0x1cd   :  { %v7741_v16 = vpop.f32.mrf.mxu0  ;;  %v1992_v11 = vadd.f32 %v7697_v57, %v1798_v38  ;;  %v5683_v57 = vpop.f32.mrf.mxu1 }
 0x1ce   :  { %v1994_v2 = vadd.f32 %v7739_v8, %v1800_v45  ;;  %v1802_v38 = vadd.f32 %v7689_v24, %v1608_v46  ;;  %v8963_v45 = vld [vmem:[#allocation39_spill] sm:$0xff] }
 0x1cf   :  { %v5721_v28 = vpop.f32.mrf.mxu0  ;;  %v1966_v8 = vpop.f32.mrf.mxu1 }
 0x1d0   :  { %v7765_v56 = vadd.f32 %v5721_v28, %v1986_v19  ;;  %v1412_v28 = vadd.f32 %v8947_v13, %v1218_v9  ;;  %v1989_v9 = vadd.f32 %v7683_v29, %v1795_v63  ;;  %v1607_v13 = vadd.f32 %v8957_v55, %v1414_v30 }
 0x1d1   :  { %v2099_v49 = vpop.f32.mrf.mxu0 }
 0x1d2   :  { %v7767_v62 = vadd.f32 %v2099_v49, %v1985_v18  ;;  %v2218_v15 = vmul.f32 %v7765_v56, %v7765_v56  ;;  %v1605_v26 = vadd.f32 %v8952_v31, %v1412_v28  ;;  %v1416_v28 = vadd.f32 %v8958_v44, %v1222_v48  ;;  %v8962_v31 = vld [vmem:[#allocation38_spill] sm:$0xff] }
 0x1d3   :  { %v5724_v34 = vpop.f32.mrf.mxu0 }
 0x1d4   :  { %v2217_v42 = vmul.f32 %v7767_v62, %v7767_v62  ;;  %v2196_v27 = vadd.f32 %v7765_v56, %v7767_v62  ;;  %v7789_v18 = vadd.f32 %v5724_v34, %v1988_v51  ;;  %v8955_v51 = vld [vmem:[#allocation50_spill] sm:$0xff]  ;;  %v1609_v23 = vadd.f32 %v8961_v59, %v1416_v28 }
 0x1d5   :  { %v2109_v19 = vpop.f32.mrf.mxu0  ;;  %v1799_v21 = vadd.f32 %v8955_v51, %v1605_v26  ;;  %v1418_v26 = vadd.f32 %v8962_v31, %v1224_v6 }
 0x1d6   :  { %v7791_v22 = vadd.f32 %v2109_v19, %v1987_v39  ;;  %v2233_v20 = vadd.f32 %v2218_v15, %v2217_v42  ;;  %v2220_v29 = vmul.f32 %v7789_v18, %v7789_v18  ;;  %v1991_v39 = vadd.f32 %v7714_v37, %v1797_v58 }
 0x1d7   :  { %v5727_v36 = vpop.f32.mrf.mxu0  ;;  %v1993_v48 = vadd.f32 %v7760_v40, %v1799_v21  ;;  %v8964_v21 = vld [vmem:[#allocation40_spill] sm:$0xff] }
 0x1d8   :  { %v2197_v17 = vadd.f32 %v2196_v27, %v7791_v22  ;;  %v2219_v49 = vmul.f32 %v7791_v22, %v7791_v22  ;;  %v7804_v32 = vadd.f32 %v5727_v36, %v1990_v12  ;;  %v1610_v12 = vadd.f32 %v8959_v50, %v1417_v1 }
 0x1d9   :  { %v2119_v5 = vpop.f32.mrf.mxu0  ;;  %v1801_v36 = vadd.f32 %v7699_v41, %v1607_v13 }
 0x1da   :  { %v2234_v7 = vadd.f32 %v2233_v20, %v2219_v49  ;;  %v7808_v63 = vadd.f32 %v2119_v5, %v1989_v9  ;;  %v2198_v34 = vadd.f32 %v2197_v17, %v7789_v18  ;;  %v2222_v33 = vmul.f32 %v7804_v32, %v7804_v32  ;;  %v8960_v17 = vld [vmem:[#allocation36_spill] sm:$0xff] }
 0x1db   :  { %v5730_v52 = vpop.f32.mrf.mxu0  ;;  %v1419_v49 = vadd.f32 %v8960_v17, %v1225_v10  ;;  %v1804_v10 = vadd.f32 %v7706_v60, %v1610_v12  ;;  %v1995_v6 = vadd.f32 %v1956_v25, %v1801_v36 }
 0x1dc   :  { %v2199_v42 = vadd.f32 %v2198_v34, %v7808_v63  ;;  %v2221_v4 = vmul.f32 %v7808_v63, %v7808_v63  ;;  %v2235_v47 = vadd.f32 %v2234_v7, %v2220_v29  ;;  %v7824_v27 = vadd.f32 %v5730_v52, %v1992_v11 }
 0x1dd   :  { %v2129_v19 = vpop.f32.mrf.mxu0  ;;  %v1996_v29 = vadd.f32 %v7783_v54, %v1802_v38  ;;  %v1803_v7 = vadd.f32 %v7716_v43, %v1609_v23  ;;  %v1612_v51 = vadd.f32 %v8963_v45, %v1419_v49  ;;  %v1611_v52 = vadd.f32 %v8964_v21, %v1418_v26 }
 0x1de   :  { %v2236_v15 = vadd.f32 %v2235_v47, %v2221_v4  ;;  %v7826_v37 = vadd.f32 %v2129_v19, %v1991_v39  ;;  %v2200_v61 = vadd.f32 %v2199_v42, %v7804_v32  ;;  %v2224_v40 = vmul.f32 %v7824_v27, %v7824_v27  ;;  %v5686_v39 = vpop.f32.mrf.mxu1 }
 0x1df   :  { %v5733_v9 = vpop.f32.mrf.mxu0  ;;  %v1998_v47 = vadd.f32 %v5683_v57, %v1804_v10  ;;  %v1806_v53 = vadd.f32 %v7728_v3, %v1612_v51  ;;  %v1997_v46 = vadd.f32 %v1966_v8, %v1803_v7  ;;  %v1805_v13 = vadd.f32 %v7741_v16, %v1611_v52 }
 0x1e0   :  { %v2201_v14 = vadd.f32 %v2200_v61, %v7826_v37  ;;  %v2223_v58 = vmul.f32 %v7826_v37, %v7826_v37  ;;  %v2237_v20 = vadd.f32 %v2236_v15, %v2222_v33  ;;  %v7840_v0 = vadd.f32 %v5733_v9, %v1994_v2  ;;  %v1976_v19 = vpop.f32.mrf.mxu1 }
 0x1e1   :  { %v2139_v24 = vpop.f32.mrf.mxu0  ;;  %v2000_v2 = vadd.f32 %v5686_v39, %v1806_v53  ;;  %v1999_v38 = vadd.f32 %v1976_v19, %v1805_v13 }
 0x1e2   :  { %v2238_v41 = vadd.f32 %v2237_v20, %v2223_v58  ;;  %v7844_v30 = vadd.f32 %v2139_v24, %v1993_v48  ;;  %v2202_v5 = vadd.f32 %v2201_v14, %v7824_v27  ;;  %v2226_v54 = vmul.f32 %v7840_v0, %v7840_v0 }
 0x1e3   :  { %v5736_v34 = vpop.f32.mrf.mxu0 }
 0x1e4   :  { %v2203_v35 = vadd.f32 %v2202_v5, %v7844_v30  ;;  %v2225_v1 = vmul.f32 %v7844_v30, %v7844_v30  ;;  %v2239_v11 = vadd.f32 %v2238_v41, %v2224_v40  ;;  %v7857_v4 = vadd.f32 %v5736_v34, %v1996_v29 }
 0x1e5   :  { %v2149_v42 = vpop.f32.mrf.mxu0 }
 0x1e6   :  { %v2240_v60 = vadd.f32 %v2239_v11, %v2225_v1  ;;  %v7859_v43 = vadd.f32 %v2149_v42, %v1995_v6  ;;  %v2204_v25 = vadd.f32 %v2203_v35, %v7840_v0  ;;  %v2228_v50 = vmul.f32 %v7857_v4, %v7857_v4 }
 0x1e7   :  { %v5739_v55 = vpop.f32.mrf.mxu0 }
 0x1e8   :  { %v2205_v44 = vadd.f32 %v2204_v25, %v7859_v43  ;;  %v2227_v28 = vmul.f32 %v7859_v43, %v7859_v43  ;;  %v2241_v33 = vadd.f32 %v2240_v60, %v2226_v54  ;;  %v7867_v15 = vadd.f32 %v5739_v55, %v1998_v47 }
 0x1e9   :  { %v2159_v61 = vpop.f32.mrf.mxu0 }
 0x1ea   :  { %v2242_v57 = vadd.f32 %v2241_v33, %v2227_v28  ;;  %v7871_v12 = vadd.f32 %v2159_v61, %v1997_v46  ;;  %v2206_v3 = vadd.f32 %v2205_v44, %v7857_v4  ;;  %v2230_v14 = vmul.f32 %v7867_v15, %v7867_v15  ;;  %v7917_v33 = vld [vmem:[%s8874_s2] ss:$0 sm:$0xff] }
 0x1eb   :  { %v5742_v16 = vpop.f32.mrf.mxu0 }
 0x1ec   :  { %v2207_v48 = vadd.f32 %v2206_v3, %v7871_v12  ;;  %v2229_v9 = vmul.f32 %v7871_v12, %v7871_v12  ;;  %v2243_v36 = vadd.f32 %v2242_v57, %v2228_v50  ;;  %v7879_v17 = vadd.f32 %v5742_v16, %v2000_v2 }
 0x1ed   :  { %v2169_v58 = vpop.f32.mrf.mxu0 }
 0x1ee   :  { %v2244_v20 = vadd.f32 %v2243_v36, %v2229_v9  ;;  %v2192_v49 = vadd.f32 %v2169_v58, %v1999_v38  ;;  %v2208_v59 = vadd.f32 %v2207_v48, %v7867_v15  ;;  %v2232_v8 = vmul.f32 %v7879_v17, %v7879_v17 }
 0x1f0   :  { %v2209_v23 = vadd.f32 %v2208_v59, %v2192_v49  ;;  %v2231_v31 = vmul.f32 %v2192_v49, %v2192_v49  ;;  %v2245_v26 = vadd.f32 %v2244_v20, %v2230_v14 }
 0x1f2   :  { %v2210_v24 = vadd.f32 %v2209_v23, %v7879_v17  ;;  %v2246_v40 = vadd.f32 %v2245_v26, %v2231_v31 }
 0x1f4   :  { %v2211_v41 = vrot.slane %v2210_v24, 4  ;;  %v2247_v5 = vadd.f32 %v2246_v40, %v2232_v8 }
 0x1f6   :  { %v2212_v29 = vadd.f32 %v2211_v41, %v2210_v24  ;;  %v2248_v10 = vrot.slane %v2247_v5, 4 }
 0x1f8   :  { %v2213_v7 = vrot.slane %v2212_v29, 2  ;;  %v2249_v34 = vadd.f32 %v2248_v10, %v2247_v5 }
 0x1fa   :  { %v2214_v6 = vadd.f32 %v2213_v7, %v2212_v29  ;;  %v2250_v35 = vrot.slane %v2249_v34, 2  ;;  %v2793_v7 = vld [vmem:[#allocation4 + $0x170] sm:$0xff] }
 0x1fc   :  { %v2215_v1 = vrot.slane %v2214_v6, 1  ;;  %v2251_v11 = vadd.f32 %v2250_v35, %v2249_v34 }
 0x1fe   :  { %v2216_v45 = vadd.f32 %v2215_v1, %v2214_v6  ;;  %v2252_v51 = vrot.slane %v2251_v11, 1 }
 0x200   :  { %v2253_v21 = vadd.f32 %v2252_v51, %v2251_v11  ;;  %v7885_v52 = vmul.f32 0.0078125, %v2216_v45 }
 0x202   :  { %v2255_v39 = vmul.f32 0.0078125, %v2253_v21  ;;  %v2256_v54 = vmul.f32 %v7885_v52, %v7885_v52  ;;  %v2259_v42 = vsub.f32 %v7765_v56, %v7885_v52  ;;  %v2261_v60 = vsub.f32 %v7789_v18, %v7885_v52 }
 0x203   :  { %v2263_v47 = vsub.f32 %v7804_v32, %v7885_v52  ;;  %v2267_v53 = vsub.f32 %v7840_v0, %v7885_v52  ;;  %v2269_v46 = vsub.f32 %v7857_v4, %v7885_v52  ;;  %v2271_v13 = vsub.f32 %v7867_v15, %v7885_v52 }
 0x204   :  { %v2257_v25 = vsub.f32 %v2255_v39, %v2256_v54  ;;  %v2265_v56 = vsub.f32 %v7824_v27, %v7885_v52  ;;  %v2273_v18 = vsub.f32 %v7879_v17, %v7885_v52  ;;  %v2272_v44 = vsub.f32 %v2192_v49, %v7885_v52  ;;  %v8965_v39 = vld [vmem:[#allocation29_spill] sm:$0xff]  ;;  %v2792_v54 = vld [vmem:[#allocation4 + $0x168] sm:$0xff] }
 0x205   :  { %v2258_v32 = vsub.f32 %v7767_v62, %v7885_v52  ;;  %v2260_v0 = vsub.f32 %v7791_v22, %v7885_v52  ;;  %v2262_v4 = vsub.f32 %v7808_v63, %v7885_v52  ;;  %v2264_v19 = vsub.f32 %v7826_v37, %v7885_v52  ;;  %v7934_v37 = vld [vmem:[%s8875_s3] ss:$0 sm:$0xff] }
 0x206   :  { %v2274_v55 = vadd.f32 1e-05, %v2257_v25  ;;  %v2266_v61 = vsub.f32 %v7844_v30, %v7885_v52  ;;  %v2268_v62 = vsub.f32 %v7859_v43, %v7885_v52  ;;  %v2270_v22 = vsub.f32 %v7871_v12, %v7885_v52  ;;  %v2790_v52 = vld [vmem:[#allocation4 + $0x158] sm:$0xff] }
 0x208   :  { %6340 = vrsqrt.f32 %v2274_v55 }
 0x215   :  { %v7912_v28 = vpop.eup %6340 }
 0x216   :  { %v2290_v63 = vmul.f32 %v7912_v28, %v2272_v44  ;;  %v2276_v50 = vmul.f32 %v7912_v28, %v2258_v32  ;;  %v2277_v57 = vmul.f32 %v7912_v28, %v2259_v42  ;;  %v2278_v3 = vmul.f32 %v7912_v28, %v2260_v0  ;;  %v2791_v44 = vld [vmem:[#allocation4 + $0x160] sm:$0xff] }
 0x217   :  { %v2279_v30 = vmul.f32 %v7912_v28, %v2261_v60  ;;  %v2280_v43 = vmul.f32 %v7912_v28, %v2262_v4  ;;  %v2281_v2 = vmul.f32 %v7912_v28, %v2263_v47  ;;  %v2282_v12 = vmul.f32 %v7912_v28, %v2264_v19 }
 0x218   :  { %v2312_v16 = vmul.f32 %v7917_v33, %v2290_v63  ;;  %v2298_v38 = vmul.f32 %v7917_v33, %v2276_v50  ;;  %v2299_v48 = vmul.f32 %v7917_v33, %v2277_v57  ;;  %v2300_v9 = vmul.f32 %v7917_v33, %v2278_v3  ;;  %v2986_v57 = vld [vmem:[#allocation4 + $0x1f0] sm:$0xff] }
 0x219   :  { %v2301_v36 = vmul.f32 %v7917_v33, %v2279_v30  ;;  %v2302_v14 = vmul.f32 %v7917_v33, %v2280_v43  ;;  %v2303_v58 = vmul.f32 %v7917_v33, %v2281_v2  ;;  %v2304_v20 = vmul.f32 %v7917_v33, %v2282_v12 }
 0x21a   :  { %v7949_v49 = vadd.f32 %v7934_v37, %v2312_v16  ;;  %v2320_v59 = vadd.f32 %v7934_v37, %v2298_v38  ;;  %v2321_v23 = vadd.f32 %v7934_v37, %v2299_v48  ;;  %v2322_v31 = vadd.f32 %v7934_v37, %v2300_v9  ;;  %v8966_v16 = vld [vmem:[#allocation35_spill] sm:$0xff]  ;;  %v2984_v9 = vld [vmem:[#allocation4 + $0x1e0] sm:$0xff] }
 0x21b   :  { %v2323_v26 = vadd.f32 %v7934_v37, %v2301_v36  ;;  %v2324_v8 = vadd.f32 %v7934_v37, %v2302_v14  ;;  %v2325_v24 = vadd.f32 %v7934_v37, %v2303_v58  ;;  %v2326_v40 = vadd.f32 %v7934_v37, %v2304_v20  ;;  %v2985_v38 = vld [vmem:[#allocation4 + $0x1e8] sm:$0xff]  ;;  %v2789_v58 = vld [vmem:[#allocation4 + $0x150] sm:$0xff] }
 0x21c   :  { %v2350_v41 = vmax.f32 %v7949_v49, 0.0  ;;  %v7959_v5 = vmax.f32 %v2320_v59, 0.0  ;;  %v7961_v29 = vmax.f32 %v2321_v23, 0.0  ;;  %v7963_v10 = vmax.f32 %v2322_v31, 0.0  ;;  %v2982_v59 = vld [vmem:[#allocation4 + $0x1d0] sm:$0xff]  ;;  %v2788_v31 = vld [vmem:[#allocation4 + $0x148] sm:$0xff] }
 0x21d   :  { %v7965_v34 = vmax.f32 %v2323_v26, 0.0  ;;  %v7967_v6 = vmax.f32 %v2324_v8, 0.0  ;;  %v7969_v35 = vmax.f32 %v2325_v24, 0.0  ;;  %v7971_v1 = vmax.f32 %v2326_v40, 0.0  ;;  %v2981_v26 = vld [vmem:[#allocation4 + $0x1c8] sm:$0xff]  ;;  %v2787_v24 = vld [vmem:[#allocation4 + $0x140] sm:$0xff] }
 0x21e   :  { %2407 = vst [vmem:[#allocation3 + $0x111] sm:$0xff] %v2350_v41  ;;  %2393 = vst [vmem:[#allocation3 + $0x11] sm:$0xff] %v7959_v5  ;;  %5776 = vmatmul.mubr.f32.vlgmr.msra.gmra.mxu1 %v7959_v5  ;;  %v2284_v11 = vmul.f32 %v7912_v28, %v2266_v61  ;;  %v2285_v45 = vmul.f32 %v7912_v28, %v2267_v53  ;;  %v2286_v51 = vmul.f32 %v7912_v28, %v2268_v62  ;;  %v2980_v40 = vld [vmem:[#allocation4 + $0x1c0] sm:$0xff] }
 0x21f   :  { %2394 = vst [vmem:[#allocation3 + $0x21] sm:$0xff] %v7961_v29  ;;  %2395 = vst [vmem:[#allocation3 + $0x31] sm:$0xff] %v7963_v10  ;;  %v2287_v21 = vmul.f32 %v7912_v28, %v2269_v46  ;;  %5778 = vmatprep.mubr.f32.mxu1 %v7961_v29  ;;  %5856 = vmatpush3.msra.mxu1 %v8965_v39  ;;  %v2288_v42 = vmul.f32 %v7912_v28, %v2270_v22  ;;  %v2785_v39 = vld [vmem:[#allocation4 + $0x130] sm:$0xff] }
 0x220   :  { %2396 = vst [vmem:[#allocation3 + $0x41] sm:$0xff] %v7965_v34  ;;  %2397 = vst [vmem:[#allocation3 + $0x51] sm:$0xff] %v7967_v6  ;;  %v2289_v60 = vmul.f32 %v7912_v28, %v2271_v13  ;;  %v2283_v25 = vmul.f32 %v7912_v28, %v2265_v56  ;;  %5857 = vmatprep.subr.mxu1 %v2793_v7  ;;  %v2306_v47 = vmul.f32 %v7917_v33, %v2284_v11  ;;  %v2786_v11 = vld [vmem:[#allocation4 + $0x138] sm:$0xff] }
 0x221   :  { %2398 = vst [vmem:[#allocation3 + $0x61] sm:$0xff] %v7969_v35  ;;  %2399 = vst [vmem:[#allocation3 + $0x71] sm:$0xff] %v7971_v1  ;;  %v2307_v53 = vmul.f32 %v7917_v33, %v2285_v45  ;;  %v2308_v46 = vmul.f32 %v7917_v33, %v2286_v51  ;;  %v2309_v55 = vmul.f32 %v7917_v33, %v2287_v21  ;;  %5858 = vmatpush3.msra.mxu1 %v2793_v7  ;;  %v2449_v7 = vld [vmem:[#allocation3 + $0xa1] sm:$0xff]  ;;  %v2979_v51 = vld [vmem:[#allocation4 + $0x1b8] sm:$0xff] }
 0x222   :  { %v2310_v15 = vmul.f32 %v7917_v33, %v2288_v42  ;;  %v2311_v13 = vmul.f32 %v7917_v33, %v2289_v60  ;;  %v2305_v32 = vmul.f32 %v7917_v33, %v2283_v25  ;;  %v2291_v27 = vmul.f32 %v7912_v28, %v2273_v18  ;;  %5779 = vmatmul.mubr.f32.gmra.mxu1 %v7963_v10  ;;  %v8069_v45 = vld [vmem:[#allocation3] sm:$0xff]  ;;  %v2978_v42 = vld [vmem:[#allocation4 + $0x1b0] sm:$0xff]  ;;  %v2784_v60 = vld [vmem:[#allocation4 + $0x128] sm:$0xff] }
 0x223   :  { %5859 = vmatprep.subr.mxu1 %v2792_v54  ;;  %v2328_v56 = vadd.f32 %v7934_v37, %v2306_v47  ;;  %v2329_v0 = vadd.f32 %v7934_v37, %v2307_v53  ;;  %v2330_v4 = vadd.f32 %v7934_v37, %v2308_v46  ;;  %5781 = vmatprep.mubr.f32.mxu1 %v7965_v34  ;;  %v2977_v25 = vld [vmem:[#allocation4 + $0x1a8] sm:$0xff]  ;;  %v2783_v53 = vld [vmem:[#allocation4 + $0x120] sm:$0xff] }
 0x224   :  { %5860 = vmatpush3.msra.mxu1 %v2792_v54  ;;  %v2331_v19 = vadd.f32 %v7934_v37, %v2309_v55  ;;  %v2332_v61 = vadd.f32 %v7934_v37, %v2310_v15  ;;  %v2333_v17 = vadd.f32 %v7934_v37, %v2311_v13  ;;  %v2327_v22 = vadd.f32 %v7934_v37, %v2305_v32  ;;  %v2976_v55 = vld [vmem:[#allocation4 + $0x1a0] sm:$0xff]  ;;  %v2975_v15 = vld [vmem:[#allocation4 + $0x198] sm:$0xff]  ;;  %v2781_v32 = vld [vmem:[#allocation4 + $0x110] sm:$0xff] }
 0x225   :  { %5861 = vmatprep.subr.mxu1 %v2791_v44  ;;  %v8017_v18 = vmax.f32 %v2328_v56, 0.0  ;;  %v8019_v28 = vmax.f32 %v2329_v0, 0.0  ;;  %v8021_v62 = vmax.f32 %v2330_v4, 0.0  ;;  %v8024_v63 = vld [vmem:[#allocation3 + $0x10] sm:$0xff]  ;;  %v2313_v2 = vmul.f32 %v7917_v33, %v2291_v27  ;;  %v2780_v0 = vld [vmem:[#allocation4 + $0x108] sm:$0xff] }
 0x226   :  { %v8026_v50 = vld [vmem:[#allocation3 + $0x20] sm:$0xff]  ;;  %5862 = vmatpush3.msra.mxu1 %v2791_v44  ;;  %v8028_v3 = vmax.f32 %v2331_v19, 0.0  ;;  %v8030_v30 = vmax.f32 %v2332_v61, 0.0  ;;  %v8032_v43 = vmax.f32 %v2333_v17, 0.0  ;;  %5832 = vmatmul.mubr.f32.vlgmr.msra.gmra.mxu0 %v8024_v63  ;;  %v8040_v12 = vmax.f32 %v2327_v22, 0.0  ;;  %v8049_v48 = vld [vmem:[#allocation3 + $0x30] sm:$0xff] }
 0x227   :  { %5782 = vmatmul.mubr.f32.gmra.mxu1 %v7967_v6  ;;  %2401 = vst [vmem:[#allocation3 + $0xb1] sm:$0xff] %v8017_v18  ;;  %2402 = vst [vmem:[#allocation3 + $0xc1] sm:$0xff] %v8019_v28  ;;  %5834 = vmatprep.mubr.f32.mxu0 %v8026_v50  ;;  %v2335_v33 = vadd.f32 %v7934_v37, %v2313_v2  ;;  %v8055_v14 = vld [vmem:[#allocation3 + $0x40] sm:$0xff]  ;;  %v2983_v37 = vld [vmem:[#allocation4 + $0x1d8] sm:$0xff] }
 0x228   :  { %2403 = vst [vmem:[#allocation3 + $0xd1] sm:$0xff] %v8021_v62  ;;  %5912 = vmatpush3.msra.mxu0 %v8966_v16  ;;  %2404 = vst [vmem:[#allocation3 + $0xe1] sm:$0xff] %v8028_v3  ;;  %5863 = vmatprep.subr.mxu1 %v2790_v52  ;;  %v8059_v20 = vld [vmem:[#allocation3 + $0x50] sm:$0xff]  ;;  %v8062_v23 = vld [vmem:[#allocation3 + $0x60] sm:$0xff] }
 0x229   :  { %2405 = vst [vmem:[#allocation3 + $0xf1] sm:$0xff] %v8030_v30  ;;  %2406 = vst [vmem:[#allocation3 + $0x101] sm:$0xff] %v8032_v43  ;;  %5913 = vmatprep.subr.mxu0 %v2986_v57  ;;  %5784 = vmatprep.mubr.f32.mxu1 %v7969_v35  ;;  %v8052_v36 = vmax.f32 %v2335_v33, 0.0  ;;  %v8066_v8 = vld [vmem:[#allocation3 + $0x70] sm:$0xff]  ;;  %v2782_v44 = vld [vmem:[#allocation4 + $0x118] sm:$0xff] }
 0x22a   :  { %2400 = vst [vmem:[#allocation3 + $0x81] sm:$0xff] %v8040_v12  ;;  %5914 = vmatpush3.msra.mxu0 %v2986_v57  ;;  %5864 = vmatpush3.msra.mxu1 %v2790_v52  ;;  %v2974_v56 = vld [vmem:[#allocation4 + $0x190] sm:$0xff]  ;;  %v2973_v4 = vld [vmem:[#allocation4 + $0x188] sm:$0xff]  ;;  %v2779_v61 = vld [vmem:[#allocation4 + $0x100] sm:$0xff] }
 0x22b   :  { %5835 = vmatmul.mubr.f32.gmra.mxu0 %v8049_v48  ;;  %5915 = vmatprep.subr.mxu0 %v2985_v38  ;;  %2408 = vst [vmem:[#allocation3 + $0x121] sm:$0xff] %v8052_v36  ;;  %v8098_v19 = vld [vmem:[#allocation3 + $0x110] sm:$0xff]  ;;  %v2972_v17 = vld [vmem:[#allocation4 + $0x180] sm:$0xff]  ;;  %v3180_v22 = vld [vmem:[#allocation4 + $0x278] sm:$0xff] }
 0x22c   :  { %5837 = vmatprep.mubr.f32.mxu0 %v8055_v14  ;;  %5916 = vmatpush3.msra.mxu0 %v2985_v38  ;;  %v2763_v52 = vld [vmem:[#allocation3 + $0x2] sm:$0xff]  ;;  %v8102_v49 = vld [vmem:[#allocation3 + $0x12] sm:$0xff] }
 0x22d   :  { %5917 = vmatprep.subr.mxu0 %v2984_v9  ;;  %5865 = vmatprep.subr.mxu1 %v2789_v58  ;;  %v8106_v57 = vld [vmem:[#allocation3 + $0x22] sm:$0xff]  ;;  %v3179_v2 = vld [vmem:[#allocation4 + $0x270] sm:$0xff] }
 0x22e   :  { %5918 = vmatpush3.msra.mxu0 %v2984_v9  ;;  %5866 = vmatpush3.msra.mxu1 %v2789_v58  ;;  %v8073_v21 = vld [vmem:[#allocation3 + $0xb0] sm:$0xff]  ;;  %v8077_v54 = vld [vmem:[#allocation3 + $0xc0] sm:$0xff]  ;;  %v3178_v16 = vld [vmem:[#allocation4 + $0x268] sm:$0xff] }
 0x22f   :  { %5838 = vmatmul.mubr.f32.gmra.mxu0 %v8059_v20  ;;  %5919 = vmatprep.subr.mxu0 %v2983_v37  ;;  %v8081_v47 = vld [vmem:[#allocation3 + $0xd0] sm:$0xff]  ;;  %v8085_v46 = vld [vmem:[#allocation3 + $0xe0] sm:$0xff]  ;;  %v3371_v33 = vld [vmem:[#allocation4 + $0x2e8] sm:$0xff] }
 0x230   :  { %5840 = vmatprep.mubr.f32.mxu0 %v8062_v23  ;;  %5920 = vmatpush3.msra.mxu0 %v2983_v37  ;;  %v8089_v13 = vld [vmem:[#allocation3 + $0xf0] sm:$0xff]  ;;  %v8093_v27 = vld [vmem:[#allocation3 + $0x100] sm:$0xff]  ;;  %v3176_v58 = vld [vmem:[#allocation4 + $0x258] sm:$0xff] }
 0x231   :  { %5921 = vmatprep.subr.mxu0 %v2982_v59  ;;  %5785 = vmatmul.mubr.f32.gmra.mxu1 %v7971_v1  ;;  %v8110_v38 = vld [vmem:[#allocation3 + $0x32] sm:$0xff]  ;;  %v3177_v9 = vld [vmem:[#allocation4 + $0x260] sm:$0xff] }
 0x232   :  { %5922 = vmatpush3.msra.mxu0 %v2982_v59  ;;  %5867 = vmatprep.subr.mxu1 %v2788_v31  ;;  %v8118_v37 = vld [vmem:[#allocation3 + $0x52] sm:$0xff] }
 0x233   :  { %5841 = vmatmul.mubr.f32.gmra.mxu0 %v8066_v8  ;;  %5923 = vmatprep.subr.mxu0 %v2981_v26  ;;  %v3369_v59 = vld [vmem:[#allocation4 + $0x2d8] sm:$0xff] }
 0x234   :  { %5868 = vmatpush3.msra.mxu1 %v2788_v31  ;;  %5924 = vmatpush3.msra.mxu0 %v2981_v26  ;;  %v3175_v31 = vld [vmem:[#allocation4 + $0x250] sm:$0xff] }
 0x235   :  { %5869 = vmatprep.subr.mxu1 %v2787_v24  ;;  %5925 = vmatprep.subr.mxu0 %v2980_v40  ;;  %v3368_v26 = vld [vmem:[#allocation4 + $0x2d0] sm:$0xff] }
 0x236   :  { %5787 = vmatprep.mubr.f32.mxu1 %v2449_v7  ;;  %5843 = vmatprep.mubr.f32.mxu0 %v8069_v45  ;;  %v3367_v7 = vld [vmem:[#allocation4 + $0x2c8] sm:$0xff] }
 0x237   :  { %5870 = vmatpush3.msra.mxu1 %v2787_v24  ;;  %5926 = vmatpush3.msra.mxu0 %v2980_v40  ;;  %v3174_v24 = vld [vmem:[#allocation4 + $0x248] sm:$0xff]  ;;  %v8126_v40 = vld [vmem:[#allocation3 + $0x72] sm:$0xff] }
 0x238   :  { %5788 = vmatmul.mubr.f32.gmra.mxu1 %v8017_v18  ;;  %5844 = vmatmul.mubr.f32.gmra.mxu0 %v8073_v21 }
 0x239   :  { %5871 = vmatprep.subr.mxu1 %v2786_v11  ;;  %5927 = vmatprep.subr.mxu0 %v2979_v51 }
 0x23a   :  { %5790 = vmatprep.mubr.f32.mxu1 %v8019_v28  ;;  %5846 = vmatprep.mubr.f32.mxu0 %v8077_v54 }
 0x23b   :  { %5872 = vmatpush3.msra.mxu1 %v2786_v11  ;;  %5928 = vmatpush3.msra.mxu0 %v2979_v51  ;;  %v8129_v11 = vld [vmem:[#allocation3 + $0x80] sm:$0xff] }
 0x23c   :  { %5873 = vmatprep.subr.mxu1 %v2785_v39  ;;  %5929 = vmatprep.subr.mxu0 %v2978_v42  ;;  %v3173_v51 = vld [vmem:[#allocation4 + $0x240] sm:$0xff] }
 0x23d   :  { %5874 = vmatpush3.msra.mxu1 %v2785_v39  ;;  %5930 = vmatpush3.msra.mxu0 %v2978_v42  ;;  %v3366_v39 = vld [vmem:[#allocation4 + $0x2c0] sm:$0xff] }
 0x23e   :  { %5791 = vmatmul.mubr.f32.gmra.mxu1 %v8021_v62  ;;  %5847 = vmatmul.mubr.f32.gmra.mxu0 %v8081_v47  ;;  %v2771_v42 = vld [vmem:[#allocation3 + $0xa2] sm:$0xff] }
 0x23f   :  { %5875 = vmatprep.subr.mxu1 %v2784_v60  ;;  %5931 = vmatprep.subr.mxu0 %v2977_v25 }
 0x240   :  { %5793 = vmatprep.mubr.f32.mxu1 %v8028_v3  ;;  %5849 = vmatprep.mubr.f32.mxu0 %v8085_v46 }
 0x241   :  { %5876 = vmatpush3.msra.mxu1 %v2784_v60  ;;  %5932 = vmatpush3.msra.mxu0 %v2977_v25  ;;  %v3172_v60 = vld [vmem:[#allocation4 + $0x238] sm:$0xff] }
 0x242   :  { %5877 = vmatprep.subr.mxu1 %v2783_v53  ;;  %5933 = vmatprep.subr.mxu0 %v2976_v55  ;;  %v8133_v25 = vld [vmem:[#allocation3 + $0xb2] sm:$0xff] }
 0x243   :  { %5878 = vmatpush3.msra.mxu1 %v2783_v53  ;;  %5934 = vmatpush3.msra.mxu0 %v2976_v55  ;;  %v3365_v53 = vld [vmem:[#allocation4 + $0x2b8] sm:$0xff]  ;;  %v8137_v55 = vld [vmem:[#allocation3 + $0xc2] sm:$0xff] }
 0x244   :  { %5794 = vmatmul.mubr.f32.gmra.mxu1 %v8030_v30  ;;  %5850 = vmatmul.mubr.f32.gmra.mxu0 %v8089_v13 }
 0x245   :  { %5879 = vmatprep.subr.mxu1 %v2782_v44  ;;  %5935 = vmatprep.subr.mxu0 %v2975_v15 }
 0x246   :  { %5796 = vmatprep.mubr.f32.mxu1 %v8032_v43  ;;  %5852 = vmatprep.mubr.f32.mxu0 %v8093_v27 }
 0x247   :  { %5880 = vmatpush3.msra.mxu1 %v2782_v44  ;;  %5936 = vmatpush3.msra.mxu0 %v2975_v15  ;;  %v3364_v44 = vld [vmem:[#allocation4 + $0x2b0] sm:$0xff]  ;;  %v3170_v15 = vld [vmem:[#allocation4 + $0x228] sm:$0xff] }
 0x248   :  { %5881 = vmatprep.subr.mxu1 %v2781_v32  ;;  %5937 = vmatprep.subr.mxu0 %v2974_v56 }
 0x249   :  { %5882 = vmatpush3.msra.mxu1 %v2781_v32  ;;  %5938 = vmatpush3.msra.mxu0 %v2974_v56  ;;  %v8141_v32 = vld [vmem:[#allocation3 + $0xd2] sm:$0xff]  ;;  %v3363_v56 = vld [vmem:[#allocation4 + $0x2a8] sm:$0xff] }
 0x24a   :  { %5797 = vmatmul.mubr.f32.gmra.mxu1 %v2350_v41  ;;  %5853 = vmatmul.mubr.f32.gmra.mxu0 %v8098_v19  ;;  %v3373_v41 = vld [vmem:[#allocation4 + $0x2f8] sm:$0xff] }
 0x24b   :  { %5883 = vmatprep.subr.mxu1 %v2780_v0  ;;  %5939 = vmatprep.subr.mxu0 %v2973_v4 }
 0x24c   :  { %5884 = vmatpush3.msra.mxu1 %v2780_v0  ;;  %5940 = vmatpush3.msra.mxu0 %v2973_v4  ;;  %v8145_v0 = vld [vmem:[#allocation3 + $0xe2] sm:$0xff] }
 0x24d   :  { %5943 = vmatprep.mubr.f32.mxu0 %v8024_v63  ;;  %5885 = vmatprep.subr.mxu1 %v2779_v61  ;;  %v3372_v63 = vld [vmem:[#allocation4 + $0x2f0] sm:$0xff]  ;;  %v3169_v4 = vld [vmem:[#allocation4 + $0x220] sm:$0xff] }
 0x24e   :  { %5941 = vmatprep.subr.mxu0 %v2972_v17  ;;  %5886 = vmatpush3.msra.mxu1 %v2779_v61  ;;  %v3362_v61 = vld [vmem:[#allocation4 + $0x2a0] sm:$0xff] }
 0x24f   :  { %5887 = vmatprep.mubr.f32.mxu1 %v2763_v52  ;;  %5942 = vmatpush3.msra.mxu0 %v2972_v17  ;;  %v3168_v17 = vld [vmem:[#allocation4 + $0x218] sm:$0xff] }
 0x250   :  { %5888 = vmatmul.mubr.f32.vlgmr.msra.gmra.mxu1 %v8102_v49  ;;  %5944 = vmatmul.mubr.f32.vlgmr.msra.gmra.mxu0 %v8026_v50  ;;  %v8114_v50 = vld [vmem:[#allocation3 + $0x42] sm:$0xff]  ;;  %v8149_v52 = vld [vmem:[#allocation3 + $0xf2] sm:$0xff] }
 0x251   :  { %5967 = vmatprep.subr.mxu1 %v3180_v22  ;;  %6023 = vmatprep.subr.mxu0 %v3373_v41 }
 0x252   :  { %5890 = vmatprep.mubr.f32.mxu1 %v8106_v57  ;;  %5946 = vmatprep.mubr.f32.mxu0 %v8049_v48  ;;  %v3370_v48 = vld [vmem:[#allocation4 + $0x2e0] sm:$0xff] }
 0x253   :  { %5968 = vmatpush3.msra.mxu1 %v3180_v22  ;;  %6024 = vmatpush3.msra.mxu0 %v3373_v41  ;;  %v3361_v22 = vld [vmem:[#allocation4 + $0x298] sm:$0xff]  ;;  %v8153_v41 = vld [vmem:[#allocation3 + $0x102] sm:$0xff] }
 0x254   :  { %5969 = vmatprep.subr.mxu1 %v3179_v2  ;;  %6025 = vmatprep.subr.mxu0 %v3372_v63 }
 0x255   :  { %5970 = vmatpush3.msra.mxu1 %v3179_v2  ;;  %6026 = vmatpush3.msra.mxu0 %v3372_v63  ;;  %v3167_v2 = vld [vmem:[#allocation4 + $0x210] sm:$0xff] }
 0x256   :  { %5891 = vmatmul.mubr.f32.gmra.mxu1 %v8110_v38  ;;  %5947 = vmatmul.mubr.f32.gmra.mxu0 %v8055_v14  ;;  %v8122_v14 = vld [vmem:[#allocation3 + $0x62] sm:$0xff]  ;;  %v3360_v63 = vld [vmem:[#allocation4 + $0x290] sm:$0xff] }
 0x257   :  { %5971 = vmatprep.subr.mxu1 %v3178_v16  ;;  %6027 = vmatprep.subr.mxu0 %v3371_v33 }
 0x258   :  { %5893 = vmatprep.mubr.f32.mxu1 %v8114_v50  ;;  %5949 = vmatprep.mubr.f32.mxu0 %v8059_v20 }
 0x259   :  { %5972 = vmatpush3.msra.mxu1 %v3178_v16  ;;  %6028 = vmatpush3.msra.mxu0 %v3371_v33  ;;  %v3166_v16 = vld [vmem:[#allocation4 + $0x208] sm:$0xff]  ;;  %v8157_v33 = vld [vmem:[#allocation3 + $0x112] sm:$0xff] }
 0x25a   :  { %5973 = vmatprep.subr.mxu1 %v3177_v9  ;;  %6029 = vmatprep.subr.mxu0 %v3370_v48 }
 0x25b   :  { %5974 = vmatpush3.msra.mxu1 %v3177_v9  ;;  %6030 = vmatpush3.msra.mxu0 %v3370_v48  ;;  %v3359_v9 = vld [vmem:[#allocation4 + $0x288] sm:$0xff]  ;;  %v8160_v48 = vld [vmem:[#allocation3 + $0x120] sm:$0xff] }
 0x25c   :  { %5894 = vmatmul.mubr.f32.gmra.mxu1 %v8118_v37  ;;  %5950 = vmatmul.mubr.f32.gmra.mxu0 %v8062_v23 }
 0x25d   :  { %5975 = vmatprep.subr.mxu1 %v3176_v58  ;;  %6031 = vmatprep.subr.mxu0 %v3369_v59 }
 0x25e   :  { %5896 = vmatprep.mubr.f32.mxu1 %v8122_v14  ;;  %5952 = vmatprep.mubr.f32.mxu0 %v8066_v8 }
 0x25f   :  { %5976 = vmatpush3.msra.mxu1 %v3176_v58  ;;  %6032 = vmatpush3.msra.mxu0 %v3369_v59  ;;  %v3165_v58 = vld [vmem:[#allocation4 + $0x200] sm:$0xff] }
 0x260   :  { %5977 = vmatprep.subr.mxu1 %v3175_v31  ;;  %6033 = vmatprep.subr.mxu0 %v3368_v26  ;;  %v3358_v59 = vld [vmem:[#allocation4 + $0x280] sm:$0xff] }
 0x261   :  { %5978 = vmatpush3.msra.mxu1 %v3175_v31  ;;  %6034 = vmatpush3.msra.mxu0 %v3368_v26  ;;  %v3567_v31 = vld [vmem:[#allocation4 + $0x378] sm:$0xff] }
 0x262   :  { %5897 = vmatmul.mubr.f32.gmra.mxu1 %v8126_v40  ;;  %5953 = vmatmul.mubr.f32.gmra.mxu0 %v8129_v11  ;;  %v3760_v26 = vld [vmem:[#allocation4 + $0x3f8] sm:$0xff] }
 0x263   :  { %5979 = vmatprep.subr.mxu1 %v3174_v24  ;;  %6035 = vmatprep.subr.mxu0 %v3367_v7 }
 0x264   :  { %5955 = vmatprep.mubr.f32.mxu0 %v8073_v21  ;;  %5980 = vmatpush3.msra.mxu1 %v3174_v24  ;;  %v3171_v21 = vld [vmem:[#allocation4 + $0x230] sm:$0xff] }
 0x265   :  { %6036 = vmatpush3.msra.mxu0 %v3367_v7  ;;  %5981 = vmatprep.subr.mxu1 %v3173_v51  ;;  %v3566_v24 = vld [vmem:[#allocation4 + $0x370] sm:$0xff] }
 0x266   :  { %6037 = vmatprep.subr.mxu0 %v3366_v39  ;;  %5899 = vmatprep.mubr.f32.mxu1 %v2771_v42  ;;  %v3759_v7 = vld [vmem:[#allocation4 + $0x3f0] sm:$0xff]  ;;  %v3561_v42 = vld [vmem:[#allocation4 + $0x348] sm:$0xff] }
 0x267   :  { %5982 = vmatpush3.msra.mxu1 %v3173_v51  ;;  %6038 = vmatpush3.msra.mxu0 %v3366_v39  ;;  %v3563_v51 = vld [vmem:[#allocation4 + $0x358] sm:$0xff] }
 0x268   :  { %5900 = vmatmul.mubr.f32.gmra.mxu1 %v8133_v25  ;;  %5956 = vmatmul.mubr.f32.gmra.mxu0 %v8077_v54  ;;  %v3756_v39 = vld [vmem:[#allocation4 + $0x3d8] sm:$0xff] }
 0x269   :  { %5983 = vmatprep.subr.mxu1 %v3172_v60  ;;  %6039 = vmatprep.subr.mxu0 %v3365_v53 }
 0x26a   :  { %5902 = vmatprep.mubr.f32.mxu1 %v8137_v55  ;;  %5958 = vmatprep.mubr.f32.mxu0 %v8081_v47 }
 0x26b   :  { %5984 = vmatpush3.msra.mxu1 %v3172_v60  ;;  %6040 = vmatpush3.msra.mxu0 %v3365_v53  ;;  %v3754_v60 = vld [vmem:[#allocation4 + $0x3c8] sm:$0xff] }
 0x26c   :  { %5985 = vmatprep.subr.mxu1 %v3171_v21  ;;  %6041 = vmatprep.subr.mxu0 %v3364_v44  ;;  %v8178_v53 = vld [vmem:[#allocation3 + $0x82] sm:$0xff] }
 0x26d   :  { %5986 = vmatpush3.msra.mxu1 %v3171_v21  ;;  %6042 = vmatpush3.msra.mxu0 %v3364_v44  ;;  %v3560_v21 = vld [vmem:[#allocation4 + $0x340] sm:$0xff] }
 0x26e   :  { %5903 = vmatmul.mubr.f32.gmra.mxu1 %v8141_v32  ;;  %5959 = vmatmul.mubr.f32.gmra.mxu0 %v8085_v46  ;;  %v3753_v44 = vld [vmem:[#allocation4 + $0x3c0] sm:$0xff] }
 0x26f   :  { %5987 = vmatprep.subr.mxu1 %v3170_v15  ;;  %6043 = vmatprep.subr.mxu0 %v3363_v56 }
 0x270   :  { %5905 = vmatprep.mubr.f32.mxu1 %v8145_v0  ;;  %5961 = vmatprep.mubr.f32.mxu0 %v8089_v13 }
 0x271   :  { %5988 = vmatpush3.msra.mxu1 %v3170_v15  ;;  %6044 = vmatpush3.msra.mxu0 %v3363_v56  ;;  %v3559_v15 = vld [vmem:[#allocation4 + $0x338] sm:$0xff] }
 0x272   :  { %5989 = vmatprep.subr.mxu1 %v3169_v4  ;;  %6045 = vmatprep.subr.mxu0 %v3362_v61  ;;  %v3752_v56 = vld [vmem:[#allocation4 + $0x3b8] sm:$0xff] }
 0x273   :  { %5990 = vmatpush3.msra.mxu1 %v3169_v4  ;;  %6046 = vmatpush3.msra.mxu0 %v3362_v61  ;;  %v3558_v4 = vld [vmem:[#allocation4 + $0x330] sm:$0xff]  ;;  %v3750_v61 = vld [vmem:[#allocation4 + $0x3a8] sm:$0xff] }
 0x274   :  { %5906 = vmatmul.mubr.f32.gmra.mxu1 %v8149_v52  ;;  %5962 = vmatmul.mubr.f32.gmra.mxu0 %v8093_v27 }
 0x275   :  { %5991 = vmatprep.subr.mxu1 %v3168_v17  ;;  %6047 = vmatprep.subr.mxu0 %v3361_v22 }
 0x276   :  { %5908 = vmatprep.mubr.f32.mxu1 %v8153_v41  ;;  %5964 = vmatprep.mubr.f32.mxu0 %v8098_v19 }
 0x277   :  { %5992 = vmatpush3.msra.mxu1 %v3168_v17  ;;  %6048 = vmatpush3.msra.mxu0 %v3361_v22  ;;  %v3556_v17 = vld [vmem:[#allocation4 + $0x320] sm:$0xff] }
 0x278   :  { %5993 = vmatprep.subr.mxu1 %v3167_v2  ;;  %6049 = vmatprep.subr.mxu0 %v3360_v63  ;;  %v3749_v22 = vld [vmem:[#allocation4 + $0x3a0] sm:$0xff] }
 0x279   :  { %5994 = vmatpush3.msra.mxu1 %v3167_v2  ;;  %6050 = vmatpush3.msra.mxu0 %v3360_v63  ;;  %v3555_v2 = vld [vmem:[#allocation4 + $0x318] sm:$0xff] }
 0x27a   :  { %5909 = vmatmul.mubr.f32.gmra.mxu1 %v8157_v33  ;;  %5965 = vmatmul.mubr.f32.gmra.mxu0 %v8160_v48  ;;  %v3748_v63 = vld [vmem:[#allocation4 + $0x398] sm:$0xff] }
 0x27b   :  { %5995 = vmatprep.subr.mxu1 %v3166_v16  ;;  %6051 = vmatprep.subr.mxu0 %v3359_v9 }
 0x27c   :  { %5996 = vmatpush3.msra.mxu1 %v3166_v16  ;;  %5999 = vmatprep.mubr.f32.mxu1 %v7959_v5  ;;  %v3565_v5 = vld [vmem:[#allocation4 + $0x368] sm:$0xff]  ;;  %v8193_v16 = vld [vmem:[#allocation3 + $0x111] sm:$0xff] }
 0x27d   :  { %6052 = vmatpush3.msra.mxu0 %v3359_v9  ;;  %6055 = vmatprep.mubr.f32.mxu0 %v8102_v49  ;;  %v3758_v49 = vld [vmem:[#allocation4 + $0x3e8] sm:$0xff]  ;;  %v3554_v9 = vld [vmem:[#allocation4 + $0x310] sm:$0xff] }
 0x27e   :  { %5997 = vmatprep.subr.mxu1 %v3165_v58  ;;  %6053 = vmatprep.subr.mxu0 %v3358_v59 }
 0x27f   :  { %5998 = vmatpush3.msra.mxu1 %v3165_v58  ;;  %6054 = vmatpush3.msra.mxu0 %v3358_v59  ;;  %v3747_v58 = vld [vmem:[#allocation4 + $0x390] sm:$0xff]  ;;  %v3553_v59 = vld [vmem:[#allocation4 + $0x308] sm:$0xff] }
 0x280   :  { %6000 = vmatmul.mubr.f32.vlgmr.msra.gmra.mxu1 %v7961_v29  ;;  %6056 = vmatmul.mubr.f32.vlgmr.msra.gmra.mxu0 %v8106_v57  ;;  %v3564_v29 = vld [vmem:[#allocation4 + $0x360] sm:$0xff] }
 0x281   :  { %6079 = vmatprep.subr.mxu1 %v3567_v31  ;;  %6135 = vmatprep.subr.mxu0 %v3760_v26 }
 0x282   :  { %6002 = vmatprep.mubr.f32.mxu1 %v7963_v10  ;;  %6058 = vmatprep.mubr.f32.mxu0 %v8110_v38  ;;  %v3757_v10 = vld [vmem:[#allocation4 + $0x3e0] sm:$0xff] }
 0x283   :  { %6080 = vmatpush3.msra.mxu1 %v3567_v31  ;;  %6136 = vmatpush3.msra.mxu0 %v3760_v26  ;;  %v3746_v31 = vld [vmem:[#allocation4 + $0x388] sm:$0xff] }
 0x284   :  { %6081 = vmatprep.subr.mxu1 %v3566_v24  ;;  %6137 = vmatprep.subr.mxu0 %v3759_v7  ;;  %v8198_v26 = vld [vmem:[#allocation3 + $0x122] sm:$0xff] }
 0x285   :  { %6082 = vmatpush3.msra.mxu1 %v3566_v24  ;;  %6138 = vmatpush3.msra.mxu0 %v3759_v7  ;;  %v3552_v24 = vld [vmem:[#allocation4 + $0x300] sm:$0xff] }
 0x286   :  { %6003 = vmatmul.mubr.f32.gmra.mxu1 %v7965_v34  ;;  %6059 = vmatmul.mubr.f32.gmra.mxu0 %v8114_v50  ;;  %v3562_v34 = vld [vmem:[#allocation4 + $0x350] sm:$0xff]  ;;  %v3536_v7 = vld [vmem:[#allocation3 + $0x20] sm:$0xff] }
 0x287   :  { %6083 = vmatprep.subr.mxu1 %v3565_v5  ;;  %6139 = vmatprep.subr.mxu0 %v3758_v49 }
 0x288   :  { %6005 = vmatprep.mubr.f32.mxu1 %v7967_v6  ;;  %6061 = vmatprep.mubr.f32.mxu0 %v8118_v37  ;;  %v3755_v6 = vld [vmem:[#allocation4 + $0x3d0] sm:$0xff] }
 0x289   :  { %6084 = vmatpush3.msra.mxu1 %v3565_v5  ;;  %6140 = vmatpush3.msra.mxu0 %v3758_v49  ;;  %v3745_v5 = vld [vmem:[#allocation4 + $0x380] sm:$0xff] }
 0x28a   :  { %6085 = vmatprep.subr.mxu1 %v3564_v29  ;;  %6141 = vmatprep.subr.mxu0 %v3757_v10  ;;  %v3729_v49 = vld [vmem:[#allocation3 + $0x21] sm:$0xff] }
 0x28b   :  { %6086 = vmatpush3.msra.mxu1 %v3564_v29  ;;  %6142 = vmatpush3.msra.mxu0 %v3757_v10  ;;  %v3953_v29 = vld [vmem:[#allocation4 + $0x478] sm:$0xff]  ;;  %v3537_v10 = vld [vmem:[#allocation3 + $0x30] sm:$0xff] }
 0x28c   :  { %6006 = vmatmul.mubr.f32.gmra.mxu1 %v7969_v35  ;;  %6062 = vmatmul.mubr.f32.gmra.mxu0 %v8122_v14 }
 0x28d   :  { %6087 = vmatprep.subr.mxu1 %v3563_v51  ;;  %6143 = vmatprep.subr.mxu0 %v3756_v39 }
 0x28e   :  { %6008 = vmatprep.mubr.f32.mxu1 %v7971_v1  ;;  %6064 = vmatprep.mubr.f32.mxu0 %v8126_v40 }
 0x28f   :  { %6088 = vmatpush3.msra.mxu1 %v3563_v51  ;;  %6144 = vmatpush3.msra.mxu0 %v3756_v39  ;;  %v3730_v51 = vld [vmem:[#allocation3 + $0x31] sm:$0xff] }
 0x290   :  { %6089 = vmatprep.subr.mxu1 %v3562_v34  ;;  %6145 = vmatprep.subr.mxu0 %v3755_v6  ;;  %v8204_v39 = vld [vmem:[%s8879_s7 + $0x78] sm:$0xff] }
 0x291   :  { %6090 = vmatpush3.msra.mxu1 %v3562_v34  ;;  %6146 = vmatpush3.msra.mxu0 %v3755_v6  ;;  %v3538_v34 = vld [vmem:[#allocation3 + $0x40] sm:$0xff] }
 0x292   :  { %6009 = vmatmul.mubr.f32.gmra.mxu1 %v8040_v12  ;;  %6065 = vmatmul.mubr.f32.gmra.mxu0 %v8178_v53  ;;  %v3731_v6 = vld [vmem:[#allocation3 + $0x41] sm:$0xff] }
 0x293   :  { %6091 = vmatprep.subr.mxu1 %v3561_v42  ;;  %6147 = vmatprep.subr.mxu0 %v3754_v60 }
 0x294   :  { %6011 = vmatprep.mubr.f32.mxu1 %v8017_v18  ;;  %6067 = vmatprep.mubr.f32.mxu0 %v8133_v25  ;;  %v3751_v18 = vld [vmem:[#allocation4 + $0x3b0] sm:$0xff]  ;;  %v3557_v25 = vld [vmem:[#allocation4 + $0x328] sm:$0xff] }
 0x295   :  { %6092 = vmatpush3.msra.mxu1 %v3561_v42  ;;  %6148 = vmatpush3.msra.mxu0 %v3754_v60  ;;  %v3952_v42 = vld [vmem:[#allocation4 + $0x470] sm:$0xff]  ;;  %v3951_v60 = vld [vmem:[#allocation4 + $0x468] sm:$0xff] }
 0x296   :  { %6093 = vmatprep.subr.mxu1 %v3560_v21  ;;  %6149 = vmatprep.subr.mxu0 %v3753_v44 }
 0x297   :  { %6094 = vmatpush3.msra.mxu1 %v3560_v21  ;;  %6150 = vmatpush3.msra.mxu0 %v3753_v44  ;;  %v3732_v21 = vld [vmem:[#allocation3 + $0x51] sm:$0xff]  ;;  %v3950_v44 = vld [vmem:[#allocation4 + $0x460] sm:$0xff] }
 0x298   :  { %6012 = vmatmul.mubr.f32.gmra.mxu1 %v8019_v28  ;;  %6068 = vmatmul.mubr.f32.gmra.mxu0 %v8137_v55 }
 0x299   :  { %6095 = vmatprep.subr.mxu1 %v3559_v15  ;;  %6151 = vmatprep.subr.mxu0 %v3752_v56 }
 0x29a   :  { %6014 = vmatprep.mubr.f32.mxu1 %v8021_v62  ;;  %6070 = vmatprep.mubr.f32.mxu0 %v8141_v32 }
 0x29b   :  { %6096 = vmatpush3.msra.mxu1 %v3559_v15  ;;  %6152 = vmatpush3.msra.mxu0 %v3752_v56  ;;  %v3949_v15 = vld [vmem:[#allocation4 + $0x458] sm:$0xff]  ;;  %v3948_v56 = vld [vmem:[#allocation4 + $0x450] sm:$0xff] }
 0x29c   :  { %6097 = vmatprep.subr.mxu1 %v3558_v4  ;;  %6153 = vmatprep.subr.mxu0 %v3751_v18 }
 0x29d   :  { %6098 = vmatpush3.msra.mxu1 %v3558_v4  ;;  %6154 = vmatpush3.msra.mxu0 %v3751_v18  ;;  %v3947_v4 = vld [vmem:[#allocation4 + $0x448] sm:$0xff]  ;;  %v8327_v18 = vld [vmem:[%s8879_s7 + $0x10] sm:$0xff] }
 0x29e   :  { %6015 = vmatmul.mubr.f32.gmra.mxu1 %v8028_v3  ;;  %6071 = vmatmul.mubr.f32.gmra.mxu0 %v8145_v0 }
 0x29f   :  { %6099 = vmatprep.subr.mxu1 %v3557_v25  ;;  %6155 = vmatprep.subr.mxu0 %v3750_v61 }
 0x2a0   :  { %6017 = vmatprep.mubr.f32.mxu1 %v8030_v30  ;;  %6073 = vmatprep.mubr.f32.mxu0 %v8149_v52 }
 0x2a1   :  { %6100 = vmatpush3.msra.mxu1 %v3557_v25  ;;  %6156 = vmatpush3.msra.mxu0 %v3750_v61  ;;  %v8347_v61 = vld [vmem:[%s8879_s7] sm:$0xff] }
 0x2a2   :  { %6101 = vmatprep.subr.mxu1 %v3556_v17  ;;  %6157 = vmatprep.subr.mxu0 %v3749_v22 }
 0x2a3   :  { %6102 = vmatpush3.msra.mxu1 %v3556_v17  ;;  %6158 = vmatpush3.msra.mxu0 %v3749_v22 }
 0x2a4   :  { %6018 = vmatmul.mubr.f32.gmra.mxu1 %v8032_v43  ;;  %6074 = vmatmul.mubr.f32.gmra.mxu0 %v8153_v41 }
 0x2a5   :  { %6103 = vmatprep.subr.mxu1 %v3555_v2  ;;  %6159 = vmatprep.subr.mxu0 %v3748_v63 }
 0x2a6   :  { %6020 = vmatprep.mubr.f32.mxu1 %v8193_v16  ;;  %6076 = vmatprep.mubr.f32.mxu0 %v8157_v33 }
 0x2a7   :  { %6104 = vmatpush3.msra.mxu1 %v3555_v2  ;;  %6160 = vmatpush3.msra.mxu0 %v3748_v63  ;;  %v6348_v63 = vld [vmem:[#allocation2 + $0x360] sm:$0xff] }
 0x2a8   :  { %6105 = vmatprep.subr.mxu1 %v3554_v9  ;;  %6161 = vmatprep.subr.mxu0 %v3747_v58 }
 0x2a9   :  { %6106 = vmatpush3.msra.mxu1 %v3554_v9  ;;  %6162 = vmatpush3.msra.mxu0 %v3747_v58  ;;  %v6349_v58 = vld [vmem:[#allocation2 + $0x370] sm:$0xff] }
 0x2aa   :  { %6021 = vmatmul.mubr.f32.gmra.mxu1 %v8052_v36  ;;  %6077 = vmatmul.mubr.f32.gmra.mxu0 %v8198_v26 }
 0x2ab   :  { %6107 = vmatprep.subr.mxu1 %v3553_v59  ;;  %6163 = vmatprep.subr.mxu0 %v3746_v31 }
 0x2ac   :  { %6108 = vmatpush3.msra.mxu1 %v3553_v59  ;;  %6111 = vmatprep.mubr.f32.mxu1 %v3536_v7 }
 0x2ad   :  { %6164 = vmatpush3.msra.mxu0 %v3746_v31  ;;  %6167 = vmatprep.mubr.f32.mxu0 %v3729_v49  ;;  %v6351_v49 = vld [vmem:[#allocation2 + $0x390] sm:$0xff] }
 0x2ae   :  { %6109 = vmatprep.subr.mxu1 %v3552_v24  ;;  %6165 = vmatprep.subr.mxu0 %v3745_v5 }
 0x2af   :  { %6110 = vmatpush3.msra.mxu1 %v3552_v24  ;;  %6166 = vmatpush3.msra.mxu0 %v3745_v5  ;;  %v6350_v24 = vld [vmem:[#allocation2 + $0x380] sm:$0xff] }
 0x2b0   :  { %6112 = vmatmul.mubr.f32.vlgmr.msra.gmra.mxu1 %v3537_v10  ;;  %6168 = vmatmul.mubr.f32.vlgmr.msra.gmra.mxu0 %v3730_v51  ;;  %v6352_v10 = vld [vmem:[#allocation2 + $0x3a0] sm:$0xff] }
 0x2b1   :  { %6191 = vmatprep.subr.mxu1 %v3953_v29  ;;  %6114 = vmatprep.mubr.f32.mxu1 %v3538_v34  ;;  %v6353_v34 = vld [vmem:[#allocation2 + $0x3b0] sm:$0xff] }
 0x2b2   :  { %6170 = vmatprep.mubr.f32.mxu0 %v3731_v6  ;;  %6192 = vmatpush3.msra.mxu1 %v3953_v29 }
 0x2b3   :  { %6247 = vmatprep.subr.mxu0 %v8204_v39  ;;  %6193 = vmatprep.subr.mxu1 %v3952_v42 }
 0x2b4   :  { %6115 = vmatmul.mubr.f32.gmra.mxu1 %v8059_v20  ;;  %6171 = vmatmul.mubr.f32.gmra.mxu0 %v3732_v21  ;;  %v3736_v20 = vld [vmem:[#allocation3 + $0x91] sm:$0xff] }
 0x2b5   :  { %6194 = vmatpush3.msra.mxu1 %v3952_v42  ;;  %6117 = vmatprep.mubr.f32.mxu1 %v8062_v23  ;;  %v8229_v23 = vld [vmem:[%s8879_s7 + $0x68] sm:$0xff] }
 0x2b6   :  { %6195 = vmatprep.subr.mxu1 %v3951_v60  ;;  %6173 = vmatprep.mubr.f32.mxu0 %v7969_v35  ;;  %v3946_v35 = vld [vmem:[#allocation4 + $0x440] sm:$0xff] }
 0x2b7   :  { %6196 = vmatpush3.msra.mxu1 %v3951_v60  ;;  %6248 = vmatpush3.msra.mxu0 %v8204_v39  ;;  %v6354_v60 = vld [vmem:[#allocation2 + $0x3c0] sm:$0xff] }
 0x2b8   :  { %6197 = vmatprep.subr.mxu1 %v3950_v44  ;;  %6118 = vmatmul.mubr.f32.gmra.mxu1 %v8066_v8  ;;  %v8237_v8 = vld [vmem:[%s8879_s7 + $0x60] sm:$0xff] }
 0x2b9   :  { %6198 = vmatpush3.msra.mxu1 %v3950_v44  ;;  %6174 = vmatmul.mubr.f32.gmra.mxu0 %v7971_v1  ;;  %v8219_v1 = vld [vmem:[%s8879_s7 + $0x70] sm:$0xff] }
 0x2ba   :  { %6199 = vmatprep.subr.mxu1 %v3949_v15  ;;  %6120 = vmatprep.mubr.f32.mxu1 %v8129_v11  ;;  %v3938_v11 = vld [vmem:[#allocation4 + $0x400] sm:$0xff] }
 0x2bb   :  { %6176 = vmatprep.mubr.f32.mxu0 %v8040_v12  ;;  %6200 = vmatpush3.msra.mxu1 %v3949_v15  ;;  %v3945_v12 = vld [vmem:[#allocation4 + $0x438] sm:$0xff]  ;;  %v6355_v15 = vld [vmem:[#allocation2 + $0x3d0] sm:$0xff] }
 0x2bc   :  { %6201 = vmatprep.subr.mxu1 %v3948_v56  ;;  %6121 = vmatmul.mubr.f32.gmra.mxu1 %v8069_v45 }
 0x2bd   :  { %6202 = vmatpush3.msra.mxu1 %v3948_v56  ;;  %6177 = vmatmul.mubr.f32.gmra.mxu0 %v3736_v20  ;;  %v6356_v56 = vld [vmem:[#allocation2 + $0x3f0] sm:$0xff] }
 0x2be   :  { %6203 = vmatprep.subr.mxu1 %v3947_v4  ;;  %6123 = vmatprep.mubr.f32.mxu1 %v8077_v54  ;;  %v3942_v54 = vld [vmem:[#allocation4 + $0x420] sm:$0xff] }
 0x2bf   :  { %6179 = vmatprep.mubr.f32.mxu0 %v8019_v28  ;;  %6204 = vmatpush3.msra.mxu1 %v3947_v4  ;;  %v3944_v28 = vld [vmem:[#allocation4 + $0x430] sm:$0xff] }
 0x2c0   :  { %6205 = vmatprep.subr.mxu1 %v3946_v35  ;;  %6249 = vmatprep.subr.mxu0 %v8219_v1 }
 0x2c1   :  { %6206 = vmatpush3.msra.mxu1 %v3946_v35  ;;  %6180 = vmatmul.mubr.f32.gmra.mxu0 %v8021_v62  ;;  %v3943_v62 = vld [vmem:[#allocation4 + $0x428] sm:$0xff] }
 0x2c2   :  { %6124 = vmatmul.mubr.f32.gmra.mxu1 %v8081_v47  ;;  %6207 = vmatprep.subr.mxu1 %v3945_v12  ;;  %v8255_v47 = vld [vmem:[%s8879_s7 + $0x50] sm:$0xff] }
 0x2c3   :  { %6250 = vmatpush3.msra.mxu0 %v8219_v1  ;;  %6126 = vmatprep.mubr.f32.mxu1 %v8085_v46  ;;  %v3940_v46 = vld [vmem:[#allocation4 + $0x410] sm:$0xff] }
 0x2c4   :  { %6182 = vmatprep.mubr.f32.mxu0 %v8028_v3  ;;  %6208 = vmatpush3.msra.mxu1 %v3945_v12  ;;  %v8247_v3 = vld [vmem:[%s8879_s7 + $0x58] sm:$0xff]  ;;  %v6357_v12 = vld [vmem:[#allocation2 + $0x400] sm:$0xff] }
 0x2c5   :  { %6251 = vmatprep.subr.mxu0 %v8229_v23  ;;  %6209 = vmatprep.subr.mxu1 %v3944_v28 }
 0x2c6   :  { %6252 = vmatpush3.msra.mxu0 %v8229_v23  ;;  %6210 = vmatpush3.msra.mxu1 %v3944_v28  ;;  %v6358_v28 = vld [vmem:[#allocation2 + $0x410] sm:$0xff] }
 0x2c7   :  { %6253 = vmatprep.subr.mxu0 %v8237_v8  ;;  %6127 = vmatmul.mubr.f32.gmra.mxu1 %v8089_v13  ;;  %v8273_v13 = vld [vmem:[%s8879_s7 + $0x40] sm:$0xff] }
 0x2c8   :  { %6183 = vmatmul.mubr.f32.gmra.mxu0 %v8030_v30  ;;  %6211 = vmatprep.subr.mxu1 %v3943_v62  ;;  %v3941_v30 = vld [vmem:[#allocation4 + $0x418] sm:$0xff] }
 0x2c9   :  { %6254 = vmatpush3.msra.mxu0 %v8237_v8  ;;  %6129 = vmatprep.mubr.f32.mxu1 %v8093_v27  ;;  %v3939_v27 = vld [vmem:[#allocation4 + $0x408] sm:$0xff] }
 0x2ca   :  { %6185 = vmatprep.mubr.f32.mxu0 %v8032_v43  ;;  %6212 = vmatpush3.msra.mxu1 %v3943_v62  ;;  %v8265_v43 = vld [vmem:[%s8879_s7 + $0x48] sm:$0xff] }
 0x2cb   :  { %6255 = vmatprep.subr.mxu0 %v8247_v3  ;;  %6213 = vmatprep.subr.mxu1 %v3942_v54 }
 0x2cc   :  { %6256 = vmatpush3.msra.mxu0 %v8247_v3  ;;  %6214 = vmatpush3.msra.mxu1 %v3942_v54 }
 0x2cd   :  { %6257 = vmatprep.subr.mxu0 %v8255_v47  ;;  %6130 = vmatmul.mubr.f32.gmra.mxu1 %v8098_v19  ;;  %v8281_v19 = vld [vmem:[%s8879_s7 + $0x38] sm:$0xff] }
 0x2ce   :  { %6186 = vmatmul.mubr.f32.gmra.mxu0 %v8193_v16  ;;  %6215 = vmatprep.subr.mxu1 %v3941_v30 }
 0x2cf   :  { %6258 = vmatpush3.msra.mxu0 %v8255_v47  ;;  %6132 = vmatprep.mubr.f32.mxu1 %v8160_v48  ;;  %v8290_v48 = vld [vmem:[%s8879_s7 + $0x30] sm:$0xff] }
 0x2d0   :  { %6188 = vmatprep.mubr.f32.mxu0 %v8052_v36  ;;  %6216 = vmatpush3.msra.mxu1 %v3941_v30  ;;  %v3744_v36 = vld [vmem:[#allocation3 + $0x131] sm:$0xff] }
 0x2d1   :  { %6259 = vmatprep.subr.mxu0 %v8265_v43  ;;  %6217 = vmatprep.subr.mxu1 %v3940_v46 }
 0x2d2   :  { %6260 = vmatpush3.msra.mxu0 %v8265_v43  ;;  %6218 = vmatpush3.msra.mxu1 %v3940_v46 }
 0x2d3   :  { %6261 = vmatprep.subr.mxu0 %v8273_v13  ;;  %6133 = vmatmul.mubr.f32.gmra.mxu1 %v8069_v45  ;;  %v8298_v45 = vld [vmem:[%s8879_s7 + $0x28] sm:$0xff] }
 0x2d4   :  { %6219 = vmatprep.subr.mxu1 %v3939_v27  ;;  %6262 = vmatpush3.msra.mxu0 %v8273_v13 }
 0x2d5   :  { %6220 = vmatpush3.msra.mxu1 %v3939_v27  ;;  %6223 = vmatprep.mubr.f32.mxu1 %v8106_v57  ;;  %v8307_v57 = vld [vmem:[%s8879_s7 + $0x20] sm:$0xff] }
 0x2d6   :  { %6263 = vmatprep.subr.mxu0 %v8281_v19  ;;  %6189 = vmatmul.mubr.f32.gmra.mxu0 %v3744_v36  ;;  %v6361_v27 = vld [vmem:[#allocation2 + $0x440] sm:$0xff] }
 0x2d7   :  { %6221 = vmatprep.subr.mxu1 %v3938_v11  ;;  %6264 = vmatpush3.msra.mxu0 %v8281_v19 }
 0x2d8   :  { %6222 = vmatpush3.msra.mxu1 %v3938_v11  ;;  %6265 = vmatprep.subr.mxu0 %v8290_v48  ;;  %v6362_v11 = vld [vmem:[#allocation2 + $0x450] sm:$0xff] }
 0x2d9   :  { %6224 = vmatmul.mubr.f32.vlgmr.msra.gmra.mxu1 %v8110_v38  ;;  %6303 = vmatprep.subr.mxu1 %v8204_v39  ;;  %v8318_v38 = vld [vmem:[%s8879_s7 + $0x18] sm:$0xff] }
 0x2da   :  { %6266 = vmatpush3.msra.mxu0 %v8290_v48  ;;  %6226 = vmatprep.mubr.f32.mxu1 %v8114_v50 }
 0x2db   :  { %6319 = vmatpush3.msra.mxu1 %v8204_v39  ;;  %6267 = vmatprep.subr.mxu0 %v8298_v45 }
 0x2dc   :  { %6304 = vmatprep.subr.mxu1 %v8219_v1  ;;  %6268 = vmatpush3.msra.mxu0 %v8298_v45 }
 0x2dd   :  { %6320 = vmatpush3.msra.mxu1 %v8219_v1  ;;  %6269 = vmatprep.subr.mxu0 %v8307_v57 }
 0x2de   :  { %6227 = vmatmul.mubr.f32.gmra.mxu1 %v8118_v37  ;;  %6305 = vmatprep.subr.mxu1 %v8229_v23  ;;  %v5777_v50 = vpop.f32.mrf.mxu1 }
 0x2df   :  { %6270 = vmatpush3.msra.mxu0 %v8307_v57  ;;  %6229 = vmatprep.mubr.f32.mxu1 %v8122_v14  ;;  %v8338_v14 = vld [vmem:[%s8879_s7 + $0x8] sm:$0xff] }
 0x2e0   :  { %6321 = vmatpush3.msra.mxu1 %v8229_v23  ;;  %6271 = vmatprep.subr.mxu0 %v8318_v38  ;;  %v2539_v37 = vpop.f32.mrf.mxu1 }
 0x2e1   :  { %6306 = vmatprep.subr.mxu1 %v8237_v8  ;;  %6272 = vmatpush3.msra.mxu0 %v8318_v38 }
 0x2e2   :  { %6322 = vmatpush3.msra.mxu1 %v8237_v8  ;;  %6273 = vmatprep.subr.mxu0 %v8327_v18  ;;  %v5780_v25 = vpop.f32.mrf.mxu1 }
 0x2e3   :  { %6230 = vmatmul.mubr.f32.gmra.mxu1 %v8126_v40  ;;  %6307 = vmatprep.subr.mxu1 %v8247_v3  ;;  %v3929_v40 = vld [vmem:[#allocation3 + $0x92] sm:$0xff] }
 0x2e4   :  { %6274 = vmatpush3.msra.mxu0 %v8327_v18  ;;  %6232 = vmatprep.mubr.f32.mxu1 %v8178_v53  ;;  %v2549_v17 = vpop.f32.mrf.mxu1 }
 0x2e5   :  { %6323 = vmatpush3.msra.mxu1 %v8247_v3  ;;  %6275 = vmatprep.subr.mxu0 %v8338_v14 }
 0x2e6   :  { %6308 = vmatprep.subr.mxu1 %v8255_v47  ;;  %6276 = vmatpush3.msra.mxu0 %v8338_v14  ;;  %v5833_v22 = vpop.f32.mrf.mxu0 }
 0x2e7   :  { %6324 = vmatpush3.msra.mxu1 %v8255_v47  ;;  %6277 = vmatprep.subr.mxu0 %v8347_v61  ;;  %v8354_v53 = vadd.f32 %v5833_v22, %v5777_v50  ;;  %v5783_v9 = vpop.f32.mrf.mxu1  ;;  %v6359_v47 = vld [vmem:[#allocation2 + $0x420] sm:$0xff] }
 0x2e8   :  { %6233 = vmatmul.mubr.f32.gmra.mxu1 %v3929_v40  ;;  %6309 = vmatprep.subr.mxu1 %v8265_v43  ;;  %v2684_v2 = vpop.f32.mrf.mxu0 }
 0x2e9   :  { %6278 = vmatpush3.msra.mxu0 %v8347_v61  ;;  %6279 = vmatprep.mubr.f32.mxu0 %v6348_v63  ;;  %v8359_v16 = vadd.f32 %v2684_v2, %v2539_v37  ;;  %v2559_v5 = vpop.f32.mrf.mxu1 }
 0x2ea   :  { %6235 = vmatprep.mubr.f32.mxu1 %v8137_v55  ;;  %6325 = vmatpush3.msra.mxu1 %v8265_v43  ;;  %v6360_v43 = vld [vmem:[#allocation2 + $0x430] sm:$0xff] }
 0x2eb   :  { %6280 = vmatmul.mubr.f32.vlgmr.msra.gmra.mxu0 %v6349_v58  ;;  %v5836_v59 = vpop.f32.mrf.mxu0  ;;  %6310 = vmatprep.subr.mxu1 %v8273_v13 }
 0x2ec   :  { %6236 = vmatmul.mubr.f32.gmra.mxu1 %v8141_v32  ;;  %v8364_v31 = vadd.f32 %v5836_v59, %v5780_v25  ;;  %6282 = vmatprep.mubr.f32.mxu0 %v6350_v24 }
 0x2ed   :  { %6326 = vmatpush3.msra.mxu1 %v8273_v13  ;;  %v2694_v7 = vpop.f32.mrf.mxu0  ;;  %6238 = vmatprep.mubr.f32.mxu1 %v8145_v0 }
 0x2ee   :  { %6311 = vmatprep.subr.mxu1 %v8281_v19  ;;  %v8369_v55 = vadd.f32 %v2694_v7, %v2549_v17 }
 0x2ef   :  { %6327 = vmatpush3.msra.mxu1 %v8281_v19  ;;  %6283 = vmatmul.mubr.f32.gmra.mxu0 %v6351_v49  ;;  %v5839_v29 = vpop.f32.mrf.mxu0 }
 0x2f0   :  { %6312 = vmatprep.subr.mxu1 %v8290_v48  ;;  %6239 = vmatmul.mubr.f32.gmra.mxu1 %v8149_v52  ;;  %v8374_v32 = vadd.f32 %v5839_v29, %v5783_v9 }
 0x2f1   :  { %6328 = vmatpush3.msra.mxu1 %v8290_v48  ;;  %6285 = vmatprep.mubr.f32.mxu0 %v6352_v10  ;;  %v2704_v51 = vpop.f32.mrf.mxu0  ;;  %v5786_v39 = vpop.f32.mrf.mxu1 }
 0x2f2   :  { %6313 = vmatprep.subr.mxu1 %v8298_v45  ;;  %6241 = vmatprep.mubr.f32.mxu1 %v8153_v41  ;;  %v8379_v0 = vadd.f32 %v2704_v51, %v2559_v5  ;;  %v3937_v41 = vld [vmem:[#allocation3 + $0x132] sm:$0xff] }
 0x2f3   :  { %6329 = vmatpush3.msra.mxu1 %v8298_v45  ;;  %6286 = vmatmul.mubr.f32.gmra.mxu0 %v6353_v34  ;;  %v5842_v6 = vpop.f32.mrf.mxu0  ;;  %v2569_v42 = vpop.f32.mrf.mxu1 }
 0x2f4   :  { %6314 = vmatprep.subr.mxu1 %v8307_v57  ;;  %6242 = vmatmul.mubr.f32.gmra.mxu1 %v8157_v33  ;;  %v8384_v52 = vadd.f32 %v5842_v6, %v5786_v39 }
 0x2f5   :  { %6330 = vmatpush3.msra.mxu1 %v8307_v57  ;;  %6288 = vmatprep.mubr.f32.mxu0 %v6354_v60  ;;  %v2714_v21 = vpop.f32.mrf.mxu0  ;;  %v6363_v57 = vld [vmem:[#allocation2 + $0x460] sm:$0xff] }
 0x2f6   :  { %6315 = vmatprep.subr.mxu1 %v8318_v38  ;;  %6244 = vmatprep.mubr.f32.mxu1 %v8198_v26  ;;  %v8389_v44 = vadd.f32 %v2714_v21, %v2569_v42 }
 0x2f7   :  { %6331 = vmatpush3.msra.mxu1 %v8318_v38  ;;  %6289 = vmatmul.mubr.f32.gmra.mxu0 %v6355_v15 }
 0x2f8   :  { %6316 = vmatprep.subr.mxu1 %v8327_v18  ;;  %6245 = vmatmul.mubr.f32.gmra.mxu1 %v3937_v41  ;;  %v5789_v33 = vpop.f32.mrf.mxu1  ;;  %v5845_v20 = vpop.f32.mrf.mxu0 }
 0x2f9   :  { %6332 = vmatpush3.msra.mxu1 %v8327_v18  ;;  %6291 = vmatprep.mubr.f32.mxu1 %v6356_v56  ;;  %v8395_v4 = vadd.f32 %v5845_v20, %v5789_v33 }
 0x2fa   :  { %6317 = vmatprep.subr.mxu1 %v8338_v14  ;;  %v2579_v26 = vpop.f32.mrf.mxu1  ;;  %v2724_v35 = vpop.f32.mrf.mxu0 }
 0x2fb   :  { %6333 = vmatpush3.msra.mxu1 %v8338_v14  ;;  %v8399_v1 = vadd.f32 %v2724_v35, %v2579_v26 }
 0x2fc   :  { %6318 = vmatprep.subr.mxu1 %v8347_v61 }
 0x2fd   :  { %6334 = vmatpush3.msra.mxu1 %v8347_v61 }
 0x2fe   :  { %6292 = vmatmul.mubr.f32.vlgmr.msra.gmra.mxu1 %v6357_v12  ;;  %v5792_v23 = vpop.f32.mrf.mxu1  ;;  %v5848_v8 = vpop.f32.mrf.mxu0 }
 0x2ff   :  { %6294 = vmatprep.mubr.f32.mxu1 %v6358_v28  ;;  %v8402_v62 = vadd.f32 %v5848_v8, %v5792_v23 }
 0x300   :  { %v2589_v3 = vpop.f32.mrf.mxu1  ;;  %v2734_v54 = vpop.f32.mrf.mxu0 }
 0x301   :  { %v8404_v30 = vadd.f32 %v2734_v54, %v2589_v3 }
 0x302   :  { %6295 = vmatmul.mubr.f32.gmra.mxu1 %v6359_v47 }
 0x303   :  { %6297 = vmatprep.mubr.f32.mxu1 %v6360_v43 }
 0x304   :  { %v5795_v46 = vpop.f32.mrf.mxu1  ;;  %v5851_v13 = vpop.f32.mrf.mxu0 }
 0x305   :  { %v8406_v19 = vadd.f32 %v5851_v13, %v5795_v46 }
 0x306   :  { %6298 = vmatmul.mubr.f32.gmra.mxu1 %v6361_v27  ;;  %v2599_v36 = vpop.f32.mrf.mxu1  ;;  %v2744_v48 = vpop.f32.mrf.mxu0 }
 0x307   :  { %6300 = vmatprep.mubr.f32.mxu1 %v6362_v11  ;;  %v2745_v45 = vadd.f32 %v2744_v48, %v2599_v36 }
 0x30a   :  { %6301 = vmatmul.mubr.f32.gmra.mxu1 %v6363_v57  ;;  %v5798_v38 = vpop.f32.mrf.mxu1  ;;  %v5854_v50 = vpop.f32.mrf.mxu0 }
 0x30b   :  { %v2760_v18 = vadd.f32 %v5854_v50, %v5798_v38 }
 0x30c   :  { %v2609_v37 = vpop.f32.mrf.mxu1  ;;  %v2754_v14 = vpop.f32.mrf.mxu0 }
 0x30d   :  { %v2755_v25 = vadd.f32 %v2754_v14, %v2609_v37 }
 0x310   :  { %v5889_v61 = vpop.f32.mrf.mxu1  ;;  %v5945_v17 = vpop.f32.mrf.mxu0 }
 0x311   :  { %v2941_v40 = vadd.f32 %v5889_v61, %v8354_v53 }
 0x312   :  { %v2861_v22 = vpop.f32.mrf.mxu1  ;;  %v3054_v9 = vpop.f32.mrf.mxu0 }
 0x313   :  { %v3134_v2 = vadd.f32 %v5945_v17, %v2941_v40  ;;  %v2940_v63 = vadd.f32 %v2861_v22, %v8359_v16 }
 0x315   :  { %v3133_v58 = vadd.f32 %v3054_v9, %v2940_v63 }
 0x316   :  { %v5892_v59 = vpop.f32.mrf.mxu1  ;;  %v5948_v7 = vpop.f32.mrf.mxu0 }
 0x317   :  { %v2943_v24 = vadd.f32 %v5892_v59, %v8364_v31 }
 0x318   :  { %v2871_v5 = vpop.f32.mrf.mxu1  ;;  %v3064_v10 = vpop.f32.mrf.mxu0 }
 0x319   :  { %v3136_v49 = vadd.f32 %v5948_v7, %v2943_v24  ;;  %v2942_v29 = vadd.f32 %v2871_v5, %v8369_v55 }
 0x31b   :  { %v3135_v51 = vadd.f32 %v3064_v10, %v2942_v29 }
 0x31c   :  { %v5895_v39 = vpop.f32.mrf.mxu1  ;;  %v5951_v34 = vpop.f32.mrf.mxu0 }
 0x31d   :  { %v2945_v53 = vadd.f32 %v5895_v39, %v8374_v32 }
 0x31e   :  { %v2881_v6 = vpop.f32.mrf.mxu1  ;;  %v3074_v60 = vpop.f32.mrf.mxu0 }
 0x31f   :  { %v3138_v42 = vadd.f32 %v5951_v34, %v2945_v53  ;;  %v2944_v16 = vadd.f32 %v2881_v6, %v8379_v0 }
 0x321   :  { %v3137_v41 = vadd.f32 %v3074_v60, %v2944_v16 }
 0x322   :  { %v5898_v21 = vpop.f32.mrf.mxu1  ;;  %v5954_v15 = vpop.f32.mrf.mxu0 }
 0x323   :  { %v2947_v31 = vadd.f32 %v5898_v21, %v8384_v52 }
 0x324   :  { %v2891_v33 = vpop.f32.mrf.mxu1  ;;  %v3084_v20 = vpop.f32.mrf.mxu0 }
 0x325   :  { %v3140_v56 = vadd.f32 %v5954_v15, %v2947_v31  ;;  %v2946_v55 = vadd.f32 %v2891_v33, %v8389_v44 }
 0x327   :  { %v3139_v26 = vadd.f32 %v3084_v20, %v2946_v55 }
 0x328   :  { %v5901_v35 = vpop.f32.mrf.mxu1  ;;  %v5957_v12 = vpop.f32.mrf.mxu0 }
 0x329   :  { %v2949_v32 = vadd.f32 %v5901_v35, %v8395_v4 }
 0x32a   :  { %v2901_v23 = vpop.f32.mrf.mxu1  ;;  %v3094_v8 = vpop.f32.mrf.mxu0 }
 0x32b   :  { %v3142_v28 = vadd.f32 %v5957_v12, %v2949_v32  ;;  %v2948_v0 = vadd.f32 %v2901_v23, %v8399_v1 }
 0x32d   :  { %v3141_v3 = vadd.f32 %v3094_v8, %v2948_v0 }
 0x32e   :  { %v5904_v54 = vpop.f32.mrf.mxu1  ;;  %v5960_v47 = vpop.f32.mrf.mxu0 }
 0x32f   :  { %v2951_v52 = vadd.f32 %v5904_v54, %v8402_v62 }
 0x330   :  { %v2911_v43 = vpop.f32.mrf.mxu1  ;;  %v3104_v13 = vpop.f32.mrf.mxu0 }
 0x331   :  { %v3144_v46 = vadd.f32 %v5960_v47, %v2951_v52  ;;  %v2950_v44 = vadd.f32 %v2911_v43, %v8404_v30 }
 0x333   :  { %v3143_v27 = vadd.f32 %v3104_v13, %v2950_v44 }
 0x334   :  { %v5907_v36 = vpop.f32.mrf.mxu1  ;;  %v5963_v11 = vpop.f32.mrf.mxu0 }
 0x335   :  { %v2953_v4 = vadd.f32 %v5907_v36, %v8406_v19 }
 0x336   :  { %v2921_v48 = vpop.f32.mrf.mxu1  ;;  %v3114_v1 = vpop.f32.mrf.mxu0 }
 0x337   :  { %v3146_v57 = vadd.f32 %v5963_v11, %v2953_v4  ;;  %v2952_v38 = vadd.f32 %v2921_v48, %v2745_v45 }
 0x339   :  { %v3145_v50 = vadd.f32 %v3114_v1, %v2952_v38 }
 0x33a   :  { %v5910_v37 = vpop.f32.mrf.mxu1  ;;  %v5966_v61 = vpop.f32.mrf.mxu0 }
 0x33b   :  { %v2955_v14 = vadd.f32 %v5910_v37, %v2760_v18 }
 0x33c   :  { %v2931_v62 = vpop.f32.mrf.mxu1  ;;  %v3124_v22 = vpop.f32.mrf.mxu0 }
 0x33d   :  { %v3148_v40 = vadd.f32 %v5966_v61, %v2955_v14  ;;  %v2954_v17 = vadd.f32 %v2931_v62, %v2755_v25 }
 0x33f   :  { %v3147_v63 = vadd.f32 %v3124_v22, %v2954_v17 }
 0x340   :  { %v6001_v30 = vpop.f32.mrf.mxu1  ;;  %v8423_v59 = vpop.f32.mrf.mxu0 }
 0x341   :  { %v8421_v9 = vadd.f32 %v6001_v30, %v3134_v2 }
 0x342   :  { %v3247_v19 = vpop.f32.mrf.mxu1  ;;  %v8427_v7 = vpop.f32.mrf.mxu0 }
 0x343   :  { %v8425_v24 = vadd.f32 %v3247_v19, %v3133_v58 }
 0x346   :  { %v6004_v45 = vpop.f32.mrf.mxu1  ;;  %v8431_v18 = vpop.f32.mrf.mxu0 }
 0x347   :  { %v8429_v5 = vadd.f32 %v6004_v45, %v3136_v49 }
 0x348   :  { %v3257_v29 = vpop.f32.mrf.mxu1  ;;  %v8435_v25 = vpop.f32.mrf.mxu0 }
 0x349   :  { %v8433_v10 = vadd.f32 %v3257_v29, %v3135_v51 }
 0x34c   :  { %v6007_v39 = vpop.f32.mrf.mxu1  ;;  %v8439_v53 = vpop.f32.mrf.mxu0 }
 0x34d   :  { %v8437_v2 = vadd.f32 %v6007_v39, %v3138_v42 }
 0x34e   :  { %v3267_v34 = vpop.f32.mrf.mxu1  ;;  %v8443_v6 = vpop.f32.mrf.mxu0 }
 0x34f   :  { %v8441_v58 = vadd.f32 %v3267_v34, %v3137_v41 }
 0x352   :  { %v6010_v16 = vpop.f32.mrf.mxu1  ;;  %v8447_v60 = vpop.f32.mrf.mxu0 }
 0x353   :  { %v8445_v49 = vadd.f32 %v6010_v16, %v3140_v56 }
 0x354   :  { %v3277_v21 = vpop.f32.mrf.mxu1  ;;  %v8451_v31 = vpop.f32.mrf.mxu0 }
 0x355   :  { %v8449_v51 = vadd.f32 %v3277_v21, %v3139_v26 }
 0x358   :  { %v6013_v15 = vpop.f32.mrf.mxu1  ;;  %v8455_v33 = vpop.f32.mrf.mxu0 }
 0x359   :  { %v8453_v42 = vadd.f32 %v6013_v15, %v3142_v28  ;;  %v3520_v15 = vadd.f32 %v8423_v59, %v8421_v9  ;;  %v3522_v9 = vadd.f32 %v8431_v18, %v8429_v5  ;;  %v3521_v59 = vadd.f32 %v8435_v25, %v8433_v10 }
 0x35a   :  { %v3287_v55 = vpop.f32.mrf.mxu1  ;;  %v8459_v20 = vpop.f32.mrf.mxu0  ;;  %v3524_v10 = vadd.f32 %v8439_v53, %v8437_v2  ;;  %v3523_v25 = vadd.f32 %v8443_v6, %v8441_v58  ;;  %v3526_v2 = vadd.f32 %v8447_v60, %v8445_v49  ;;  %v3525_v53 = vadd.f32 %v8451_v31, %v8449_v51 }
 0x35b   :  { %v8457_v41 = vadd.f32 %v3287_v55, %v3141_v3 }
 0x35d   :  { %v3527_v49 = vadd.f32 %v8459_v20, %v8457_v41 }
 0x35e   :  { %v6016_v35 = vpop.f32.mrf.mxu1  ;;  %v8463_v32 = vpop.f32.mrf.mxu0 }
 0x35f   :  { %v8461_v56 = vadd.f32 %v6016_v35, %v3144_v46 }
 0x360   :  { %v3297_v12 = vpop.f32.mrf.mxu1  ;;  %v8467_v23 = vpop.f32.mrf.mxu0 }
 0x361   :  { %v8465_v26 = vadd.f32 %v3297_v12, %v3143_v27  ;;  %v3519_v12 = vadd.f32 %v8427_v7, %v8425_v24  ;;  %v3530_v60 = vadd.f32 %v8463_v32, %v8461_v56 }
 0x364   :  { %v6019_v0 = vpop.f32.mrf.mxu1  ;;  %v8471_v8 = vpop.f32.mrf.mxu0 }
 0x365   :  { %v8469_v28 = vadd.f32 %v6019_v0, %v3146_v57 }
 0x366   :  { %v3307_v54 = vpop.f32.mrf.mxu1  ;;  %v8475_v52 = vpop.f32.mrf.mxu0 }
 0x367   :  { %v8473_v3 = vadd.f32 %v3307_v54, %v3145_v50 }
 0x369   :  { %v3531_v41 = vadd.f32 %v8475_v52, %v8473_v3 }
 0x36a   :  { %v6022_v47 = vpop.f32.mrf.mxu1  ;;  %v8479_v46 = vpop.f32.mrf.mxu0 }
 0x36b   :  { %v8477_v43 = vadd.f32 %v6022_v47, %v3148_v40 }
 0x36c   :  { %v3317_v44 = vpop.f32.mrf.mxu1  ;;  %v8483_v27 = vpop.f32.mrf.mxu0 }
 0x36d   :  { %v8481_v13 = vadd.f32 %v3317_v44, %v3147_v63 }
 0x370   :  { %v6113_v36 = vpop.f32.mrf.mxu1  ;;  %v6169_v4 = vpop.f32.mrf.mxu0 }
 0x371   :  { %v3714_v0 = vadd.f32 %v6113_v36, %v3520_v15 }
 0x372   :  { %v3634_v11 = vpop.f32.mrf.mxu1  ;;  %v3827_v48 = vpop.f32.mrf.mxu0 }
 0x373   :  { %v3907_v47 = vadd.f32 %v6169_v4, %v3714_v0  ;;  %v3713_v44 = vadd.f32 %v3634_v11, %v3519_v12 }
 0x374   :  { %v6116_v57 = vpop.f32.mrf.mxu1  ;;  %v6172_v38 = vpop.f32.mrf.mxu0 }
 0x375   :  { %v3716_v24 = vadd.f32 %v6116_v57, %v3522_v9 }
 0x376   :  { %v3644_v1 = vpop.f32.mrf.mxu1  ;;  %v3837_v37 = vpop.f32.mrf.mxu0 }
 0x377   :  { %v3715_v7 = vadd.f32 %v3644_v1, %v3521_v59  ;;  %v3909_v18 = vadd.f32 %v6172_v38, %v3716_v24 }
 0x378   :  { %v6119_v50 = vpop.f32.mrf.mxu1 }
 0x379   :  { %v6175_v62 = vpop.f32.mrf.mxu0  ;;  %v3718_v12 = vadd.f32 %v6119_v50, %v3524_v10 }
 0x37a   :  { %v3654_v14 = vpop.f32.mrf.mxu1 }
 0x37b   :  { %v3847_v17 = vpop.f32.mrf.mxu0  ;;  %v3717_v0 = vadd.f32 %v3654_v14, %v3523_v25  ;;  %v3911_v58 = vadd.f32 %v6175_v62, %v3718_v12 }
 0x37c   :  { %v8485_v61 = vpop.f32.mrf.mxu1 }
 0x37d   :  { %v8493_v30 = vpop.f32.mrf.mxu0  ;;  %v3910_v6 = vadd.f32 %v3847_v17, %v3717_v0 }
 0x37e   :  { %v8487_v40 = vpop.f32.mrf.mxu1 }
 0x37f   :  { %v8497_v45 = vpop.f32.mrf.mxu0  ;;  %v3719_v62 = vadd.f32 %v8487_v40, %v3525_v53 }
 0x381   :  { %v8501_v39 = vpop.f32.mrf.mxu0 }
 0x382   :  { %v8489_v22 = vpop.f32.mrf.mxu1 }
 0x383   :  { %v8507_v21 = vpop.f32.mrf.mxu0 }
 0x384   :  { %v8491_v63 = vpop.f32.mrf.mxu1 }
 0x387   :  { %v8495_v19 = vpop.f32.mrf.mxu1 }
 0x388   :  { %8967 = vst [vmem:[#allocation41_spill] sm:$0xff] %v8495_v19  ;;  %v8513_v35 = vpop.f32.mrf.mxu0 }
 0x389   :  { %v8499_v29 = vpop.f32.mrf.mxu1  ;;  %8972 = vst [vmem:[#allocation19_spill] sm:$0xff] %v8513_v35 }
 0x38a   :  { %8968 = vst [vmem:[#allocation42_spill] sm:$0xff] %v8499_v29  ;;  %v3906_v29 = vadd.f32 %v3827_v48, %v3713_v44  ;;  %v3528_v44 = vadd.f32 %v8455_v33, %v8453_v42  ;;  %v3529_v42 = vadd.f32 %v8467_v23, %v8465_v26  ;;  %v3720_v33 = vadd.f32 %v8485_v61, %v3526_v2 }
 0x38b   :  { %v3534_v26 = vadd.f32 %v8479_v46, %v8477_v43  ;;  %v3912_v61 = vadd.f32 %v8497_v45, %v3719_v62  ;;  %v3533_v43 = vadd.f32 %v8483_v27, %v8481_v13 }
 0x38c   :  { %v3913_v23 = vadd.f32 %v8493_v30, %v3720_v33  ;;  %v3722_v40 = vadd.f32 %v8489_v22, %v3528_v44 }
 0x38d   :  { %v8503_v34 = vpop.f32.mrf.mxu1 }
 0x38e   :  { %8969 = vst [vmem:[#allocation43_spill] sm:$0xff] %v8503_v34  ;;  %v8519_v34 = vpop.f32.mrf.mxu0  ;;  %v3915_v46 = vadd.f32 %v8501_v39, %v3722_v40 }
 0x38f   :  { %v8505_v16 = vpop.f32.mrf.mxu1 }
 0x390   :  { %8970 = vst [vmem:[#allocation17_spill] sm:$0xff] %v8505_v16  ;;  %v8529_v36 = vpop.f32.mrf.mxu0 }
 0x391   :  { %v8974_v25 = vld [vmem:[#allocation42_spill] sm:$0xff] }
 0x393   :  { %v8511_v55 = vpop.f32.mrf.mxu1 }
 0x394   :  { %8971 = vst [vmem:[#allocation18_spill] sm:$0xff] %v8511_v55 }
 0x395   :  { %v8517_v54 = vpop.f32.mrf.mxu1  ;;  %v8975_v13 = vld [vmem:[#allocation43_spill] sm:$0xff] }
 0x397   :  { %v8976_v0 = vld [vmem:[#allocation17_spill] sm:$0xff] }
 0x399   :  { %v6225_v16 = vpop.f32.mrf.mxu1 }
 0x39a   :  { %v8521_v19 = vadd.f32 %v6225_v16, %v3907_v47  ;;  %v3908_v16 = vadd.f32 %v3837_v37, %v3715_v7  ;;  %v3532_v7 = vadd.f32 %v8471_v8, %v8469_v28  ;;  %v3721_v28 = vadd.f32 %v8491_v63, %v3527_v49 }
 0x39b   :  { %v4020_v55 = vpop.f32.mrf.mxu1 }
 0x39c   :  { %v8527_v35 = vadd.f32 %v4020_v55, %v3906_v29  ;;  %v4139_v4 = vmul.f32 %v8521_v19, %v8521_v19  ;;  %v8541_v29 = vpop.f32.mrf.mxu0  ;;  %v3914_v63 = vadd.f32 %v8507_v21, %v3721_v28  ;;  %v3726_v27 = vadd.f32 %v8975_v13, %v3532_v7 }
 0x39d   :  { %v3725_v21 = vadd.f32 %v8976_v0, %v3531_v41 }
 0x39e   :  { %v4117_v11 = vadd.f32 %v8521_v19, %v8527_v35  ;;  %v4138_v48 = vmul.f32 %v8527_v35, %v8527_v35  ;;  %v6228_v5 = vpop.f32.mrf.mxu1  ;;  %v8556_v9 = vpop.f32.mrf.mxu0  ;;  %v3919_v49 = vadd.f32 %v8529_v36, %v3726_v27 }
 0x39f   :  { %v8543_v15 = vadd.f32 %v6228_v5, %v3909_v18  ;;  %v3918_v33 = vadd.f32 %v8541_v29, %v3725_v21 }
 0x3a0   :  { %v4154_v57 = vadd.f32 %v4139_v4, %v4138_v48  ;;  %v4030_v1 = vpop.f32.mrf.mxu1  ;;  %v8585_v4 = vpop.f32.mrf.mxu0  ;;  %v8973_v48 = vld [vmem:[#allocation41_spill] sm:$0xff] }
 0x3a1   :  { %v8545_v55 = vadd.f32 %v4030_v1, %v3908_v16  ;;  %v4141_v50 = vmul.f32 %v8543_v15, %v8543_v15  ;;  %v3724_v5 = vadd.f32 %v8973_v48, %v3530_v60 }
 0x3a3   :  { %v4118_v47 = vadd.f32 %v4117_v11, %v8545_v55  ;;  %v4140_v38 = vmul.f32 %v8545_v55, %v8545_v55  ;;  %v6231_v37 = vpop.f32.mrf.mxu1 }
 0x3a4   :  { %v8565_v51 = vadd.f32 %v6231_v37, %v3911_v58 }
 0x3a5   :  { %v4155_v14 = vadd.f32 %v4154_v57, %v4140_v38  ;;  %v4040_v59 = vpop.f32.mrf.mxu1  ;;  %v4119_v24 = vadd.f32 %v4118_v47, %v8543_v15  ;;  %v3723_v57 = vadd.f32 %v8974_v25, %v3529_v42 }
 0x3a6   :  { %v8567_v31 = vadd.f32 %v4040_v59, %v3910_v6  ;;  %v4143_v8 = vmul.f32 %v8565_v51, %v8565_v51 }
 0x3a7   :  { %v4156_v17 = vadd.f32 %v4155_v14, %v4141_v50  ;;  %v8977_v14 = vld [vmem:[#allocation19_spill] sm:$0xff] }
 0x3a8   :  { %v4120_v20 = vadd.f32 %v4119_v24, %v8567_v31  ;;  %v4142_v56 = vmul.f32 %v8567_v31, %v8567_v31  ;;  %v6234_v32 = vpop.f32.mrf.mxu1  ;;  %v3917_v59 = vadd.f32 %v8977_v14, %v3724_v5  ;;  %v3916_v24 = vadd.f32 %v8519_v34, %v3723_v57 }
 0x3a9   :  { %v8594_v30 = vadd.f32 %v6234_v32, %v3913_v23 }
 0x3aa   :  { %v4157_v3 = vadd.f32 %v4156_v17, %v4142_v56  ;;  %v4050_v52 = vpop.f32.mrf.mxu1  ;;  %v4121_v11 = vadd.f32 %v4120_v20, %v8565_v51 }
 0x3ab   :  { %v8596_v45 = vpop.f32.mrf.mxu0  ;;  %v8598_v22 = vadd.f32 %v4050_v52, %v3912_v61  ;;  %v4145_v53 = vmul.f32 %v8594_v30, %v8594_v30  ;;  %v3727_v52 = vadd.f32 %v8517_v54, %v3533_v43 }
 0x3ac   :  { %v4442_v18 = vmul.f32 %v8596_v45, %v8596_v45  ;;  %v4158_v16 = vadd.f32 %v4157_v3, %v4143_v8  ;;  %v6237_v10 = vpop.f32.mrf.mxu1  ;;  %v8978_v8 = vld [vmem:[#allocation18_spill] sm:$0xff] }
 0x3ad   :  { %v4122_v39 = vadd.f32 %v4121_v11, %v8598_v22  ;;  %v4144_v1 = vmul.f32 %v8598_v22, %v8598_v22  ;;  %v8609_v12 = vpop.f32.mrf.mxu0  ;;  %v8616_v37 = vadd.f32 %v6237_v10, %v3915_v46  ;;  %v3728_v3 = vadd.f32 %v8978_v8, %v3534_v26 }
 0x3ae   :  { %v4420_v47 = vadd.f32 %v8596_v45, %v8609_v12  ;;  %v4441_v38 = vmul.f32 %v8609_v12, %v8609_v12  ;;  %v4060_v2 = vpop.f32.mrf.mxu1 }
 0x3af   :  { %v4159_v58 = vadd.f32 %v4158_v16, %v4144_v1  ;;  %v8620_v6 = vpop.f32.mrf.mxu0  ;;  %v8622_v44 = vadd.f32 %v4060_v2, %v3914_v63  ;;  %v4123_v50 = vadd.f32 %v4122_v39, %v8594_v30  ;;  %v4147_v20 = vmul.f32 %v8616_v37, %v8616_v37 }
 0x3b0   :  { %v4457_v60 = vadd.f32 %v4442_v18, %v4441_v38  ;;  %v6240_v42 = vpop.f32.mrf.mxu1  ;;  %v4444_v34 = vmul.f32 %v8620_v6, %v8620_v6  ;;  %v3921_v21 = vadd.f32 %v8556_v9, %v3728_v3 }
 0x3b1   :  { %v4124_v62 = vadd.f32 %v4123_v50, %v8622_v44  ;;  %v4146_v17 = vmul.f32 %v8622_v44, %v8622_v44  ;;  %v4160_v7 = vadd.f32 %v4159_v58, %v4145_v53  ;;  %v8632_v41 = vpop.f32.mrf.mxu0  ;;  %v8641_v23 = vadd.f32 %v6240_v42, %v3917_v59 }
 0x3b2   :  { %v4421_v36 = vadd.f32 %v4420_v47, %v8632_v41  ;;  %v4443_v56 = vmul.f32 %v8632_v41, %v8632_v41  ;;  %v4070_v29 = vpop.f32.mrf.mxu1  ;;  %v3920_v53 = vadd.f32 %v8585_v4, %v3727_v52 }
 0x3b3   :  { %v4161_v32 = vadd.f32 %v4160_v7, %v4146_v17  ;;  %v8643_v61 = vpop.f32.mrf.mxu0  ;;  %v8645_v40 = vadd.f32 %v4070_v29, %v3916_v24  ;;  %v4125_v28 = vadd.f32 %v4124_v62, %v8616_v37  ;;  %v4149_v13 = vmul.f32 %v8641_v23, %v8641_v23 }
 0x3b4   :  { %v4458_v11 = vadd.f32 %v4457_v60, %v4443_v56  ;;  %v4422_v46 = vadd.f32 %v8620_v6, %v4421_v36  ;;  %v6243_v63 = vpop.f32.mrf.mxu1  ;;  %v4446_v48 = vmul.f32 %v8643_v61, %v8643_v61 }
 0x3b5   :  { %v4126_v5 = vadd.f32 %v4125_v28, %v8645_v40  ;;  %v4148_v18 = vmul.f32 %v8645_v40, %v8645_v40  ;;  %v4162_v16 = vadd.f32 %v4161_v32, %v4147_v20  ;;  %v8656_v10 = vpop.f32.mrf.mxu0  ;;  %v8661_v43 = vadd.f32 %v6243_v63, %v3919_v49 }
 0x3b6   :  { %v4423_v25 = vadd.f32 %v4422_v46, %v8656_v10  ;;  %v4445_v54 = vmul.f32 %v8656_v10, %v8656_v10  ;;  %v4459_v26 = vadd.f32 %v4458_v11, %v4444_v34  ;;  %v4080_v57 = vpop.f32.mrf.mxu1 }
 0x3b7   :  { %v4163_v27 = vadd.f32 %v4162_v16, %v4148_v18  ;;  %v8665_v39 = vpop.f32.mrf.mxu0  ;;  %v8667_v1 = vadd.f32 %v4080_v57, %v3918_v33  ;;  %v4127_v0 = vadd.f32 %v4126_v5, %v8641_v23  ;;  %v4151_v24 = vmul.f32 %v8661_v43, %v8661_v43 }
 0x3b8   :  { %v4460_v47 = vadd.f32 %v4459_v26, %v4445_v54  ;;  %v4424_v38 = vadd.f32 %v8643_v61, %v4423_v25  ;;  %v6246_v2 = vpop.f32.mrf.mxu1  ;;  %v4448_v7 = vmul.f32 %v8665_v39, %v8665_v39 }
 0x3b9   :  { %v4128_v58 = vadd.f32 %v4127_v0, %v8667_v1  ;;  %v4150_v50 = vmul.f32 %v8667_v1, %v8667_v1  ;;  %v4164_v14 = vadd.f32 %v4163_v27, %v4149_v13  ;;  %v8676_v59 = vpop.f32.mrf.mxu0  ;;  %v8682_v60 = vadd.f32 %v6246_v2, %v3921_v21 }
 0x3ba   :  { %v4447_v9 = vmul.f32 %v8676_v59, %v8676_v59  ;;  %v4461_v49 = vadd.f32 %v4460_v47, %v4446_v48  ;;  %v4090_v42 = vpop.f32.mrf.mxu1  ;;  %v4425_v4 = vadd.f32 %v4424_v38, %v8676_v59 }
 0x3bb   :  { %v4165_v33 = vadd.f32 %v4164_v14, %v4150_v50  ;;  %v8685_v62 = vadd.f32 %v4090_v42, %v3920_v53  ;;  %v4129_v17 = vadd.f32 %v4128_v58, %v8661_v43  ;;  %v4153_v28 = vmul.f32 %v8682_v60, %v8682_v60 }
 0x3bc   :  { %v4462_v20 = vadd.f32 %v4461_v49, %v4447_v9  ;;  %v4426_v32 = vadd.f32 %v8665_v39, %v4425_v4 }
 0x3bd   :  { %v4130_v34 = vadd.f32 %v4129_v17, %v8685_v62  ;;  %v4152_v36 = vmul.f32 %v8685_v62, %v8685_v62  ;;  %v4166_v56 = vadd.f32 %v4165_v33, %v4151_v24 }
 0x3be   :  { %v8693_v29 = vpop.f32.mrf.mxu1  ;;  %v4463_v52 = vadd.f32 %v4462_v20, %v4448_v7 }
 0x3bf   :  { %v4131_v8 = vadd.f32 %v4130_v34, %v8682_v60  ;;  %v4167_v3 = vadd.f32 %v4166_v56, %v4152_v36  ;;  %v4450_v54 = vmul.f32 %v8693_v29, %v8693_v29 }
 0x3c0   :  { %v8699_v11 = vpop.f32.mrf.mxu1 }
 0x3c1   :  { %v4132_v46 = vrot.slane %v4131_v8, 4  ;;  %v4168_v63 = vadd.f32 %v4167_v3, %v4153_v28  ;;  %v4427_v48 = vadd.f32 %v4426_v32, %v8699_v11  ;;  %v4449_v5 = vmul.f32 %v8699_v11, %v8699_v11 }
 0x3c2   :  { %v8704_v18 = vpop.f32.mrf.mxu1 }
 0x3c3   :  { %v4133_v16 = vadd.f32 %v4132_v46, %v4131_v8  ;;  %v4169_v25 = vrot.slane %v4168_v63, 4  ;;  %v4464_v26 = vadd.f32 %v4463_v52, %v4449_v5  ;;  %v4428_v13 = vadd.f32 %v8693_v29, %v4427_v48 }
 0x3c4   :  { %v8708_v57 = vpop.f32.mrf.mxu1  ;;  %v4452_v50 = vmul.f32 %v8704_v18, %v8704_v18 }
 0x3c5   :  { %v4134_v27 = vrot.slane %v4133_v16, 2  ;;  %v4170_v0 = vadd.f32 %v4169_v25, %v4168_v63  ;;  %v4451_v21 = vmul.f32 %v8708_v57, %v8708_v57  ;;  %v4465_v47 = vadd.f32 %v4464_v26, %v4450_v54 }
 0x3c6   :  { %v4429_v38 = vadd.f32 %v4428_v13, %v8708_v57  ;;  %v8714_v2 = vpop.f32.mrf.mxu1 }
 0x3c7   :  { %v4135_v53 = vadd.f32 %v4134_v27, %v4133_v16  ;;  %v4171_v58 = vrot.slane %v4170_v0, 2  ;;  %v4466_v14 = vadd.f32 %v4465_v47, %v4451_v21  ;;  %v4454_v36 = vmul.f32 %v8714_v2, %v8714_v2 }
 0x3c8   :  { %v8718_v24 = vpop.f32.mrf.mxu1  ;;  %v4430_v9 = vadd.f32 %v8704_v18, %v4429_v38 }
 0x3c9   :  { %v4136_v49 = vrot.slane %v4135_v53, 1  ;;  %v4172_v42 = vadd.f32 %v4171_v58, %v4170_v0  ;;  %v4453_v33 = vmul.f32 %v8718_v24, %v8718_v24  ;;  %v4467_v4 = vadd.f32 %v4466_v14, %v4452_v50 }
 0x3ca   :  { %v4431_v17 = vadd.f32 %v4430_v9, %v8718_v24  ;;  %v8724_v7 = vpop.f32.mrf.mxu1 }
 0x3cb   :  { %v4137_v20 = vadd.f32 %v4136_v49, %v4135_v53  ;;  %v4173_v34 = vrot.slane %v4172_v42, 1  ;;  %v4468_v56 = vadd.f32 %v4467_v4, %v4453_v33  ;;  %v4456_v63 = vmul.f32 %v8724_v7, %v8724_v7 }
 0x3cc   :  { %v8728_v32 = vpop.f32.mrf.mxu1  ;;  %v4432_v28 = vadd.f32 %v8714_v2, %v4431_v17 }
 0x3cd   :  { %v4174_v8 = vadd.f32 %v4173_v34, %v4172_v42  ;;  %v8731_v3 = vmul.f32 0.0078125, %v4137_v20  ;;  %v4455_v52 = vmul.f32 %v8728_v32, %v8728_v32  ;;  %v4469_v46 = vadd.f32 %v4468_v56, %v4454_v36 }
 0x3ce   :  { %v4433_v48 = vadd.f32 %v4432_v28, %v8728_v32 }
 0x3cf   :  { %v4176_v5 = vmul.f32 0.0078125, %v4174_v8  ;;  %v4177_v16 = vmul.f32 %v8731_v3, %v8731_v3  ;;  %v4193_v25 = vsub.f32 %v8685_v62, %v8731_v3  ;;  %v4470_v54 = vadd.f32 %v4469_v46, %v4455_v52 }
 0x3d0   :  { %v4434_v26 = vadd.f32 %v8724_v7, %v4433_v48  ;;  %v4179_v13 = vsub.f32 %v8527_v35, %v8731_v3  ;;  %v4180_v27 = vsub.f32 %v8521_v19, %v8731_v3  ;;  %v4181_v0 = vsub.f32 %v8545_v55, %v8731_v3 }
 0x3d1   :  { %v4178_v21 = vsub.f32 %v4176_v5, %v4177_v16  ;;  %v4471_v47 = vadd.f32 %v4470_v54, %v4456_v63  ;;  %v4182_v38 = vsub.f32 %v8543_v15, %v8731_v3  ;;  %v4183_v62 = vsub.f32 %v8567_v31, %v8731_v3 }
 0x3d2   :  { %v4435_v53 = vrot.slane %v4434_v26, 4  ;;  %v4184_v58 = vsub.f32 %v8565_v51, %v8731_v3  ;;  %v4185_v35 = vsub.f32 %v8598_v22, %v8731_v3  ;;  %v4186_v19 = vsub.f32 %v8594_v30, %v8731_v3 }
 0x3d3   :  { %v4195_v50 = vadd.f32 1e-05, %v4178_v21  ;;  %v4472_v55 = vrot.slane %v4471_v47, 4  ;;  %v4187_v14 = vsub.f32 %v8622_v44, %v8731_v3  ;;  %v4188_v15 = vsub.f32 %v8616_v37, %v8731_v3 }
 0x3d4   :  { %v4436_v9 = vadd.f32 %v4435_v53, %v4434_v26  ;;  %v4189_v31 = vsub.f32 %v8645_v40, %v8731_v3  ;;  %v4190_v51 = vsub.f32 %v8641_v23, %v8731_v3  ;;  %v4191_v22 = vsub.f32 %v8667_v1, %v8731_v3  ;;  %v4627_v53 = vld [vmem:[%s8877_s5] ss:$0 sm:$0xff] }
 0x3d5   :  { %6342 = vrsqrt.f32 %v4195_v50  ;;  %v4473_v30 = vadd.f32 %v4472_v55, %v4471_v47  ;;  %v4192_v49 = vsub.f32 %v8661_v43, %v8731_v3  ;;  %v4194_v44 = vsub.f32 %v8682_v60, %v8731_v3 }
 0x3d6   :  { %v4437_v42 = vrot.slane %v4436_v9, 2 }
 0x3d7   :  { %v4474_v37 = vrot.slane %v4473_v30, 2 }
 0x3d8   :  { %v4438_v33 = vadd.f32 %v4437_v42, %v4436_v9 }
 0x3d9   :  { %v4475_v4 = vadd.f32 %v4474_v37, %v4473_v30 }
 0x3da   :  { %v4439_v17 = vrot.slane %v4438_v33, 1 }
 0x3db   :  { %v4476_v40 = vrot.slane %v4475_v4, 1 }
 0x3dc   :  { %v4440_v20 = vadd.f32 %v4439_v17, %v4438_v33 }
 0x3dd   :  { %v4477_v34 = vadd.f32 %v4476_v40, %v4475_v4 }
 0x3de   :  { %v8773_v23 = vmul.f32 0.0078125, %v4440_v20 }
 0x3df   :  { %v4479_v36 = vmul.f32 0.0078125, %v4477_v34 }
 0x3e0   :  { %v4480_v1 = vmul.f32 %v8773_v23, %v8773_v23 }
 0x3e2   :  { %v6343_v56 = vpop.eup %6342  ;;  %v4481_v28 = vsub.f32 %v4479_v36, %v4480_v1 }
 0x3e3   :  { %v4211_v43 = vmul.f32 %v6343_v56, %v4193_v25  ;;  %v4197_v8 = vmul.f32 %v6343_v56, %v4179_v13  ;;  %v4198_v52 = vmul.f32 %v6343_v56, %v4180_v27  ;;  %v4199_v60 = vmul.f32 %v6343_v56, %v4181_v0 }
 0x3e4   :  { %v4498_v3 = vadd.f32 1e-05, %v4481_v28  ;;  %v4200_v46 = vmul.f32 %v6343_v56, %v4182_v38  ;;  %v4201_v63 = vmul.f32 %v6343_v56, %v4183_v62  ;;  %v4202_v48 = vmul.f32 %v6343_v56, %v4184_v58 }
 0x3e5   :  { %v4203_v5 = vmul.f32 %v6343_v56, %v4185_v35  ;;  %v4204_v16 = vmul.f32 %v6343_v56, %v4186_v19  ;;  %v4205_v54 = vmul.f32 %v6343_v56, %v4187_v14  ;;  %v4206_v26 = vmul.f32 %v6343_v56, %v4188_v15 }
 0x3e6   :  { %6344 = vrsqrt.f32 %v4498_v3  ;;  %v4207_v21 = vmul.f32 %v6343_v56, %v4189_v31  ;;  %v4208_v47 = vmul.f32 %v6343_v56, %v4190_v51  ;;  %v4209_v50 = vmul.f32 %v6343_v56, %v4191_v22 }
 0x3e7   :  { %v4210_v25 = vmul.f32 %v6343_v56, %v4192_v49  ;;  %v4212_v13 = vmul.f32 %v6343_v56, %v4194_v44  ;;  %v4496_v27 = vsub.f32 %v8728_v32, %v8773_v23  ;;  %v4482_v0 = vsub.f32 %v8609_v12, %v8773_v23 }
 0x3e8   :  { %v4483_v38 = vsub.f32 %v8596_v45, %v8773_v23  ;;  %v4484_v62 = vsub.f32 %v8632_v41, %v8773_v23  ;;  %v4485_v58 = vsub.f32 %v8620_v6, %v8773_v23  ;;  %v4486_v35 = vsub.f32 %v8656_v10, %v8773_v23  ;;  %v4628_v6 = vld [vmem:[%s8878_s6] ss:$0 sm:$0xff] }
 0x3e9   :  { %v4487_v19 = vsub.f32 %v8643_v61, %v8773_v23  ;;  %v4488_v32 = vsub.f32 %v8676_v59, %v8773_v23  ;;  %v4233_v55 = vmul.f32 %v4627_v53, %v4211_v43  ;;  %v4219_v12 = vmul.f32 %v4627_v53, %v4197_v8 }
 0x3ea   :  { %v4489_v45 = vsub.f32 %v8665_v39, %v8773_v23  ;;  %v4490_v41 = vsub.f32 %v8699_v11, %v8773_v23  ;;  %v4220_v14 = vmul.f32 %v4627_v53, %v4198_v52  ;;  %v4221_v10 = vmul.f32 %v4627_v53, %v4199_v60 }
 0x3eb   :  { %v4222_v15 = vmul.f32 %v4627_v53, %v4200_v46  ;;  %v4223_v9 = vmul.f32 %v4627_v53, %v4201_v63  ;;  %v4224_v61 = vmul.f32 %v4627_v53, %v4202_v48  ;;  %v4225_v31 = vmul.f32 %v4627_v53, %v4203_v5  ;;  %v4629_v48 = vld [vmem:[%s8880_s8] ss:$0 sm:$0xff]  ;;  %s6412_s8 = smov [#allocation7]  }
 0x3ec   :  { %v4226_v51 = vmul.f32 %v4627_v53, %v4204_v16  ;;  %v4227_v59 = vmul.f32 %v4627_v53, %v4205_v54  ;;  %v4228_v22 = vmul.f32 %v4627_v53, %v4206_v26  ;;  %v4229_v30 = vmul.f32 %v4627_v53, %v4207_v21 }
 0x3ed   :  { %v4230_v49 = vmul.f32 %v4627_v53, %v4208_v47  ;;  %v4231_v44 = vmul.f32 %v4627_v53, %v4209_v50  ;;  %v4255_v39 = vadd.f32 %v4628_v6, %v4233_v55  ;;  %v4232_v42 = vmul.f32 %v4627_v53, %v4210_v25 }
 0x3ee   :  { %v4234_v37 = vmul.f32 %v4627_v53, %v4212_v13  ;;  %v8803_v11 = vadd.f32 %v4628_v6, %v4219_v12  ;;  %v8805_v33 = vadd.f32 %v4628_v6, %v4220_v14  ;;  %v8807_v4 = vadd.f32 %v4628_v6, %v4221_v10  ;;  %v4630_v53 = vld [vmem:[%s8881_s9] ss:$0 sm:$0xff]  ;;  %s4613_s9 = sshll.u32 %s6412_s8, 4  ;;  %s4614_s9 = int_to_ptr.vmem [resolvable:$true] %s4613_s9 }
 0x3ef   :  { %v8809_v17 = vadd.f32 %v4628_v6, %v4222_v15  ;;  %v8811_v40 = vadd.f32 %v4628_v6, %v4223_v9  ;;  %v8813_v20 = vadd.f32 %v4628_v6, %v4224_v61  ;;  %v8815_v34 = vadd.f32 %v4628_v6, %v4225_v31  ;;  %s6384_s26 = scalar_lea.vmem %s4614_s9, 2048  ;;  %p6389_p6 = scmp.lt.s32.totalorder %s4614_s9, %s4614_s9 }
 0x3f0   :  { %v8817_v36 = vadd.f32 %v4628_v6, %v4226_v51  ;;  %v8819_v1 = vadd.f32 %v4628_v6, %v4227_v59  ;;  %v8821_v56 = vadd.f32 %v4628_v6, %v4228_v22  ;;  %v8823_v28 = vadd.f32 %v4628_v6, %v4229_v30  ;;  %p6385_p5 = scmp.ne.s32.totalorder %s4614_s9, %s6384_s26  ;;  %p6390_p7 = scmp.lt.s32.totalorder %s6384_s26, %s6384_s26 }
 0x3f1   :  { %v8825_v43 = vadd.f32 %v4628_v6, %v4230_v49  ;;  %v8827_v8 = vadd.f32 %v4628_v6, %v4231_v44  ;;  %v8829_v52 = vadd.f32 %v4628_v6, %v4232_v42  ;;  %v8831_v60 = vadd.f32 %v4628_v6, %v4234_v37 }
 0x3f2   :  { %v4491_v3 = vsub.f32 %v8693_v29, %v8773_v23  ;;  %v4492_v46 = vsub.f32 %v8708_v57, %v8773_v23  ;;  %v4493_v5 = vsub.f32 %v8704_v18, %v8773_v23  ;;  %v4494_v16 = vsub.f32 %v8718_v24, %v8773_v23  ;;  %p6391_p8 = por %p6390_p7, %p6389_p6 }
 0x3f3   :  { %v6345_v63 = vpop.eup %6344  ;;  %v4495_v54 = vsub.f32 %v8714_v2, %v8773_v23  ;;  %v4497_v29 = vsub.f32 %v8724_v7, %v8773_v23 }
 0x3f4   :  { %v4514_v26 = vmul.f32 %v6345_v63, %v4496_v27  ;;  %v4500_v21 = vmul.f32 %v6345_v63, %v4482_v0  ;;  %v4501_v57 = vmul.f32 %v6345_v63, %v4483_v38  ;;  %v4502_v47 = vmul.f32 %v6345_v63, %v4484_v62  ;;  %p6392_p9 = pnand %p6391_p8, %p6385_p5 }
 0x3f5   :  { %v4503_v50 = vmul.f32 %v6345_v63, %v4485_v58  ;;  %v4504_v25 = vmul.f32 %v6345_v63, %v4486_v35  ;;  %v4505_v18 = vmul.f32 %v6345_v63, %v4487_v19  ;;  %v4506_v13 = vmul.f32 %v6345_v63, %v4488_v32 }
 0x3f6   :  { %v4536_v55 = vmul.f32 %v4629_v48, %v4514_v26  ;;  %v4507_v24 = vmul.f32 %v6345_v63, %v4489_v45  ;;  %v4508_v12 = vmul.f32 %v6345_v63, %v4490_v41  ;;  %v4509_v6 = vmul.f32 %v6345_v63, %v4491_v3 }
 0x3f7   :  { %v4510_v2 = vmul.f32 %v6345_v63, %v4492_v46  ;;  %v4511_v14 = vmul.f32 %v6345_v63, %v4493_v5  ;;  %v4512_v10 = vmul.f32 %v6345_v63, %v4494_v16  ;;  %v4513_v7 = vmul.f32 %v6345_v63, %v4495_v54 }
 0x3f8   :  { %v4558_v23 = vadd.f32 %v4630_v53, %v4536_v55  ;;  %v4515_v27 = vmul.f32 %v6345_v63, %v4497_v29  ;;  %v4522_v0 = vmul.f32 %v4629_v48, %v4500_v21  ;;  %v4523_v38 = vmul.f32 %v4629_v48, %v4501_v57 }
 0x3f9   :  { %v4524_v62 = vmul.f32 %v4629_v48, %v4502_v47  ;;  %v4525_v15 = vmul.f32 %v4629_v48, %v4503_v50  ;;  %v4526_v9 = vmul.f32 %v4629_v48, %v4504_v25  ;;  %v4527_v61 = vmul.f32 %v4629_v48, %v4505_v18 }
 0x3fa   :  { %v4574_v58 = vadd.f32 %v4558_v23, %v4255_v39  ;;  %v4528_v35 = vmul.f32 %v4629_v48, %v4506_v13  ;;  %v4529_v19 = vmul.f32 %v4629_v48, %v4507_v24  ;;  %v4530_v32 = vmul.f32 %v4629_v48, %v4508_v12 }
 0x3fb   :  { %v4531_v31 = vmul.f32 %v4629_v48, %v4509_v6  ;;  %v4532_v45 = vmul.f32 %v4629_v48, %v4510_v2  ;;  %v4533_v41 = vmul.f32 %v4629_v48, %v4511_v14  ;;  %v4534_v51 = vmul.f32 %v4629_v48, %v4512_v10 }
 0x3fc   :  { %v4590_v59 = vmax.f32 %v4574_v58, 0.0  ;;  %v4535_v22 = vmul.f32 %v4629_v48, %v4513_v7  ;;  %v4537_v30 = vmul.f32 %v4629_v48, %v4515_v27  ;;  %v4544_v49 = vadd.f32 %v4630_v53, %v4522_v0 }
 0x3fd   :  { %v4545_v44 = vadd.f32 %v4630_v53, %v4523_v38  ;;  %v4546_v42 = vadd.f32 %v4630_v53, %v4524_v62  ;;  %v4547_v37 = vadd.f32 %v4630_v53, %v4525_v15  ;;  %v4548_v3 = vadd.f32 %v4630_v53, %v4526_v9 }
 0x3fe   :  { %4606 = vst [vmem:[#allocation7 + $0x70] sm:$0xff] %v4590_v59  ;;  %v4549_v46 = vadd.f32 %v4630_v53, %v4527_v61  ;;  %v4550_v63 = vadd.f32 %v4630_v53, %v4528_v35  ;;  %v4551_v5 = vadd.f32 %v4630_v53, %v4529_v19  ;;  %v4552_v39 = vadd.f32 %v4630_v53, %v4530_v32 }
 0x3ff   :  { %v4553_v16 = vadd.f32 %v4630_v53, %v4531_v31  ;;  %v4554_v54 = vadd.f32 %v4630_v53, %v4532_v45  ;;  %v4555_v29 = vadd.f32 %v4630_v53, %v4533_v41  ;;  %v4556_v26 = vadd.f32 %v4630_v53, %v4534_v51 }
 0x400   :  { %v4557_v21 = vadd.f32 %v4630_v53, %v4535_v22  ;;  %v4559_v57 = vadd.f32 %v4630_v53, %v4537_v30  ;;  %v4560_v47 = vadd.f32 %v4544_v49, %v8803_v11  ;;  %v4561_v48 = vadd.f32 %v4545_v44, %v8805_v33 }
 0x401   :  { %v4562_v50 = vadd.f32 %v4546_v42, %v8807_v4  ;;  %v4563_v25 = vadd.f32 %v4547_v37, %v8809_v17  ;;  %v4564_v18 = vadd.f32 %v4548_v3, %v8811_v40  ;;  %v4565_v13 = vadd.f32 %v4549_v46, %v8813_v20 }
 0x402   :  { %v4566_v55 = vadd.f32 %v4550_v63, %v8815_v34  ;;  %v4567_v24 = vadd.f32 %v4551_v5, %v8817_v36  ;;  %v4568_v12 = vadd.f32 %v4552_v39, %v8819_v1  ;;  %v4569_v53 = vadd.f32 %v4553_v16, %v8821_v56 }
 0x403   :  { %v4570_v11 = vadd.f32 %v4554_v54, %v8823_v28  ;;  %v4571_v33 = vadd.f32 %v4555_v29, %v8825_v43  ;;  %v4572_v4 = vadd.f32 %v4556_v26, %v8827_v8  ;;  %v4573_v17 = vadd.f32 %v4557_v21, %v8829_v52 }
 0x404   :  { %v4575_v40 = vadd.f32 %v4559_v57, %v8831_v60  ;;  %v4576_v6 = vmax.f32 %v4560_v47, 0.0  ;;  %v4577_v20 = vmax.f32 %v4561_v48, 0.0  ;;  %v4578_v2 = vmax.f32 %v4562_v50, 0.0 }
 0x405   :  { %v4579_v34 = vmax.f32 %v4563_v25, 0.0  ;;  %v4580_v36 = vmax.f32 %v4564_v18, 0.0  ;;  %v4581_v1 = vmax.f32 %v4565_v13, 0.0  ;;  %v4582_v14 = vmax.f32 %v4566_v55, 0.0 }
 0x406   :  { %v4583_v56 = vmax.f32 %v4567_v24, 0.0  ;;  %v4584_v10 = vmax.f32 %v4568_v12, 0.0  ;;  %v4585_v28 = vmax.f32 %v4569_v53, 0.0  ;;  %v4586_v7 = vmax.f32 %v4570_v11, 0.0  ;;  %4592 = vst [vmem:[#allocation7] sm:$0xff] %v4576_v6  ;;  %4593 = vst [vmem:[#allocation7 + $0x8] sm:$0xff] %v4577_v20 }
 0x407   :  { %4594 = vst [vmem:[#allocation7 + $0x10] sm:$0xff] %v4578_v2  ;;  %v4587_v43 = vmax.f32 %v4571_v33, 0.0  ;;  %v4588_v8 = vmax.f32 %v4572_v4, 0.0  ;;  %v4589_v52 = vmax.f32 %v4573_v17, 0.0  ;;  %v4591_v60 = vmax.f32 %v4575_v40, 0.0  ;;  %4595 = vst [vmem:[#allocation7 + $0x18] sm:$0xff] %v4579_v34 }
 0x408   :  { %4596 = vst [vmem:[#allocation7 + $0x20] sm:$0xff] %v4580_v36  ;;  %4597 = vst [vmem:[#allocation7 + $0x28] sm:$0xff] %v4581_v1 }
 0x409   :  { %4598 = vst [vmem:[#allocation7 + $0x30] sm:$0xff] %v4582_v14  ;;  %4599 = vst [vmem:[#allocation7 + $0x38] sm:$0xff] %v4583_v56 }
 0x40a   :  { %4600 = vst [vmem:[#allocation7 + $0x40] sm:$0xff] %v4584_v10  ;;  %4601 = vst [vmem:[#allocation7 + $0x48] sm:$0xff] %v4585_v28 }
 0x40b   :  { %4602 = vst [vmem:[#allocation7 + $0x50] sm:$0xff] %v4586_v7  ;;  %4603 = vst [vmem:[#allocation7 + $0x58] sm:$0xff] %v4587_v43 }
 0x40c   :  { %4604 = vst [vmem:[#allocation7 + $0x60] sm:$0xff] %v4588_v8  ;;  %4605 = vst [vmem:[#allocation7 + $0x68] sm:$0xff] %v4589_v52 }
 0x40d   :  { %4607 = vst [vmem:[#allocation7 + $0x78] sm:$0xff] %v4591_v60 }
 0x40e   :  { %6395 = shalt.err (!%p6392_p9)
}
 0x40f   :  { %4619 = dma.vmem_to_hbm [thread:$0]  %s4614_s9, 2048, %s8882_s10, [#allocation6], %s6409_s16, %s6409_s16, %s6410_s17  }
 0x410   :  { %6406 = dma.done.wait [#allocation6], 2048  }
 0x411   :  { %6407 = vsyncadd [#allocation6], 4294965248 }
 0x412   :  { %4623 = vsyncpa [#allocation5], 1 }
 0x413   :  { %4624 = vsyncpa [#allocation6], 1 }

</bundles_post_ra>
